<compile_context>
chip_gen: v7x
topology: tpu7x:2x2x1
jax: 0.10.0
libtpu: 0.0.40
codegen_flags: <defaults>
</compile_context>

<pallas_src>
import jax
import jax.numpy as jnp
from jax.experimental import pallas as pl
from jax.experimental.pallas import tpu as pltpu

D_IN = 28 * 28     # 784, flattened MNIST image
HIDDEN = 128
LATENT = 32        # middle layers are fused away in prepare_params


def _round_up(n, m):
    return ((n + m - 1) // m) * m


def _pick_batch_tile(B):
    """Large tiles amortize the ~0.35us/grid-step overhead (single-TC v5e/v6e);
    keep >=2 grid steps when the batch allows so v7x's two TensorCores can
    share the parallel axis; cap at 512 rows (<8 MiB of VMEM)."""
    b8 = _round_up(max(B, 8), 8)
    if b8 <= 256:
        return b8                                # single tile
    if b8 <= 1024:
        return _round_up(pl.cdiv(b8, 2), 8)      # exactly 2 tiles of 136..512 rows
    return 512


def autoencoder_kernel(x_ref,                    # f32 [tile, 784]
                       w1_ref, b1_ref,           # encoder L1: 784 -> 128
                       wm_ref, bm_ref,           # fused encoder L2 @ decoder L1
                       w4_ref, b4_ref,           # decoder L2: 128 -> 784
                       o_ref):                   # bf16 [tile, 784]
    # f32 -> bf16 cast fused into the kernel (input stays f32 in HBM).
    x = x_ref[...].astype(jnp.bfloat16)

    # ---- encoder layer 1 + ReLU ----
    h = jnp.dot(x, w1_ref[...], preferred_element_type=jnp.float32) + b1_ref[...]
    h = jnp.maximum(h, 0.0)

    # ---- fused (encoder L2 -> decoder L1) + ReLU ----
    h2 = jnp.dot(h.astype(jnp.bfloat16), wm_ref[...],
                 preferred_element_type=jnp.float32) + bm_ref[...]
    h2 = jnp.maximum(h2, 0.0)

    # ---- decoder layer 2 ----
    out = jnp.dot(h2.astype(jnp.bfloat16), w4_ref[...],
                  preferred_element_type=jnp.float32) + b4_ref[...]

    o_ref[...] = out.astype(o_ref.dtype)         # bf16 write (halves output bytes)


def autoencoder_forward(x, params, *, batch_tile=None):
    """x: [B, 784] float (any batch size). Returns reconstruction [B, 784] bf16.

    `params` must be produced by `prepare_params` (bf16 weights, fused middle
    layer, f32 biases)."""
    B, D = x.shape
    assert D == D_IN
    w1, b1, wm, bm, w4, b4 = params

    if batch_tile is None:
        batch_tile = _pick_batch_tile(B)
    batch_tile = min(batch_tile, _round_up(B, 8))

    n_tiles = pl.cdiv(B, batch_tile)
    B_pad = n_tiles * batch_tile

    x = x.astype(jnp.float32)
    if B_pad != B:
        # Single f32 pad, only on the ragged path; padded rows only feed
        # matmul/ReLU and are sliced off below.
        x = jnp.pad(x, ((0, B_pad - B), (0, 0)))

    def full_spec(shape):
        # whole-array block, identical (resident) for every batch tile
        return pl.BlockSpec(shape, lambda i: (0,) * len(shape))

    flops = 2 * B_pad * (D_IN * HIDDEN + HIDDEN * HIDDEN + HIDDEN * D_IN)
    weight_bytes = sum(int(a.size) * a.dtype.itemsize
                       for a in (w1, b1, wm, bm, w4, b4))
    bytes_accessed = (B_pad * D_IN * 4          # f32 input read
                      + B_pad * D_IN * 2        # bf16 output write
                      + weight_bytes)

    out = pl.pallas_call(
        autoencoder_kernel,
        out_shape=jax.ShapeDtypeStruct((B_pad, D_IN), jnp.bfloat16),
        grid_spec=pltpu.PrefetchScalarGridSpec(
            num_scalar_prefetch=0,
            grid=(n_tiles,),
            in_specs=[
                pl.BlockSpec((batch_tile, D_IN), lambda i: (i, 0)),   # x tile
                full_spec(w1.shape), full_spec(b1.shape),
                full_spec(wm.shape), full_spec(bm.shape),
                full_spec(w4.shape), full_spec(b4.shape),
            ],
            out_specs=pl.BlockSpec((batch_tile, D_IN), lambda i: (i, 0)),
        ),
        compiler_params=pltpu.CompilerParams(
            dimension_semantics=("parallel",),
            vmem_limit_bytes=16 * 1024 * 1024),
        cost_estimate=pl.CostEstimate(
            flops=flops, transcendentals=0, bytes_accessed=bytes_accessed),
    )(x, w1, b1, wm, bm, w4, b4)

    return out[:B] if B_pad != B else out


def init_params(key):
    """Deterministic synthetic parameters (Kaiming-ish scaled normals), f32.
    Matches the 4-layer PyTorch structure (784->128->32, 32->128->784)."""
    ks = jax.random.split(key, 8)

    def lin(kw, kb, fan_in, fan_out):
        w = jax.random.normal(kw, (fan_in, fan_out), jnp.float32) / jnp.sqrt(fan_in)
        b = jax.random.normal(kb, (1, fan_out), jnp.float32) * 0.01
        return w, b

    w1, b1 = lin(ks[0], ks[1], D_IN, HIDDEN)
    w2, b2 = lin(ks[2], ks[3], HIDDEN, LATENT)
    w3, b3 = lin(ks[4], ks[5], LATENT, HIDDEN)
    w4, b4 = lin(ks[6], ks[7], HIDDEN, D_IN)
    return (w1, b1, w2, b2, w3, b3, w4, b4)


def prepare_params(params):
    """Cast weights to bf16 (MXU-native) and fold the two middle linears
    (encoder L2 -> decoder L1, no nonlinearity between them) into a single
    128x128 weight with fused bias: u = h @ (w2 @ w3) + (b2 @ w3 + b3)."""
    w1, b1, w2, b2, w3, b3, w4, b4 = params
    w_mid = jnp.dot(w2, w3)                      # [128, 128], computed in f32
    b_mid = jnp.dot(b2, w3) + b3                 # [1, 128], f32
    return (w1.astype(jnp.bfloat16), b1,
            w_mid.astype(jnp.bfloat16), b_mid,
            w4.astype(jnp.bfloat16), b4)


def reference_forward(x, prepared):
    """Pure-JAX reference using the same bf16 operands + f32 accumulation."""
    w1, b1, wm, bm, w4, b4 = prepared
    xb = x.astype(jnp.bfloat16)
    h = jnp.maximum(
        jnp.dot(xb, w1, preferred_element_type=jnp.float32) + b1, 0.0)
    h2 = jnp.maximum(
        jnp.dot(h.astype(jnp.bfloat16), wm,
                preferred_element_type=jnp.float32) + bm, 0.0)
    out = jnp.dot(h2.astype(jnp.bfloat16), w4,
                  preferred_element_type=jnp.float32) + b4
    return out.astype(jnp.bfloat16)


def _check(recon, ref, B):
    assert recon.shape == (B, D_IN)
    assert recon.dtype == jnp.bfloat16
    assert jnp.allclose(recon.astype(jnp.float32), ref.astype(jnp.float32),
                        atol=2e-2, rtol=2e-2), "mismatch vs JAX reference"


if __name__ == "__main__":
    key = jax.random.PRNGKey(0)
    k_x, k_p = jax.random.split(key)

    params = prepare_params(init_params(k_p))

    # Main check: B=512 -> auto tile of 256 rows, grid of 2 parallel steps
    # (fills v6e's 256-wide MXU rows, keeps both v7x TensorCores busy, and
    # amortizes the per-step overhead on single-TC v5e/v6e).
    B = 512
    x = jax.random.uniform(k_x, (B, D_IN), jnp.float32)
    recon = jax.block_until_ready(autoencoder_forward(x, params))
    _check(recon, reference_forward(x, params), B)

    # Ragged-batch path: B not a multiple of 8 -> pad f32 input once + slice.
    B2 = 20
    x2 = jax.random.uniform(k_x, (B2, D_IN), jnp.float32)
    recon2 = jax.block_until_ready(autoencoder_forward(x2, params))
    _check(recon2, reference_forward(x2, params), B2)

    print("KERNEL_OK")
</pallas_src>

<mosaic_0001>
module attributes {stable_mosaic.version = 11 : i64} {
  func.func @autoencoder_kernel(%arg0: i32, %arg1: memref<256x784xf32, #tpu.memory_space<vmem>>, %arg2: memref<784x128xbf16, #tpu.memory_space<vmem>>, %arg3: memref<1x128xf32, #tpu.memory_space<vmem>>, %arg4: memref<128x128xbf16, #tpu.memory_space<vmem>>, %arg5: memref<1x128xf32, #tpu.memory_space<vmem>>, %arg6: memref<128x784xbf16, #tpu.memory_space<vmem>>, %arg7: memref<1x784xf32, #tpu.memory_space<vmem>>, %arg8: memref<256x784xbf16, #tpu.memory_space<vmem>>) attributes {dimension_semantics = [#tpu.dimension_semantics<parallel>], iteration_bounds = array<i64: 2>, scalar_prefetch = 0 : i64, scratch_operands = 0 : i64, tpu.core_type = #tpu.core_type<tc>, window_params = [{transform_indices = @transform_0, window_bounds = array<i64: 256, 784>}, {pipeline_mode = #tpu.pipeline_mode<synchronous>, transform_indices = @transform_1, window_bounds = array<i64: 784, 128>}, {pipeline_mode = #tpu.pipeline_mode<synchronous>, transform_indices = @transform_2, window_bounds = array<i64: 1, 128>}, {pipeline_mode = #tpu.pipeline_mode<synchronous>, transform_indices = @transform_3, window_bounds = array<i64: 128, 128>}, {pipeline_mode = #tpu.pipeline_mode<synchronous>, transform_indices = @transform_4, window_bounds = array<i64: 1, 128>}, {pipeline_mode = #tpu.pipeline_mode<synchronous>, transform_indices = @transform_5, window_bounds = array<i64: 128, 784>}, {pipeline_mode = #tpu.pipeline_mode<synchronous>, transform_indices = @transform_6, window_bounds = array<i64: 1, 784>}, {transform_indices = @transform_7, window_bounds = array<i64: 256, 784>}]} {
    %c0 = arith.constant 0 : index
    %c0_0 = arith.constant 0 : index
    %0 = vector.load %arg1[%c0, %c0_0] : memref<256x784xf32, #tpu.memory_space<vmem>>, vector<256x784xf32>
    %1 = arith.truncf %0 : vector<256x784xf32> to vector<256x784xbf16>
    %c0_1 = arith.constant 0 : index
    %c0_2 = arith.constant 0 : index
    %2 = vector.load %arg2[%c0_1, %c0_2] : memref<784x128xbf16, #tpu.memory_space<vmem>>, vector<784x128xbf16>
    %cst = arith.constant dense<0.000000e+00> : vector<256x128xf32>
    %3 = tpu.matmul %1, %2, %cst {dimension_numbers = #tpu.dot_dimension_numbers<[1], [0], [0], [1], [0, 0, 1, 1], [], []>} : vector<256x784xbf16>, vector<784x128xbf16>, vector<256x128xf32> -> vector<256x128xf32>
    %c0_3 = arith.constant 0 : index
    %c0_4 = arith.constant 0 : index
    %4 = vector.load %arg3[%c0_3, %c0_4] : memref<1x128xf32, #tpu.memory_space<vmem>>, vector<1x128xf32>
    %5 = vector.broadcast %4 : vector<1x128xf32> to vector<256x128xf32>
    %6 = arith.addf %3, %5 : vector<256x128xf32>
    %cst_5 = arith.constant 0.000000e+00 : f32
    %7 = vector.broadcast %cst_5 : f32 to vector<256x128xf32>
    %8 = arith.maximumf %6, %7 : vector<256x128xf32>
    %9 = arith.truncf %8 : vector<256x128xf32> to vector<256x128xbf16>
    %c0_6 = arith.constant 0 : index
    %c0_7 = arith.constant 0 : index
    %10 = vector.load %arg4[%c0_6, %c0_7] : memref<128x128xbf16, #tpu.memory_space<vmem>>, vector<128x128xbf16>
    %cst_8 = arith.constant dense<0.000000e+00> : vector<256x128xf32>
    %11 = tpu.matmul %9, %10, %cst_8 {dimension_numbers = #tpu.dot_dimension_numbers<[1], [0], [0], [1], [0, 0, 1, 1], [], []>} : vector<256x128xbf16>, vector<128x128xbf16>, vector<256x128xf32> -> vector<256x128xf32>
    %c0_9 = arith.constant 0 : index
    %c0_10 = arith.constant 0 : index
    %12 = vector.load %arg5[%c0_9, %c0_10] : memref<1x128xf32, #tpu.memory_space<vmem>>, vector<1x128xf32>
    %13 = vector.broadcast %12 : vector<1x128xf32> to vector<256x128xf32>
    %14 = arith.addf %11, %13 : vector<256x128xf32>
    %cst_11 = arith.constant 0.000000e+00 : f32
    %15 = vector.broadcast %cst_11 : f32 to vector<256x128xf32>
    %16 = arith.maximumf %14, %15 : vector<256x128xf32>
    %17 = arith.truncf %16 : vector<256x128xf32> to vector<256x128xbf16>
    %c0_12 = arith.constant 0 : index
    %c0_13 = arith.constant 0 : index
    %18 = vector.load %arg6[%c0_12, %c0_13] : memref<128x784xbf16, #tpu.memory_space<vmem>>, vector<128x784xbf16>
    %cst_14 = arith.constant dense<0.000000e+00> : vector<256x784xf32>
    %19 = tpu.matmul %17, %18, %cst_14 {dimension_numbers = #tpu.dot_dimension_numbers<[1], [0], [0], [1], [0, 0, 1, 1], [], []>} : vector<256x128xbf16>, vector<128x784xbf16>, vector<256x784xf32> -> vector<256x784xf32>
    %c0_15 = arith.constant 0 : index
    %c0_16 = arith.constant 0 : index
    %20 = vector.load %arg7[%c0_15, %c0_16] : memref<1x784xf32, #tpu.memory_space<vmem>>, vector<1x784xf32>
    %21 = vector.broadcast %20 : vector<1x784xf32> to vector<256x784xf32>
    %22 = arith.addf %19, %21 : vector<256x784xf32>
    %23 = arith.truncf %22 : vector<256x784xf32> to vector<256x784xbf16>
    %c0_17 = arith.constant 0 : index
    %c0_18 = arith.constant 0 : index
    %24 = vector.load %arg8[%c0_17, %c0_18] : memref<256x784xbf16, #tpu.memory_space<vmem>>, vector<256x784xbf16>
    tpu.vector_store %arg8[%c0_17, %c0_18], %23 {strides = array<i32>} : memref<256x784xbf16, #tpu.memory_space<vmem>>, vector<256x784xbf16>,
    return
  }
  func.func @transform_0(%arg0: i32) -> (i32, i32) {
    %c0_i32 = arith.constant 0 : i32
    %c0_i32_0 = arith.constant 0 : i32
    return %arg0, %c0_i32 : i32, i32
  }
  func.func @transform_1(%arg0: i32) -> (i32, i32) {
    %c0_i32 = arith.constant 0 : i32
    %c0_i32_0 = arith.constant 0 : i32
    %c0_i32_1 = arith.constant 0 : i32
    return %c0_i32, %c0_i32_0 : i32, i32
  }
  func.func @transform_2(%arg0: i32) -> (i32, i32) {
    %c0_i32 = arith.constant 0 : i32
    %c0_i32_0 = arith.constant 0 : i32
    %c0_i32_1 = arith.constant 0 : i32
    return %c0_i32, %c0_i32_0 : i32, i32
  }
  func.func @transform_3(%arg0: i32) -> (i32, i32) {
    %c0_i32 = arith.constant 0 : i32
    %c0_i32_0 = arith.constant 0 : i32
    %c0_i32_1 = arith.constant 0 : i32
    return %c0_i32, %c0_i32_0 : i32, i32
  }
  func.func @transform_4(%arg0: i32) -> (i32, i32) {
    %c0_i32 = arith.constant 0 : i32
    %c0_i32_0 = arith.constant 0 : i32
    %c0_i32_1 = arith.constant 0 : i32
    return %c0_i32, %c0_i32_0 : i32, i32
  }
  func.func @transform_5(%arg0: i32) -> (i32, i32) {
    %c0_i32 = arith.constant 0 : i32
    %c0_i32_0 = arith.constant 0 : i32
    %c0_i32_1 = arith.constant 0 : i32
    return %c0_i32, %c0_i32_0 : i32, i32
  }
  func.func @transform_6(%arg0: i32) -> (i32, i32) {
    %c0_i32 = arith.constant 0 : i32
    %c0_i32_0 = arith.constant 0 : i32
    %c0_i32_1 = arith.constant 0 : i32
    return %c0_i32, %c0_i32_0 : i32, i32
  }
  func.func @transform_7(%arg0: i32) -> (i32, i32) {
    %c0_i32 = arith.constant 0 : i32
    %c0_i32_0 = arith.constant 0 : i32
    return %arg0, %c0_i32 : i32, i32
  }
}

</mosaic_0001>

<bundles_post_ra>
// kernel: tpu_custom_call.1
= control target key start
LH: loop header
LB: loop body
LE: loop exit
PB: predicated region body
PF: predicated region fallthrough
CT: control target
= control target key end

     0   :  { %s5206_s24 = smov 0   ;;  %s6648_s0 = inlined_call_operand.vmem [shape: f32[512,784], index: 0, kind: input, shape index: {}]   ;;  %s6649_s1 = inlined_call_operand.vmem [shape: bf16[784,128], index: 1, kind: input, shape index: {}]   ;;  %s6650_s2 = inlined_call_operand.vmem [shape: f32[1,128], index: 2, kind: input, shape index: {}]   ;;  %s6651_s3 = inlined_call_operand.vmem [shape: bf16[128,128], index: 3, kind: input, shape index: {}]   ;;  %s6652_s4 = inlined_call_operand.vmem [shape: f32[1,128], index: 4, kind: input, shape index: {}]   ;;  %s6653_s5 = inlined_call_operand.vmem [shape: bf16[128,784], index: 5, kind: input, shape index: {}]   ;;  %s6654_s6 = inlined_call_operand.vmem [shape: f32[1,784], index: 6, kind: input, shape index: {}]   ;;  %s6655_s7 = inlined_call_operand.vmem [shape: bf16[512,784], index: 7, kind: output, shape index: {}]  }
   0x1 LB: > { %s4064_s25 = sadd.s32 4294967295, %s5163_s24   ;;  %p4068_p0 = scmp.ge.s32.totalorder %s5163_s24, 1  ;;  %s5163_s24 = sphi %s5206_s24, %s17_s24  }
   0x2   : > { %p239_p1 = scmp.lt.s32.totalorder %s5163_s24, 3 }
   0x4   : > { %p240_p2 = pnand %p4068_p0, %p239_p1 }
   0x5   : > { %v5020_v0 = vld [vmem:[%s6649_s1 + $0x40] sm:$0xff] (!%p240_p2)   ;;  %s4069_s28 = sshll.u32 (!%p240_p2), %s4064_s25, 5  ;;  %v5022_v2 = vld [vmem:[%s6649_s1 + $0x48] sm:$0xff] (!%p240_p2)   ;;  %v5024_v4 = vld [vmem:[%s6649_s1 + $0x50] sm:$0xff] (!%p240_p2)   ;;  %vm1023_vm0 = vcmask (!%p240_p2), 130048   ;;  %vm3880_vm1 = vcmask (!%p240_p2), 125952  }
   0x6   : > { %243 = sbr.rel (%p240_p2) target bundleno = 1109 (0x455), region = 48  ;;  %v5021_v1 = vld [vmem:[%s6649_s1] sm:$0xff] (!%p240_p2)   ;;  %p274_p3 = scmp.lt.s32.totalorder (!%p240_p2), %s4069_s28, 63  ;;  %4462 = vmatprep.subr.bf16.mxu0 (!%p240_p2), %v5020_v0  ;;  %4993 = vmatprep.subr.bf16.mxu1 (!%p240_p2), %v5020_v0  ;;  %v5023_v3 = vld [vmem:[%s6649_s1 + $0x8] sm:$0xff] (!%p240_p2)   ;;  %v5025_v5 = vld [vmem:[%s6649_s1 + $0x10] sm:$0xff] (!%p240_p2)  }
   0x7   : > { %4463 = vmatpush3.bf16.msra.mxu0 (!%p240_p2), %v5021_v1  ;;  %5001 = vmatpush3.bf16.msra.mxu1 (!%p240_p2), %v5021_v1  ;;  %v5026_v6 = vld [vmem:[%s6649_s1 + $0x58] sm:$0xff] (!%p240_p2)   ;;  %v5028_v8 = vld [vmem:[%s6649_s1 + $0x60] sm:$0xff] (!%p240_p2)   ;;  %v5030_v10 = vld [vmem:[%s6649_s1 + $0x68] sm:$0xff] (!%p240_p2)  }
   0x8   : > { %4464 = vmatprep.subr.bf16.mxu0 (!%p240_p2), %v5022_v2  ;;  %4994 = vmatprep.subr.bf16.mxu1 (!%p240_p2), %v5022_v2  ;;  %v5027_v7 = vld [vmem:[%s6649_s1 + $0x18] sm:$0xff] (!%p240_p2)   ;;  %v5029_v9 = vld [vmem:[%s6649_s1 + $0x20] sm:$0xff] (!%p240_p2)   ;;  %v5031_v17 = vld [vmem:[%s6649_s1 + $0x28] sm:$0xff] (!%p240_p2)  }
   0x9   : > { %v5032_v18 = vld [vmem:[%s6649_s1 + $0x70] sm:$0xff] (!%p240_p2)   ;;  %v5034_v20 = vld [vmem:[%s6649_s1 + $0x78] sm:$0xff] (!%p240_p2)   ;;  %v5036_v26 = vld [vmem:[%s6649_s1 + $0xc0] sm:$0xff] (!%p240_p2)  }
   0xa   : > { %v5033_v19 = vld [vmem:[%s6649_s1 + $0x30] sm:$0xff] (!%p240_p2)   ;;  %v5035_v21 = vld [vmem:[%s6649_s1 + $0x38] sm:$0xff] (!%p240_p2)   ;;  %v5037_v33 = vld [vmem:[%s6649_s1 + $0x80] sm:$0xff] (!%p240_p2)  }
   0xb   : > { %4465 = vmatpush3.bf16.msra.mxu0 (!%p240_p2), %v5023_v3  ;;  %5002 = vmatpush3.bf16.msra.mxu1 (!%p240_p2), %v5023_v3  ;;  %v5038_v35 = vld [vmem:[%s6649_s1 + $0xc8] sm:$0xff] (!%p240_p2)   ;;  %v5040_v42 = vld [vmem:[%s6649_s1 + $0xd0] sm:$0xff] (!%p240_p2)   ;;  %v5042_v51 = vld [vmem:[%s6649_s1 + $0xd8] sm:$0xff] (!%p240_p2)  }
   0xc   : > { %4466 = vmatprep.subr.bf16.mxu0 (!%p240_p2), %v5024_v4  ;;  %4995 = vmatprep.subr.bf16.mxu1 (!%p240_p2), %v5024_v4  ;;  %v5039_v37 = vld [vmem:[%s6649_s1 + $0x88] sm:$0xff] (!%p240_p2)   ;;  %v5041_v49 = vld [vmem:[%s6649_s1 + $0x90] sm:$0xff] (!%p240_p2)   ;;  %v5043_v53 = vld [vmem:[%s6649_s1 + $0x98] sm:$0xff] (!%p240_p2)  }
   0xd   : > { %s6657_s28 = smov (!%p274_p3, %s4069_s28), 63  ;;  %v5044_v58 = vld [vmem:[%s6649_s1 + $0xe0] sm:$0xff]   ;;  %v5046_v3 = vld [vmem:[%s6649_s1 + $0xe8] sm:$0xff]  }
   0xe   : > { %s5009_s18 = smul.u32 56, %s6657_s28  ;;  %v5045_v1 = vld [vmem:[%s6649_s1 + $0xa0] sm:$0xff]  }
   0xf   : > { %4467 = vmatpush3.bf16.msra.mxu0 %v5025_v5  ;;  %5003 = vmatpush3.bf16.msra.mxu1 %v5025_v5  ;;  %v5047_v5 = vld [vmem:[%s6649_s1 + $0xa8] sm:$0xff]   ;;  %s5010_s12 = smul.u32 28, %s6657_s28 }
  0x10   : > { %4468 = vmatprep.subr.bf16.mxu0 %v5026_v6  ;;  %4996 = vmatprep.subr.bf16.mxu1 %v5026_v6  ;;  %s5247_s26 = scalar_lea.vmem %s6648_s0, %s5009_s18 }
  0x11   : > { %v289_v11 = vld [vmem:[%s5247_s26 + $0x8] sm:$0xff]  ;;  %v296_v12 = vld [vmem:[%s5247_s26 + $0x40] sm:$0xff]  ;;  %v295_v23 = vld [vmem:[%s5247_s26 + $0x38] sm:$0xff]  ;;  %s6242_s15 = scalar_lea.vmem %s6655_s7, %s5010_s12 }
  0x12   : > { %v457_v13 = vld [vmem:[%s5247_s26 + $0x548] sm:$0xff]  ;;  %v513_v14 = vpack.c.bf16 %v296_v12, %v289_v11  ;;  %v464_v15 = vld [vmem:[%s5247_s26 + $0x580] sm:$0xff]  ;;  %v463_v25 = vld [vmem:[%s5247_s26 + $0x578] sm:$0xff] }
  0x13   : > { %4469 = vmatpush3.bf16.msra.mxu0 %v5027_v7  ;;  %5004 = vmatpush3.bf16.msra.mxu1 %v5027_v7  ;;  %v597_v16 = vpack.c.bf16 %v464_v15, %v457_v13  ;;  %v288_v22 = vld [vmem:[%s5247_s26] sm:$0xff]  ;;  %v303_v27 = vld [vmem:[%s5247_s26 + $0x78] sm:$0xff]  ;;  %v310_v28 = vld [vmem:[%s5247_s26 + $0xb0] sm:$0xff] }
  0x14   : > { %4470 = vmatprep.subr.bf16.mxu0 %v5028_v8  ;;  %4997 = vmatprep.subr.bf16.mxu1 %v5028_v8  ;;  %v456_v24 = vld [vmem:[%s5247_s26 + $0x540] sm:$0xff]  ;;  %v471_v29 = vld [vmem:[%s5247_s26 + $0x5b8] sm:$0xff]  ;;  %v478_v30 = vld [vmem:[%s5247_s26 + $0x5f0] sm:$0xff]  ;;  %v512_v31 = vpack.c.bf16 %v295_v23, %v288_v22  ;;  %v520_v34 = vpack.c.bf16 %v310_v28, %v303_v27 }
  0x15   : > { %1104 = vmatprep.mubr.bf16.mxu0 %v513_v14  ;;  %1200 = vmatprep.mubr.bf16.mxu1 %v597_v16  ;;  %v596_v32 = vpack.c.bf16 %v463_v25, %v456_v24  ;;  %v604_v36 = vpack.c.bf16 %v478_v30, %v471_v29  ;;  %v302_v38 = vld [vmem:[%s5247_s26 + $0x70] sm:$0xff]  ;;  %v309_v39 = vld [vmem:[%s5247_s26 + $0xa8] sm:$0xff]  ;;  %v324_v44 = vld [vmem:[%s5247_s26 + $0x120] sm:$0xff] }
  0x16   : > { %v470_v40 = vld [vmem:[%s5247_s26 + $0x5b0] sm:$0xff]  ;;  %v477_v41 = vld [vmem:[%s5247_s26 + $0x5e8] sm:$0xff]  ;;  %v492_v46 = vld [vmem:[%s5247_s26 + $0x660] sm:$0xff]  ;;  %v519_v47 = vpack.c.bf16 %v309_v39, %v302_v38 }
  0x17   : > { %4471 = vmatpush3.bf16.msra.mxu0 %v5029_v9  ;;  %5005 = vmatpush3.bf16.msra.mxu1 %v5029_v9  ;;  %v317_v43 = vld [vmem:[%s5247_s26 + $0xe8] sm:$0xff]  ;;  %v603_v48 = vpack.c.bf16 %v477_v41, %v470_v40  ;;  %v316_v54 = vld [vmem:[%s5247_s26 + $0xe0] sm:$0xff]  ;;  %v323_v55 = vld [vmem:[%s5247_s26 + $0x118] sm:$0xff] }
  0x18   : > { %4472 = vmatprep.subr.bf16.mxu0 %v5030_v10  ;;  %4998 = vmatprep.subr.bf16.mxu1 %v5030_v10  ;;  %v485_v45 = vld [vmem:[%s5247_s26 + $0x628] sm:$0xff]  ;;  %v527_v50 = vpack.c.bf16 %v324_v44, %v317_v43  ;;  %v484_v56 = vld [vmem:[%s5247_s26 + $0x620] sm:$0xff]  ;;  %v491_v57 = vld [vmem:[%s5247_s26 + $0x658] sm:$0xff]  ;;  %v526_v63 = vpack.c.bf16 %v323_v55, %v316_v54 }
  0x19   : > { %v611_v52 = vpack.c.bf16 %v492_v46, %v485_v45  ;;  %v331_v59 = vld [vmem:[%s5247_s26 + $0x158] sm:$0xff]  ;;  %v338_v60 = vld [vmem:[%s5247_s26 + $0x190] sm:$0xff]  ;;  %v610_v0 = vpack.c.bf16 %v491_v57, %v484_v56  ;;  %v337_v7 = vld [vmem:[%s5247_s26 + $0x188] sm:$0xff] }
  0x1a   : > { %v499_v61 = vld [vmem:[%s5247_s26 + $0x698] sm:$0xff]  ;;  %v506_v62 = vld [vmem:[%s5247_s26 + $0x6d0] sm:$0xff]  ;;  %v534_v2 = vpack.c.bf16 %v338_v60, %v331_v59  ;;  %v505_v9 = vld [vmem:[%s5247_s26 + $0x6c8] sm:$0xff] }
  0x1b   : > { %4473 = vmatpush3.bf16.msra.mxu0 %v5031_v17  ;;  %5006 = vmatpush3.bf16.msra.mxu1 %v5031_v17  ;;  %v618_v4 = vpack.c.bf16 %v506_v62, %v499_v61  ;;  %v330_v6 = vld [vmem:[%s5247_s26 + $0x150] sm:$0xff]  ;;  %v345_v11 = vld [vmem:[%s5247_s26 + $0x1c8] sm:$0xff]  ;;  %v352_v12 = vld [vmem:[%s5247_s26 + $0x200] sm:$0xff] }
  0x1c   : > { %4474 = vmatprep.subr.bf16.mxu0 %v5032_v18  ;;  %4999 = vmatprep.subr.bf16.mxu1 %v5032_v18  ;;  %v498_v8 = vld [vmem:[%s5247_s26 + $0x690] sm:$0xff]  ;;  %v291_v13 = vld [vmem:[%s5247_s26 + $0x18] sm:$0xff]  ;;  %v5053_v14 = vld [vmem:[%s6649_s1 + $0x140] sm:$0xff]   ;;  %v533_v17 = vpack.c.bf16 %v337_v7, %v330_v6 }
  0x1d   : > { %v5048_v10 = vld [vmem:[%s6649_s1 + $0xf0] sm:$0xff]   ;;  %v5054_v16 = vld [vmem:[%s6649_s1 + $0x100] sm:$0xff]   ;;  %v617_v18 = vpack.c.bf16 %v505_v9, %v498_v8  ;;  %v5051_v23 = vld [vmem:[%s6649_s1 + $0xb8] sm:$0xff]  }
  0x1e   : > { %v298_v15 = vld [vmem:[%s5247_s26 + $0x50] sm:$0xff]  ;;  %v344_v24 = vld [vmem:[%s5247_s26 + $0x1c0] sm:$0xff]  ;;  %v351_v25 = vld [vmem:[%s5247_s26 + $0x1f8] sm:$0xff] }
  0x1f   : > { %4475 = vmatpush3.bf16.msra.mxu0 %v5033_v19  ;;  %5007 = vmatpush3.bf16.msra.mxu1 %v5033_v19  ;;  %v5049_v19 = vld [vmem:[%s6649_s1 + $0xb0] sm:$0xff]   ;;  %v515_v22 = vpack.c.bf16 %v298_v15, %v291_v13  ;;  %v297_v27 = vld [vmem:[%s5247_s26 + $0x48] sm:$0xff]  ;;  %v5052_v28 = vld [vmem:[%s6649_s1 + $0x180] sm:$0xff]  }
  0x20   : > { %4476 = vmatprep.subr.bf16.mxu0 %v5034_v20  ;;  %5000 = vmatprep.subr.bf16.mxu1 %v5034_v20  ;;  %v541_v20 = vpack.c.bf16 %v352_v12, %v345_v11  ;;  %v359_v29 = vld [vmem:[%s5247_s26 + $0x238] sm:$0xff]  ;;  %v366_v30 = vld [vmem:[%s5247_s26 + $0x270] sm:$0xff]  ;;  %v365_v41 = vld [vmem:[%s5247_s26 + $0x268] sm:$0xff] }
  0x21   : > { %v5057_v39 = vld [vmem:[%s6649_s1 + $0x150] sm:$0xff]   ;;  %v5059_v44 = vld [vmem:[%s6649_s1 + $0x158] sm:$0xff]   ;;  %v373_v46 = vld [vmem:[%s5247_s26 + $0x2a8] sm:$0xff] }
  0x22   : > { %v358_v40 = vld [vmem:[%s5247_s26 + $0x230] sm:$0xff]  ;;  %v311_v45 = vld [vmem:[%s5247_s26 + $0xb8] sm:$0xff]  ;;  %v5061_v55 = vld [vmem:[%s6649_s1 + $0x160] sm:$0xff]  }
  0x23   : > { %4477 = vmatpush3.bf16.msra.mxu0 %v5035_v21  ;;  %5008 = vmatpush3.bf16.msra.mxu1 %v5035_v21  ;;  %v5050_v21 = vld [vmem:[%s6649_s1 + $0xf8] sm:$0xff]   ;;  %v5058_v43 = vld [vmem:[%s6649_s1 + $0x110] sm:$0xff]   ;;  %v5062_v56 = vld [vmem:[%s6649_s1 + $0x120] sm:$0xff]  }
  0x24   : > { %4574 = vmatprep.subr.bf16.mxu1 %v5036_v26  ;;  %4686 = vmatprep.subr.bf16.mxu0 %v5053_v14  ;;  %v290_v26 = vld [vmem:[%s5247_s26 + $0x10] sm:$0xff]  ;;  %v372_v57 = vld [vmem:[%s5247_s26 + $0x2a0] sm:$0xff]  ;;  %v5063_v59 = vld [vmem:[%s6649_s1 + $0x168] sm:$0xff]  }
  0x25   : > { %v318_v60 = vld [vmem:[%s5247_s26 + $0xf0] sm:$0xff]  ;;  %v325_v61 = vld [vmem:[%s5247_s26 + $0x128] sm:$0xff]  ;;  %v387_v62 = vld [vmem:[%s5247_s26 + $0x318] sm:$0xff] }
  0x26   : > { %1105 = vmatmul.mubr.bf16.vlgmr.msra.gmra.mrb[0].mxu0 %v512_v31  ;;  %1201 = vmatmul.mubr.bf16.vlgmr.msra.gmra.mrb[0].mxu1 %v596_v32  ;;  %v5055_v31 = vld [vmem:[%s6649_s1 + $0x148] sm:$0xff]   ;;  %v5065_v7 = vld [vmem:[%s6649_s1 + $0x170] sm:$0xff]   ;;  %v5067_v11 = vld [vmem:[%s6649_s1 + $0x178] sm:$0xff]  }
  0x27   : > { %4575 = vmatpush3.bf16.msra.mxu1 %v5037_v33  ;;  %1112 = vmatprep.mubr.bf16.mxu0 %v520_v34  ;;  %v5056_v32 = vld [vmem:[%s6649_s1 + $0x108] sm:$0xff]   ;;  %v312_v34 = vld [vmem:[%s5247_s26 + $0xc0] sm:$0xff]  ;;  %v5066_v8 = vld [vmem:[%s6649_s1 + $0x130] sm:$0xff]  }
  0x28   : > { %4576 = vmatprep.subr.bf16.mxu1 %v5038_v35  ;;  %1208 = vmatprep.mubr.bf16.mxu1 %v604_v36  ;;  %v305_v33 = vld [vmem:[%s5247_s26 + $0x88] sm:$0xff]  ;;  %v540_v35 = vpack.c.bf16 %v351_v25, %v344_v24  ;;  %v514_v36 = vpack.c.bf16 %v297_v27, %v290_v26  ;;  %v386_v9 = vld [vmem:[%s5247_s26 + $0x310] sm:$0xff]  ;;  %v332_v12 = vld [vmem:[%s5247_s26 + $0x160] sm:$0xff] }
  0x29   : > { %4687 = vmatpush3.bf16.msra.mxu0 %v5054_v16  ;;  %v522_v38 = vpack.c.bf16 %v312_v34, %v305_v33  ;;  %v339_v13 = vld [vmem:[%s5247_s26 + $0x198] sm:$0xff]  ;;  %v401_v14 = vld [vmem:[%s5247_s26 + $0x388] sm:$0xff]  ;;  %v408_v15 = vld [vmem:[%s5247_s26 + $0x3c0] sm:$0xff] }
  0x2a   : > { %4688 = vmatprep.subr.bf16.mxu0 %v5055_v31  ;;  %v347_v16 = vld [vmem:[%s5247_s26 + $0x1d8] sm:$0xff]  ;;  %v346_v25 = vld [vmem:[%s5247_s26 + $0x1d0] sm:$0xff]  ;;  %v353_v26 = vld [vmem:[%s5247_s26 + $0x208] sm:$0xff] }
  0x2b   : > { %4577 = vmatpush3.bf16.msra.mxu1 %v5039_v37  ;;  %v548_v37 = vpack.c.bf16 %v366_v30, %v359_v29  ;;  %v407_v24 = vld [vmem:[%s5247_s26 + $0x3b8] sm:$0xff]  ;;  %v361_v29 = vld [vmem:[%s5247_s26 + $0x248] sm:$0xff]  ;;  %v368_v30 = vld [vmem:[%s5247_s26 + $0x280] sm:$0xff] }
  0x2c   : > { %4578 = vmatprep.subr.bf16.mxu1 %v5040_v42  ;;  %v304_v42 = vld [vmem:[%s5247_s26 + $0x80] sm:$0xff]  ;;  %v415_v27 = vld [vmem:[%s5247_s26 + $0x3f8] sm:$0xff]  ;;  %v550_v34 = vpack.c.bf16 %v368_v30, %v361_v29 }
  0x2d   : > { %4689 = vmatpush3.bf16.msra.mxu0 %v5056_v32  ;;  %v542_v32 = vpack.c.bf16 %v353_v26, %v346_v25  ;;  %v321_v25 = vld [vmem:[%s5247_s26 + $0x108] sm:$0xff]  ;;  %v328_v26 = vld [vmem:[%s5247_s26 + $0x140] sm:$0xff] }
  0x2e   : > { %1113 = vmatmul.mubr.bf16.gmra.mrb[4].mxu0 %v519_v47  ;;  %1209 = vmatmul.mubr.bf16.gmra.mrb[4].mxu1 %v603_v48  ;;  %v380_v47 = vld [vmem:[%s5247_s26 + $0x2e0] sm:$0xff]  ;;  %v319_v48 = vld [vmem:[%s5247_s26 + $0xf8] sm:$0xff]  ;;  %v531_v30 = vpack.c.bf16 %v328_v26, %v321_v25 }
  0x2f   : > { %4579 = vmatpush3.bf16.msra.mxu1 %v5041_v49  ;;  %1120 = vmatprep.mubr.bf16.mxu0 %v527_v50  ;;  %v326_v49 = vld [vmem:[%s5247_s26 + $0x130] sm:$0xff]  ;;  %v5060_v50 = vld [vmem:[%s6649_s1 + $0x118] sm:$0xff]  }
  0x30   : > { %4580 = vmatprep.subr.bf16.mxu1 %v5042_v51  ;;  %1216 = vmatprep.mubr.bf16.mxu1 %v611_v52  ;;  %v547_v51 = vpack.c.bf16 %v365_v41, %v358_v40  ;;  %v521_v52 = vpack.c.bf16 %v311_v45, %v304_v42  ;;  %v529_v54 = vpack.c.bf16 %v326_v49, %v319_v48  ;;  %v436_v40 = vld [vmem:[%s5247_s26 + $0x4a0] sm:$0xff]  ;;  %v375_v41 = vld [vmem:[%s5247_s26 + $0x2b8] sm:$0xff]  ;;  %v382_v42 = vld [vmem:[%s5247_s26 + $0x2f0] sm:$0xff] }
  0x31   : > { %4690 = vmatprep.subr.bf16.mxu0 %v5057_v39  ;;  %v429_v39 = vld [vmem:[%s5247_s26 + $0x468] sm:$0xff]  ;;  %v435_v48 = vld [vmem:[%s5247_s26 + $0x498] sm:$0xff]  ;;  %v374_v49 = vld [vmem:[%s5247_s26 + $0x2b0] sm:$0xff] }
  0x32   : > { %4691 = vmatpush3.bf16.msra.mxu0 %v5058_v43  ;;  %v583_v45 = vpack.c.bf16 %v436_v40, %v429_v39 }
  0x33   : > { %4581 = vmatpush3.bf16.msra.mxu1 %v5043_v53  ;;  %4692 = vmatprep.subr.bf16.mxu0 %v5059_v44  ;;  %v555_v53 = vpack.c.bf16 %v380_v47, %v373_v46  ;;  %v557_v46 = vpack.c.bf16 %v382_v42, %v375_v41  ;;  %v428_v47 = vld [vmem:[%s5247_s26 + $0x460] sm:$0xff] }
  0x34   : > { %4582 = vmatprep.subr.bf16.mxu1 %v5044_v58  ;;  %v379_v58 = vld [vmem:[%s5247_s26 + $0x2d8] sm:$0xff] }
  0x36   : > { %1121 = vmatmul.mubr.bf16.gmra.mrb[8].mxu0 %v526_v63  ;;  %1217 = vmatmul.mubr.bf16.gmra.mrb[8].mxu1 %v610_v0  ;;  %v394_v63 = vld [vmem:[%s5247_s26 + $0x350] sm:$0xff]  ;;  %v333_v0 = vld [vmem:[%s5247_s26 + $0x168] sm:$0xff] }
  0x37   : > { %4583 = vmatpush3.bf16.msra.mxu1 %v5045_v1  ;;  %1128 = vmatprep.mubr.bf16.mxu0 %v534_v2  ;;  %v340_v1 = vld [vmem:[%s5247_s26 + $0x1a0] sm:$0xff]  ;;  %v5064_v2 = vld [vmem:[%s6649_s1 + $0x128] sm:$0xff]  }
  0x38   : > { %4584 = vmatprep.subr.bf16.mxu1 %v5046_v3  ;;  %1224 = vmatprep.mubr.bf16.mxu1 %v618_v4  ;;  %v554_v3 = vpack.c.bf16 %v379_v58, %v372_v57  ;;  %v528_v4 = vpack.c.bf16 %v325_v61, %v318_v60  ;;  %v536_v6 = vpack.c.bf16 %v340_v1, %v333_v0  ;;  %v449_v60 = vld [vmem:[%s5247_s26 + $0x508] sm:$0xff]  ;;  %v388_v61 = vld [vmem:[%s5247_s26 + $0x320] sm:$0xff]  ;;  %v410_v0 = vld [vmem:[%s5247_s26 + $0x3d0] sm:$0xff] }
  0x39   : > { %4693 = vmatpush3.bf16.msra.mxu0 %v5060_v50  ;;  %v381_v50 = vld [vmem:[%s5247_s26 + $0x2e8] sm:$0xff] }
  0x3a   : > { %4694 = vmatprep.subr.bf16.mxu0 %v5061_v55  ;;  %v582_v55 = vpack.c.bf16 %v435_v48, %v428_v47  ;;  %v293_v1 = vld [vmem:[%s5247_s26 + $0x28] sm:$0xff]  ;;  %v459_v47 = vld [vmem:[%s5247_s26 + $0x558] sm:$0xff]  ;;  %v466_v48 = vld [vmem:[%s5247_s26 + $0x590] sm:$0xff] }
  0x3b   : > { %4585 = vmatpush3.bf16.msra.mxu1 %v5047_v5  ;;  %v562_v5 = vpack.c.bf16 %v394_v63, %v387_v62  ;;  %v395_v62 = vld [vmem:[%s5247_s26 + $0x358] sm:$0xff] }
  0x3c   : > { %4586 = vmatprep.subr.bf16.mxu1 %v5048_v10  ;;  %v393_v10 = vld [vmem:[%s5247_s26 + $0x348] sm:$0xff]  ;;  %v403_v63 = vld [vmem:[%s5247_s26 + $0x398] sm:$0xff] }
  0x3d   : > { %4695 = vmatpush3.bf16.msra.mxu0 %v5062_v56  ;;  %v556_v56 = vpack.c.bf16 %v381_v50, %v374_v49  ;;  %v349_v49 = vld [vmem:[%s5247_s26 + $0x1e8] sm:$0xff]  ;;  %v356_v50 = vld [vmem:[%s5247_s26 + $0x220] sm:$0xff] }
  0x3e   : > { %1129 = vmatmul.mubr.bf16.gmra.mrb[12].mxu0 %v533_v17  ;;  %1225 = vmatmul.mubr.bf16.gmra.mrb[12].mxu1 %v617_v18  ;;  %v354_v17 = vld [vmem:[%s5247_s26 + $0x210] sm:$0xff]  ;;  %v5068_v18 = vld [vmem:[%s6649_s1 + $0x138] sm:$0xff]  }
  0x3f   : > { %4587 = vmatpush3.bf16.msra.mxu1 %v5049_v19  ;;  %1136 = vmatprep.mubr.bf16.mxu0 %v541_v20  ;;  %v561_v19 = vpack.c.bf16 %v393_v10, %v386_v9  ;;  %v535_v20 = vpack.c.bf16 %v339_v13, %v332_v12  ;;  %v292_v9 = vld [vmem:[%s5247_s26 + $0x20] sm:$0xff]  ;;  %v299_v10 = vld [vmem:[%s5247_s26 + $0x58] sm:$0xff] }
  0x40   : > { %4588 = vmatprep.subr.bf16.mxu1 %v5050_v21  ;;  %1265 = vmatprep.mubr.bf16.mxu1 %v515_v22  ;;  %v569_v21 = vpack.c.bf16 %v408_v15, %v401_v14  ;;  %v543_v22 = vpack.c.bf16 %v354_v17, %v347_v16  ;;  %v424_v12 = vld [vmem:[%s5247_s26 + $0x440] sm:$0xff]  ;;  %v307_v13 = vld [vmem:[%s5247_s26 + $0x98] sm:$0xff]  ;;  %v314_v14 = vld [vmem:[%s5247_s26 + $0xd0] sm:$0xff]  ;;  %v516_v16 = vpack.c.bf16 %v299_v10, %v292_v9 }
  0x41   : > { %4696 = vmatprep.subr.bf16.mxu0 %v5063_v59  ;;  %v442_v59 = vld [vmem:[%s5247_s26 + $0x4d0] sm:$0xff]  ;;  %v377_v9 = vld [vmem:[%s5247_s26 + $0x2c8] sm:$0xff]  ;;  %v384_v10 = vld [vmem:[%s5247_s26 + $0x300] sm:$0xff] }
  0x42   : > { %4697 = vmatpush3.bf16.msra.mxu0 %v5064_v2  ;;  %v300_v2 = vld [vmem:[%s5247_s26 + $0x60] sm:$0xff] }
  0x43   : > { %4589 = vmatpush3.bf16.msra.mxu1 %v5051_v23  ;;  %4698 = vmatprep.subr.bf16.mxu0 %v5065_v7  ;;  %v400_v23 = vld [vmem:[%s5247_s26 + $0x380] sm:$0xff]  ;;  %v402_v7 = vld [vmem:[%s5247_s26 + $0x390] sm:$0xff] }
  0x44   : > { %4863 = vmatprep.subr.bf16.mxu1 %v5052_v28  ;;  %v568_v31 = vpack.c.bf16 %v407_v24, %v400_v23  ;;  %v431_v23 = vld [vmem:[%s5247_s26 + $0x478] sm:$0xff]  ;;  %v438_v24 = vld [vmem:[%s5247_s26 + $0x4b0] sm:$0xff] }
  0x45   : > { %v585_v29 = vpack.c.bf16 %v438_v24, %v431_v23 }
  0x46   : > { %1137 = vmatmul.mubr.bf16.gmra.mrb[16].mxu0 %v540_v35  ;;  %1266 = vmatmul.mubr.bf16.vlgmr.msra.gmra.mrb[16].mxu1 %v514_v36  ;;  %v414_v35 = vld [vmem:[%s5247_s26 + $0x3f0] sm:$0xff]  ;;  %v421_v36 = vld [vmem:[%s5247_s26 + $0x428] sm:$0xff] }
  0x47   : > { %4864 = vmatpush3.bf16.msra.mxu1 %v5052_v28  ;;  %1144 = vmatprep.mubr.bf16.mxu0 %v548_v37  ;;  %v422_v28 = vld [vmem:[%s5247_s26 + $0x430] sm:$0xff]  ;;  %v360_v37 = vld [vmem:[%s5247_s26 + $0x240] sm:$0xff]  ;;  %v575_v43 = vpack.c.bf16 %v421_v36, %v414_v35  ;;  %v445_v35 = vld [vmem:[%s5247_s26 + $0x4e8] sm:$0xff] }
  0x48   : > { %1273 = vmatprep.mubr.bf16.mxu1 %v522_v38  ;;  %4699 = vmatpush3.bf16.msra.mxu0 %v5066_v8  ;;  %v576_v33 = vpack.c.bf16 %v422_v28, %v415_v27  ;;  %v367_v38 = vld [vmem:[%s5247_s26 + $0x278] sm:$0xff]  ;;  %v409_v8 = vld [vmem:[%s5247_s26 + $0x3c8] sm:$0xff]  ;;  %v452_v36 = vld [vmem:[%s5247_s26 + $0x520] sm:$0xff] }
  0x49   : > { %4700 = vmatprep.subr.bf16.mxu0 %v5067_v11  ;;  %v549_v44 = vpack.c.bf16 %v367_v38, %v360_v37  ;;  %v417_v11 = vld [vmem:[%s5247_s26 + $0x408] sm:$0xff]  ;;  %v570_v15 = vpack.c.bf16 %v409_v8, %v402_v7  ;;  %v335_v37 = vld [vmem:[%s5247_s26 + $0x178] sm:$0xff]  ;;  %v342_v38 = vld [vmem:[%s5247_s26 + $0x1b0] sm:$0xff]  ;;  %v592_v41 = vpack.c.bf16 %v452_v36, %v445_v35 }
  0x4a   : > { %v578_v17 = vpack.c.bf16 %v424_v12, %v417_v11  ;;  %v538_v42 = vpack.c.bf16 %v342_v38, %v335_v37  ;;  %v487_v7 = vld [vmem:[%s5247_s26 + $0x638] sm:$0xff]  ;;  %v494_v8 = vld [vmem:[%s5247_s26 + $0x670] sm:$0xff] }
  0x4c   : > { %4701 = vmatpush3.bf16.msra.mxu0 %v5068_v18  ;;  %v524_v18 = vpack.c.bf16 %v314_v14, %v307_v13  ;;  %v613_v13 = vpack.c.bf16 %v494_v8, %v487_v7  ;;  %v559_v14 = vpack.c.bf16 %v384_v10, %v377_v9 }
  0x4e   : > { %1145 = vmatmul.mubr.bf16.gmra.mrb[20].mxu0 %v547_v51  ;;  %1274 = vmatmul.mubr.bf16.gmra.mrb[20].mxu1 %v521_v52  ;;  %v443_v51 = vld [vmem:[%s5247_s26 + $0x4d8] sm:$0xff]  ;;  %v450_v52 = vld [vmem:[%s5247_s26 + $0x510] sm:$0xff] }
  0x4f   : > { %1152 = vmatprep.mubr.bf16.mxu0 %v555_v53  ;;  %1281 = vmatprep.mubr.bf16.mxu1 %v529_v54  ;;  %v389_v53 = vld [vmem:[%s5247_s26 + $0x328] sm:$0xff]  ;;  %v396_v54 = vld [vmem:[%s5247_s26 + $0x360] sm:$0xff]  ;;  %v590_v57 = vpack.c.bf16 %v450_v52, %v443_v51 }
  0x50   : > { %v564_v58 = vpack.c.bf16 %v396_v54, %v389_v53  ;;  %v599_v53 = vpack.c.bf16 %v466_v48, %v459_v47  ;;  %v545_v54 = vpack.c.bf16 %v356_v50, %v349_v49 }
  0x56   : > { %1153 = vmatmul.mubr.bf16.gmra.mrb[24].mxu0 %v554_v3  ;;  %1282 = vmatmul.mubr.bf16.gmra.mrb[24].mxu1 %v528_v4  ;;  %v589_v3 = vpack.c.bf16 %v449_v60, %v442_v59  ;;  %v563_v4 = vpack.c.bf16 %v395_v62, %v388_v61  ;;  %v473_v59 = vld [vmem:[%s5247_s26 + $0x5c8] sm:$0xff]  ;;  %v480_v60 = vld [vmem:[%s5247_s26 + $0x600] sm:$0xff]  ;;  %v363_v61 = vld [vmem:[%s5247_s26 + $0x258] sm:$0xff] }
  0x57   : > { %1160 = vmatprep.mubr.bf16.mxu0 %v562_v5  ;;  %1289 = vmatprep.mubr.bf16.mxu1 %v536_v6  ;;  %v571_v5 = vpack.c.bf16 %v410_v0, %v403_v63  ;;  %v517_v6 = vpack.c.bf16 %v300_v2, %v293_v1  ;;  %v370_v62 = vld [vmem:[%s5247_s26 + $0x290] sm:$0xff]  ;;  %v606_v1 = vpack.c.bf16 %v480_v60, %v473_v59 }
  0x58   : > { %v552_v2 = vpack.c.bf16 %v370_v62, %v363_v61 }
  0x5e   : > { %1161 = vmatmul.mubr.bf16.gmra.mrb[28].mxu0 %v561_v19  ;;  %1290 = vmatmul.mubr.bf16.gmra.mrb[28].mxu1 %v535_v20  ;;  %v416_v19 = vld [vmem:[%s5247_s26 + $0x400] sm:$0xff]  ;;  %v423_v20 = vld [vmem:[%s5247_s26 + $0x438] sm:$0xff] }
  0x5f   : > { %1168 = vmatprep.mubr.bf16.mxu0 %v569_v21  ;;  %1297 = vmatprep.mubr.bf16.mxu1 %v543_v22  ;;  %v306_v21 = vld [vmem:[%s5247_s26 + $0x90] sm:$0xff]  ;;  %v313_v22 = vld [vmem:[%s5247_s26 + $0xc8] sm:$0xff]  ;;  %v577_v27 = vpack.c.bf16 %v423_v20, %v416_v19  ;;  %v508_v20 = vld [vmem:[%s5247_s26 + $0x6e0] sm:$0xff] }
  0x60   : > { %v523_v28 = vpack.c.bf16 %v313_v22, %v306_v21  ;;  %v501_v19 = vld [vmem:[%s5247_s26 + $0x6a8] sm:$0xff]  ;;  %v391_v21 = vld [vmem:[%s5247_s26 + $0x338] sm:$0xff]  ;;  %v398_v22 = vld [vmem:[%s5247_s26 + $0x370] sm:$0xff] }
  0x61   : > { %v620_v25 = vpack.c.bf16 %v508_v20, %v501_v19  ;;  %v566_v26 = vpack.c.bf16 %v398_v22, %v391_v21 }
  0x66   : > { %1169 = vmatmul.mubr.bf16.gmra.mrb[32].mxu0 %v568_v31  ;;  %1298 = vmatmul.mubr.bf16.gmra.mrb[32].mxu1 %v542_v32  ;;  %v430_v31 = vld [vmem:[%s5247_s26 + $0x470] sm:$0xff]  ;;  %v437_v32 = vld [vmem:[%s5247_s26 + $0x4a8] sm:$0xff] }
  0x67   : > { %1176 = vmatprep.mubr.bf16.mxu0 %v576_v33  ;;  %1305 = vmatprep.mubr.bf16.mxu1 %v550_v34  ;;  %v320_v33 = vld [vmem:[%s5247_s26 + $0x100] sm:$0xff]  ;;  %v327_v34 = vld [vmem:[%s5247_s26 + $0x138] sm:$0xff]  ;;  %v584_v39 = vpack.c.bf16 %v437_v32, %v430_v31  ;;  %v405_v31 = vld [vmem:[%s5247_s26 + $0x3a8] sm:$0xff] }
  0x68   : > { %v530_v40 = vpack.c.bf16 %v327_v34, %v320_v33  ;;  %v412_v32 = vld [vmem:[%s5247_s26 + $0x3e0] sm:$0xff]  ;;  %v294_v33 = vld [vmem:[%s5247_s26 + $0x30] sm:$0xff]  ;;  %v301_v34 = vld [vmem:[%s5247_s26 + $0x68] sm:$0xff] }
  0x69   : > { %v573_v37 = vpack.c.bf16 %v412_v32, %v405_v31  ;;  %v518_v38 = vpack.c.bf16 %v301_v34, %v294_v33 }
  0x6e   : > { %1177 = vmatmul.mubr.bf16.gmra.mrb[36].mxu0 %v575_v43  ;;  %1306 = vmatmul.mubr.bf16.gmra.mrb[36].mxu1 %v549_v44  ;;  %v444_v43 = vld [vmem:[%s5247_s26 + $0x4e0] sm:$0xff]  ;;  %v451_v44 = vld [vmem:[%s5247_s26 + $0x518] sm:$0xff] }
  0x6f   : > { %1184 = vmatprep.mubr.bf16.mxu0 %v583_v45  ;;  %1313 = vmatprep.mubr.bf16.mxu1 %v557_v46  ;;  %v334_v45 = vld [vmem:[%s5247_s26 + $0x170] sm:$0xff]  ;;  %v341_v46 = vld [vmem:[%s5247_s26 + $0x1a8] sm:$0xff]  ;;  %v591_v51 = vpack.c.bf16 %v451_v44, %v444_v43  ;;  %v419_v43 = vld [vmem:[%s5247_s26 + $0x418] sm:$0xff] }
  0x70   : > { %v537_v52 = vpack.c.bf16 %v341_v46, %v334_v45  ;;  %v426_v44 = vld [vmem:[%s5247_s26 + $0x450] sm:$0xff]  ;;  %v329_v46 = vld [vmem:[%s5247_s26 + $0x148] sm:$0xff] }
  0x71   : > { %v322_v45 = vld [vmem:[%s5247_s26 + $0x110] sm:$0xff]  ;;  %v580_v49 = vpack.c.bf16 %v426_v44, %v419_v43  ;;  %v469_v43 = vld [vmem:[%s5247_s26 + $0x5a8] sm:$0xff] }
  0x72   : > { %v532_v50 = vpack.c.bf16 %v329_v46, %v322_v45 }
  0x76   : > { %1185 = vmatmul.mubr.bf16.gmra.mrb[40].mxu0 %v582_v55  ;;  %1314 = vmatmul.mubr.bf16.gmra.mrb[40].mxu1 %v556_v56  ;;  %v458_v55 = vld [vmem:[%s5247_s26 + $0x550] sm:$0xff]  ;;  %v465_v56 = vld [vmem:[%s5247_s26 + $0x588] sm:$0xff] }
  0x77   : > { %1192 = vmatprep.mubr.bf16.mxu0 %v590_v57  ;;  %1321 = vmatprep.mubr.bf16.mxu1 %v564_v58  ;;  %v348_v57 = vld [vmem:[%s5247_s26 + $0x1e0] sm:$0xff]  ;;  %v355_v58 = vld [vmem:[%s5247_s26 + $0x218] sm:$0xff]  ;;  %v598_v63 = vpack.c.bf16 %v465_v56, %v458_v55  ;;  %v433_v55 = vld [vmem:[%s5247_s26 + $0x488] sm:$0xff] }
  0x78   : > { %v544_v0 = vpack.c.bf16 %v355_v58, %v348_v57  ;;  %v440_v56 = vld [vmem:[%s5247_s26 + $0x4c0] sm:$0xff]  ;;  %v350_v57 = vld [vmem:[%s5247_s26 + $0x1f0] sm:$0xff]  ;;  %v357_v58 = vld [vmem:[%s5247_s26 + $0x228] sm:$0xff] }
  0x79   : > { %v587_v61 = vpack.c.bf16 %v440_v56, %v433_v55  ;;  %v546_v62 = vpack.c.bf16 %v357_v58, %v350_v57  ;;  %v490_v55 = vld [vmem:[%s5247_s26 + $0x650] sm:$0xff]  ;;  %v497_v56 = vld [vmem:[%s5247_s26 + $0x688] sm:$0xff] }
  0x7e   : > { %1193 = vmatmul.mubr.bf16.gmra.mrb[44].mxu0 %v589_v3  ;;  %1322 = vmatmul.mubr.bf16.gmra.mrb[44].mxu1 %v563_v4  ;;  %v472_v3 = vld [vmem:[%s5247_s26 + $0x5c0] sm:$0xff]  ;;  %v479_v4 = vld [vmem:[%s5247_s26 + $0x5f8] sm:$0xff] }
  0x7f   : > { %1329 = vmatprep.mubr.bf16.mxu1 %v571_v5  ;;  %1426 = vmatprep.mubr.bf16.mxu0 %v517_v6  ;;  %v362_v5 = vld [vmem:[%s5247_s26 + $0x250] sm:$0xff]  ;;  %v369_v6 = vld [vmem:[%s5247_s26 + $0x288] sm:$0xff]  ;;  %v605_v11 = vpack.c.bf16 %v479_v4, %v472_v3  ;;  %v447_v3 = vld [vmem:[%s5247_s26 + $0x4f8] sm:$0xff] }
  0x80   : > { %v551_v12 = vpack.c.bf16 %v369_v6, %v362_v5  ;;  %v454_v4 = vld [vmem:[%s5247_s26 + $0x530] sm:$0xff]  ;;  %v385_v6 = vld [vmem:[%s5247_s26 + $0x308] sm:$0xff] }
  0x81   : > { %v378_v5 = vld [vmem:[%s5247_s26 + $0x2d0] sm:$0xff]  ;;  %v594_v9 = vpack.c.bf16 %v454_v4, %v447_v3 }
  0x82   : > { %v560_v10 = vpack.c.bf16 %v385_v6, %v378_v5 }
  0x86   : > { %1330 = vmatmul.mubr.bf16.gmra.mrb[48].mxu1 %v570_v15  ;;  %1427 = vmatmul.mubr.bf16.vlgmr.msra.gmra.mrb[48].mxu0 %v516_v16  ;;  %v486_v15 = vld [vmem:[%s5247_s26 + $0x630] sm:$0xff]  ;;  %v493_v16 = vld [vmem:[%s5247_s26 + $0x668] sm:$0xff] }
  0x87   : > { %1337 = vmatprep.mubr.bf16.mxu1 %v578_v17  ;;  %1434 = vmatprep.mubr.bf16.mxu0 %v524_v18  ;;  %v376_v17 = vld [vmem:[%s5247_s26 + $0x2c0] sm:$0xff]  ;;  %v383_v18 = vld [vmem:[%s5247_s26 + $0x2f8] sm:$0xff]  ;;  %v612_v23 = vpack.c.bf16 %v493_v16, %v486_v15  ;;  %v461_v15 = vld [vmem:[%s5247_s26 + $0x568] sm:$0xff] }
  0x88   : > { %v558_v24 = vpack.c.bf16 %v383_v18, %v376_v17  ;;  %v468_v16 = vld [vmem:[%s5247_s26 + $0x5a0] sm:$0xff]  ;;  %v406_v17 = vld [vmem:[%s5247_s26 + $0x3b0] sm:$0xff]  ;;  %v413_v18 = vld [vmem:[%s5247_s26 + $0x3e8] sm:$0xff] }
  0x89   : > { %v601_v21 = vpack.c.bf16 %v468_v16, %v461_v15  ;;  %v574_v22 = vpack.c.bf16 %v413_v18, %v406_v17  ;;  %v5072_v16 = vld [vmem:[%s6651_s3 + $0x18] sm:$0xff]  }
  0x8e   : > { %1338 = vmatmul.mubr.bf16.gmra.mrb[52].mxu1 %v577_v27  ;;  %1435 = vmatmul.mubr.bf16.gmra.mrb[52].mxu0 %v523_v28  ;;  %v500_v27 = vld [vmem:[%s5247_s26 + $0x6a0] sm:$0xff]  ;;  %v507_v28 = vld [vmem:[%s5247_s26 + $0x6d8] sm:$0xff] }
  0x8f   : > { %1345 = vmatprep.mubr.bf16.mxu1 %v585_v29  ;;  %1442 = vmatprep.mubr.bf16.mxu0 %v531_v30  ;;  %v390_v29 = vld [vmem:[%s5247_s26 + $0x330] sm:$0xff]  ;;  %v397_v30 = vld [vmem:[%s5247_s26 + $0x368] sm:$0xff]  ;;  %v619_v35 = vpack.c.bf16 %v507_v28, %v500_v27  ;;  %v475_v27 = vld [vmem:[%s5247_s26 + $0x5d8] sm:$0xff] }
  0x90   : > { %v565_v36 = vpack.c.bf16 %v397_v30, %v390_v29  ;;  %v482_v28 = vld [vmem:[%s5247_s26 + $0x610] sm:$0xff]  ;;  %v441_v30 = vld [vmem:[%s5247_s26 + $0x4c8] sm:$0xff] }
  0x91   : > { %v434_v29 = vld [vmem:[%s5247_s26 + $0x490] sm:$0xff]  ;;  %v608_v33 = vpack.c.bf16 %v482_v28, %v475_v27 }
  0x92   : > { %v588_v34 = vpack.c.bf16 %v441_v30, %v434_v29  ;;  %v5073_v29 = vld [vmem:[%s6651_s3 + $0x20] sm:$0xff]  }
  0x96   : > { %1346 = vmatmul.mubr.bf16.gmra.mrb[56].mxu1 %v584_v39  ;;  %1443 = vmatmul.mubr.bf16.gmra.mrb[56].mxu0 %v530_v40  ;;  %v404_v39 = vld [vmem:[%s5247_s26 + $0x3a0] sm:$0xff]  ;;  %v411_v40 = vld [vmem:[%s5247_s26 + $0x3d8] sm:$0xff] }
  0x97   : > { %1353 = vmatprep.mubr.bf16.mxu1 %v592_v41  ;;  %1450 = vmatprep.mubr.bf16.mxu0 %v538_v42  ;;  %v308_v41 = vld [vmem:[%s5247_s26 + $0xa0] sm:$0xff]  ;;  %v315_v42 = vld [vmem:[%s5247_s26 + $0xd8] sm:$0xff]  ;;  %v572_v47 = vpack.c.bf16 %v411_v40, %v404_v39  ;;  %v489_v39 = vld [vmem:[%s5247_s26 + $0x648] sm:$0xff] }
  0x98   : > { %v525_v48 = vpack.c.bf16 %v315_v42, %v308_v41  ;;  %v5069_v40 = vld [vmem:[%s6651_s3] sm:$0xff]   ;;  %v462_v42 = vld [vmem:[%s5247_s26 + $0x570] sm:$0xff] }
  0x99   : > { %v496_v41 = vld [vmem:[%s5247_s26 + $0x680] sm:$0xff]  ;;  %4897 = vmatprep.subr.bf16.mxu1 %v5069_v40 }
  0x9a   : > { %v615_v46 = vpack.c.bf16 %v496_v41, %v489_v39 }
  0x9e   : > { %1354 = vmatmul.mubr.bf16.gmra.mrb[60].mxu1 %v591_v51  ;;  %1451 = vmatmul.mubr.bf16.gmra.mrb[60].mxu0 %v537_v52  ;;  %v418_v51 = vld [vmem:[%s5247_s26 + $0x410] sm:$0xff]  ;;  %v425_v52 = vld [vmem:[%s5247_s26 + $0x448] sm:$0xff] }
  0x9f   : > { %1361 = vmatprep.mubr.bf16.mxu1 %v599_v53  ;;  %1458 = vmatprep.mubr.bf16.mxu0 %v545_v54  ;;  %v336_v53 = vld [vmem:[%s5247_s26 + $0x180] sm:$0xff]  ;;  %v343_v54 = vld [vmem:[%s5247_s26 + $0x1b8] sm:$0xff]  ;;  %v579_v59 = vpack.c.bf16 %v425_v52, %v418_v51 }
  0xa0   : > { %v539_v60 = vpack.c.bf16 %v343_v54, %v336_v53  ;;  %v483_v51 = vld [vmem:[%s5247_s26 + $0x618] sm:$0xff]  ;;  %v5070_v53 = vld [vmem:[%s6651_s3 + $0x8] sm:$0xff]   ;;  %v510_v54 = vld [vmem:[%s5247_s26 + $0x6f0] sm:$0xff] }
  0xa1   : > { %v503_v52 = vld [vmem:[%s5247_s26 + $0x6b8] sm:$0xff] }
  0xa6   : > { %1362 = vmatmul.mubr.bf16.gmra.mrb[64].mxu1 %v598_v63  ;;  %1459 = vmatmul.mubr.bf16.gmra.mrb[64].mxu0 %v544_v0  ;;  %v432_v63 = vld [vmem:[%s5247_s26 + $0x480] sm:$0xff]  ;;  %v439_v0 = vld [vmem:[%s5247_s26 + $0x4b8] sm:$0xff] }
  0xa7   : > { %1369 = vmatprep.mubr.bf16.mxu1 %v606_v1  ;;  %1466 = vmatprep.mubr.bf16.mxu0 %v552_v2  ;;  %v364_v1 = vld [vmem:[%s5247_s26 + $0x260] sm:$0xff]  ;;  %v371_v2 = vld [vmem:[%s5247_s26 + $0x298] sm:$0xff]  ;;  %v586_v7 = vpack.c.bf16 %v439_v0, %v432_v63 }
  0xa8   : > { %v553_v8 = vpack.c.bf16 %v371_v2, %v364_v1  ;;  %v504_v63 = vld [vmem:[%s5247_s26 + $0x6c0] sm:$0xff]  ;;  %v511_v0 = vld [vmem:[%s5247_s26 + $0x6f8] sm:$0xff]  ;;  %v5071_v1 = vld [vmem:[%s6651_s3 + $0x10] sm:$0xff]  }
  0xa9   : > { %v623_v6 = vpack.c.bf16 %v511_v0, %v504_v63 }
  0xae   : > { %1370 = vmatmul.mubr.bf16.gmra.mrb[68].mxu1 %v605_v11  ;;  %1467 = vmatmul.mubr.bf16.gmra.mrb[68].mxu0 %v551_v12  ;;  %v446_v11 = vld [vmem:[%s5247_s26 + $0x4f0] sm:$0xff]  ;;  %v453_v12 = vld [vmem:[%s5247_s26 + $0x528] sm:$0xff] }
  0xaf   : > { %1377 = vmatprep.mubr.bf16.mxu1 %v613_v13  ;;  %1474 = vmatprep.mubr.bf16.mxu0 %v559_v14  ;;  %v392_v13 = vld [vmem:[%s5247_s26 + $0x340] sm:$0xff]  ;;  %v399_v14 = vld [vmem:[%s5247_s26 + $0x378] sm:$0xff]  ;;  %v593_v19 = vpack.c.bf16 %v453_v12, %v446_v11 }
  0xb0   : > { %v567_v20 = vpack.c.bf16 %v399_v14, %v392_v13 }
  0xb6   : > { %1378 = vmatmul.mubr.bf16.gmra.mrb[72].mxu1 %v612_v23  ;;  %1475 = vmatmul.mubr.bf16.gmra.mrb[72].mxu0 %v558_v24  ;;  %v460_v23 = vld [vmem:[%s5247_s26 + $0x560] sm:$0xff]  ;;  %v467_v24 = vld [vmem:[%s5247_s26 + $0x598] sm:$0xff] }
  0xb7   : > { %1385 = vmatprep.mubr.bf16.mxu1 %v620_v25  ;;  %1482 = vmatprep.mubr.bf16.mxu0 %v566_v26  ;;  %v420_v25 = vld [vmem:[%s5247_s26 + $0x420] sm:$0xff]  ;;  %v427_v26 = vld [vmem:[%s5247_s26 + $0x458] sm:$0xff]  ;;  %v600_v31 = vpack.c.bf16 %v467_v24, %v460_v23 }
  0xb8   : > { %v581_v32 = vpack.c.bf16 %v427_v26, %v420_v25 }
  0xbe   : > { %1386 = vmatmul.mubr.bf16.gmra.mrb[76].mxu1 %v619_v35  ;;  %1483 = vmatmul.mubr.bf16.gmra.mrb[76].mxu0 %v565_v36  ;;  %v474_v35 = vld [vmem:[%s5247_s26 + $0x5d0] sm:$0xff]  ;;  %v481_v36 = vld [vmem:[%s5247_s26 + $0x608] sm:$0xff] }
  0xbf   : > { %1490 = vmatprep.mubr.bf16.mxu0 %v573_v37  ;;  %4865 = vmatprep.mubr.msk.bf16.mxu1 %vm1023_vm0, %v518_v38  ;;  %v448_v37 = vld [vmem:[%s5247_s26 + $0x500] sm:$0xff]  ;;  %v455_v38 = vld [vmem:[%s5247_s26 + $0x538] sm:$0xff]  ;;  %v607_v44 = vpack.c.bf16 %v481_v36, %v474_v35 }
  0xc0   : > { %v595_v45 = vpack.c.bf16 %v455_v38, %v448_v37 }
  0xc6   : > { %1491 = vmatmul.mubr.bf16.gmra.mrb[80].mxu0 %v572_v47  ;;  %4866 = vmatmul.mubr.msk.bf16.vlgmr.msra.gmra.mrb[80].mxu1 %vm1023_vm0, %v525_v48  ;;  %v602_v47 = vpack.c.bf16 %v469_v43, %v462_v42  ;;  %v488_v48 = vld [vmem:[%s5247_s26 + $0x640] sm:$0xff]  ;;  %v5074_v42 = vld [vmem:[%s6651_s3 + $0x28] sm:$0xff]  }
  0xc7   : > { %1498 = vmatprep.mubr.bf16.mxu0 %v580_v49  ;;  %4869 = vmatprep.mubr.msk.bf16.mxu1 %vm1023_vm0, %v532_v50  ;;  %v495_v49 = vld [vmem:[%s5247_s26 + $0x678] sm:$0xff]  ;;  %v476_v50 = vld [vmem:[%s5247_s26 + $0x5e0] sm:$0xff] }
  0xc8   : > { %4898 = vmatpush3.bf16.msra.mxu1 %v5069_v40  ;;  %v614_v57 = vpack.c.bf16 %v495_v49, %v488_v48  ;;  %v609_v58 = vpack.c.bf16 %v483_v51, %v476_v50 }
  0xc9   : > { %4899 = vmatprep.subr.bf16.mxu1 %v5070_v53 }
  0xcc   : > { %4900 = vmatpush3.bf16.msra.mxu1 %v5070_v53 }
  0xcd   : > { %4901 = vmatprep.subr.bf16.mxu1 %v5071_v1 }
  0xce   : > { %1499 = vmatmul.mubr.bf16.gmra.mrb[84].mxu0 %v579_v59  ;;  %4870 = vmatmul.mubr.msk.bf16.gmra.mrb[84].mxu1 %vm1023_vm0, %v539_v60  ;;  %v622_v59 = vpack.c.bf16 %v510_v54, %v503_v52  ;;  %v616_v60 = vpack.c.bf16 %v497_v56, %v490_v55  ;;  %v5075_v55 = vld [vmem:[%s6651_s3 + $0x30] sm:$0xff]   ;;  %v5649_v56 = vld [vmem:[%s6650_s2] ss:$0 sm:$0xff] }
  0xcf   : > { %1506 = vmatprep.mubr.bf16.mxu0 %v587_v61  ;;  %4873 = vmatprep.mubr.msk.bf16.mxu1 %vm1023_vm0, %v546_v62  ;;  %v502_v61 = vld [vmem:[%s5247_s26 + $0x6b0] sm:$0xff]  ;;  %v509_v62 = vld [vmem:[%s5247_s26 + $0x6e8] sm:$0xff] }
  0xd0   : > { %v621_v5 = vpack.c.bf16 %v509_v62, %v502_v61  ;;  %4902 = vmatpush3.bf16.msra.mxu1 %v5071_v1 }
  0xd1   : > { %4903 = vmatprep.subr.bf16.mxu1 %v5072_v16 }
  0xd4   : > { %4904 = vmatpush3.bf16.msra.mxu1 %v5072_v16 }
  0xd5   : > { %4905 = vmatprep.subr.bf16.mxu1 %v5073_v29 }
  0xd6   : > { %1507 = vmatmul.mubr.bf16.gmra.mrb[88].mxu0 %v586_v7  ;;  %4874 = vmatmul.mubr.msk.bf16.gmra.mrb[88].mxu1 %vm1023_vm0, %v553_v8 }
  0xd7   : > { %1514 = vmatprep.mubr.bf16.mxu0 %v594_v9  ;;  %4877 = vmatprep.mubr.msk.bf16.mxu1 %vm1023_vm0, %v560_v10 }
  0xd8   : > { %4906 = vmatpush3.bf16.msra.mxu1 %v5073_v29 }
  0xd9   : > { %4907 = vmatprep.subr.bf16.mxu1 %v5074_v42 }
  0xdc   : > { %4908 = vmatpush3.bf16.msra.mxu1 %v5074_v42 }
  0xdd   : > { %4909 = vmatprep.subr.bf16.mxu1 %v5075_v55 }
  0xde   : > { %1515 = vmatmul.mubr.bf16.gmra.mrb[92].mxu0 %v593_v19  ;;  %4878 = vmatmul.mubr.msk.bf16.gmra.mrb[92].mxu1 %vm1023_vm0, %v567_v20 }
  0xdf   : > { %1522 = vmatprep.mubr.bf16.mxu0 %v601_v21  ;;  %4881 = vmatprep.mubr.msk.bf16.mxu1 %vm1023_vm0, %v574_v22 }
  0xe0   : > { %4910 = vmatpush3.bf16.msra.mxu1 %v5075_v55 }
  0xe6   : > { %1523 = vmatmul.mubr.bf16.gmra.mrb[96].mxu0 %v600_v31  ;;  %4882 = vmatmul.mubr.msk.bf16.gmra.mrb[96].mxu1 %vm1023_vm0, %v581_v32 }
  0xe7   : > { %1530 = vmatprep.mubr.bf16.mxu0 %v608_v33  ;;  %4885 = vmatprep.mubr.msk.bf16.mxu1 %vm1023_vm0, %v588_v34 }
  0xee   : > { %1531 = vmatmul.mubr.bf16.gmra.mrb[100].mxu0 %v607_v44  ;;  %4886 = vmatmul.mubr.msk.bf16.gmra.mrb[100].mxu1 %vm1023_vm0, %v595_v45 }
  0xef   : > { %1538 = vmatprep.mubr.bf16.mxu0 %v615_v46  ;;  %4889 = vmatprep.mubr.msk.bf16.mxu1 %vm1023_vm0, %v602_v47 }
  0xf6   : > { %1539 = vmatmul.mubr.bf16.gmra.mrb[104].mxu0 %v614_v57  ;;  %4890 = vmatmul.mubr.msk.bf16.gmra.mrb[104].mxu1 %vm1023_vm0, %v609_v58 }
  0xf7   : > { %1546 = vmatprep.mubr.bf16.mxu0 %v622_v59  ;;  %4893 = vmatprep.mubr.msk.bf16.mxu1 %vm1023_vm0, %v616_v60 }
  0xf9   : > { %v4550_v2 = vpop.f32.mrb[0].mxu1  ;;  %v4478_v3 = vpop.f32.mrb[0].mxu0 }
  0xfa   : > { %v4551_v4 = vpop.f32.mrb[1].mxu1  ;;  %v4479_v7 = vpop.f32.mrb[1].mxu0 }
  0xfb   : > { %v5617_v8 = vadd.f32 %v4551_v4, %v4550_v2  ;;  %v4553_v9 = vpop.f32.mrb[2].mxu1  ;;  %v4480_v10 = vadd.f32 %v4479_v7, %v4478_v3  ;;  %v4481_v11 = vpop.f32.mrb[2].mxu0 }
  0xfc   : > { %v4554_v12 = vpop.f32.mrb[3].mxu1  ;;  %v4482_v13 = vpop.f32.mrb[3].mxu0 }
  0xfd   : > { %v5619_v14 = vadd.f32 %v4554_v12, %v4553_v9  ;;  %v4483_v15 = vadd.f32 %v4482_v13, %v4481_v11  ;;  %v1107_v57 = vadd.f32 %v4480_v10, %v5649_v56  ;;  %v5076_v9 = vld [vmem:[%s6651_s3 + $0x38] sm:$0xff]  }
  0xfe   : > { %1547 = vmatmul.mubr.bf16.gmra.mrb[108].mxu0 %v621_v5  ;;  %4894 = vmatmul.mubr.msk.bf16.gmra.mrb[108].mxu1 %vm1023_vm0, %v623_v6 }
  0xff   : > { %v1110_v62 = vadd.f32 %v4483_v15, %v5649_v56  ;;  %4911 = vmatprep.subr.bf16.mxu1 %v5076_v9 }
 0x100   : > { %4912 = vmatpush3.bf16.msra.mxu1 %v5076_v9 }
 0x101   : > { %v4556_v17 = vpop.f32.mrb[4].mxu1  ;;  %v4484_v18 = vpop.f32.mrb[4].mxu0 }
 0x102   : > { %v4557_v19 = vpop.f32.mrb[5].mxu1  ;;  %v4485_v20 = vpop.f32.mrb[5].mxu0 }
 0x103   : > { %v5625_v21 = vadd.f32 %v4557_v19, %v4556_v17  ;;  %v4559_v22 = vpop.f32.mrb[6].mxu1  ;;  %v4486_v23 = vadd.f32 %v4485_v20, %v4484_v18  ;;  %v4487_v24 = vpop.f32.mrb[6].mxu0 }
 0x104   : > { %v4560_v25 = vpop.f32.mrb[7].mxu1  ;;  %v4488_v26 = vpop.f32.mrb[7].mxu0 }
 0x105   : > { %v5627_v27 = vadd.f32 %v4560_v25, %v4559_v22  ;;  %v4489_v28 = vadd.f32 %v4488_v26, %v4487_v24  ;;  %v1115_v11 = vadd.f32 %v4486_v23, %v5649_v56 }
 0x107   : > { %v1118_v17 = vadd.f32 %v4489_v28, %v5649_v56 }
 0x109   : > { %v4562_v30 = vpop.f32.mrb[8].mxu1  ;;  %v4490_v31 = vpop.f32.mrb[8].mxu0 }
 0x10a   : > { %v4563_v32 = vpop.f32.mrb[9].mxu1  ;;  %v4491_v33 = vpop.f32.mrb[9].mxu0 }
 0x10b   : > { %v5632_v34 = vadd.f32 %v4563_v32, %v4562_v30  ;;  %v4565_v35 = vpop.f32.mrb[10].mxu1  ;;  %v4492_v36 = vadd.f32 %v4491_v33, %v4490_v31  ;;  %v4493_v37 = vpop.f32.mrb[10].mxu0 }
 0x10c   : > { %v4566_v38 = vpop.f32.mrb[11].mxu1  ;;  %v4494_v39 = vpop.f32.mrb[11].mxu0 }
 0x10d   : > { %v5634_v40 = vadd.f32 %v4566_v38, %v4565_v35  ;;  %v4495_v41 = vadd.f32 %v4494_v39, %v4493_v37  ;;  %v1123_v23 = vadd.f32 %v4492_v36, %v5649_v56 }
 0x10f   : > { %v1126_v28 = vadd.f32 %v4495_v41, %v5649_v56 }
 0x111   : > { %v4568_v43 = vpop.f32.mrb[12].mxu1  ;;  %v4496_v44 = vpop.f32.mrb[12].mxu0 }
 0x112   : > { %v4569_v45 = vpop.f32.mrb[13].mxu1  ;;  %v4497_v46 = vpop.f32.mrb[13].mxu0 }
 0x113   : > { %v5639_v47 = vadd.f32 %v4569_v45, %v4568_v43  ;;  %v4571_v48 = vpop.f32.mrb[14].mxu1  ;;  %v4498_v49 = vadd.f32 %v4497_v46, %v4496_v44  ;;  %v4499_v50 = vpop.f32.mrb[14].mxu0 }
 0x114   : > { %v4572_v51 = vpop.f32.mrb[15].mxu1  ;;  %v4500_v52 = vpop.f32.mrb[15].mxu0 }
 0x115   : > { %v5641_v53 = vadd.f32 %v4572_v51, %v4571_v48  ;;  %v4501_v54 = vadd.f32 %v4500_v52, %v4499_v50  ;;  %v1131_v36 = vadd.f32 %v4498_v49, %v5649_v56 }
 0x117   : > { %v1134_v41 = vadd.f32 %v4501_v54, %v5649_v56 }
 0x119   : > { %v4590_v58 = vpop.f32.mrb[16].mxu1  ;;  %v4502_v59 = vpop.f32.mrb[16].mxu0 }
 0x11a   : > { %v4591_v60 = vpop.f32.mrb[17].mxu1  ;;  %v4503_v61 = vpop.f32.mrb[17].mxu0 }
 0x11b   : > { %v4592_v63 = vadd.f32 %v4591_v60, %v4590_v58  ;;  %v4593_v0 = vpop.f32.mrb[18].mxu1  ;;  %v4504_v1 = vadd.f32 %v4503_v61, %v4502_v59  ;;  %v4505_v2 = vpop.f32.mrb[18].mxu0 }
 0x11c   : > { %v4594_v3 = vpop.f32.mrb[19].mxu1  ;;  %v4506_v4 = vpop.f32.mrb[19].mxu0 }
 0x11d   : > { %v5653_v5 = vadd.f32 %v4592_v63, %v1107_v57  ;;  %v4595_v6 = vadd.f32 %v4594_v3, %v4593_v0  ;;  %v4507_v7 = vadd.f32 %v4506_v4, %v4505_v2  ;;  %v1139_v49 = vadd.f32 %v4504_v1, %v5649_v56 }
 0x11f   : > { %v5658_v10 = vadd.f32 %v4595_v6, %v1110_v62  ;;  %v1142_v54 = vadd.f32 %v4507_v7, %v5649_v56 }
 0x121   : > { %v4596_v12 = vpop.f32.mrb[20].mxu1  ;;  %v4508_v13 = vpop.f32.mrb[20].mxu0 }
 0x122   : > { %v4597_v15 = vpop.f32.mrb[21].mxu1  ;;  %v4509_v16 = vpop.f32.mrb[21].mxu0 }
 0x123   : > { %v4598_v18 = vadd.f32 %v4597_v15, %v4596_v12  ;;  %v4599_v19 = vpop.f32.mrb[22].mxu1  ;;  %v4510_v20 = vadd.f32 %v4509_v16, %v4508_v13  ;;  %v4511_v22 = vpop.f32.mrb[22].mxu0 }
 0x124   : > { %v4600_v24 = vpop.f32.mrb[23].mxu1  ;;  %v4512_v25 = vpop.f32.mrb[23].mxu0 }
 0x125   : > { %v5662_v26 = vadd.f32 %v4598_v18, %v1115_v11  ;;  %v4601_v29 = vadd.f32 %v4600_v24, %v4599_v19  ;;  %v4513_v30 = vadd.f32 %v4512_v25, %v4511_v22  ;;  %v1147_v1 = vadd.f32 %v4510_v20, %v5649_v56 }
 0x127   : > { %v5664_v31 = vadd.f32 %v4601_v29, %v1118_v17  ;;  %v1150_v7 = vadd.f32 %v4513_v30, %v5649_v56 }
 0x129   : > { %v4602_v32 = vpop.f32.mrb[24].mxu1  ;;  %v4514_v33 = vpop.f32.mrb[24].mxu0 }
 0x12a   : > { %v4603_v35 = vpop.f32.mrb[25].mxu1  ;;  %v4515_v37 = vpop.f32.mrb[25].mxu0 }
 0x12b   : > { %v4604_v38 = vadd.f32 %v4603_v35, %v4602_v32  ;;  %v4605_v39 = vpop.f32.mrb[26].mxu1  ;;  %v4516_v42 = vadd.f32 %v4515_v37, %v4514_v33  ;;  %v4517_v43 = vpop.f32.mrb[26].mxu0 }
 0x12c   : > { %v4606_v44 = vpop.f32.mrb[27].mxu1  ;;  %v4518_v45 = vpop.f32.mrb[27].mxu0 }
 0x12d   : > { %v5668_v46 = vadd.f32 %v4604_v38, %v1123_v23  ;;  %v4607_v48 = vadd.f32 %v4606_v44, %v4605_v39  ;;  %v4519_v50 = vadd.f32 %v4518_v45, %v4517_v43  ;;  %v1155_v20 = vadd.f32 %v4516_v42, %v5649_v56 }
 0x12f   : > { %v5670_v51 = vadd.f32 %v4607_v48, %v1126_v28  ;;  %v1158_v30 = vadd.f32 %v4519_v50, %v5649_v56 }
 0x131   : > { %v4608_v52 = vpop.f32.mrb[28].mxu1  ;;  %v4520_v55 = vpop.f32.mrb[28].mxu0 }
 0x132   : > { %v4609_v57 = vpop.f32.mrb[29].mxu1  ;;  %v4521_v58 = vpop.f32.mrb[29].mxu0 }
 0x133   : > { %v4610_v59 = vadd.f32 %v4609_v57, %v4608_v52  ;;  %v4611_v60 = vpop.f32.mrb[30].mxu1  ;;  %v4522_v61 = vadd.f32 %v4521_v58, %v4520_v55  ;;  %v4523_v62 = vpop.f32.mrb[30].mxu0 }
 0x134   : > { %v4612_v63 = vpop.f32.mrb[31].mxu1  ;;  %v4524_v0 = vpop.f32.mrb[31].mxu0 }
 0x135   : > { %v5674_v2 = vadd.f32 %v4610_v59, %v1131_v36  ;;  %v4613_v3 = vadd.f32 %v4612_v63, %v4611_v60  ;;  %v4525_v4 = vadd.f32 %v4524_v0, %v4523_v62  ;;  %v1163_v42 = vadd.f32 %v4522_v61, %v5649_v56 }
 0x137   : > { %v5676_v6 = vadd.f32 %v4613_v3, %v1134_v41 }
 0x139   : > { %v4614_v9 = vpop.f32.mrb[32].mxu1  ;;  %v4526_v11 = vpop.f32.mrb[32].mxu0 }
 0x13a   : > { %v4615_v12 = vpop.f32.mrb[33].mxu1  ;;  %v4527_v13 = vpop.f32.mrb[33].mxu0 }
 0x13b   : > { %v4616_v15 = vadd.f32 %v4615_v12, %v4614_v9  ;;  %v4617_v16 = vpop.f32.mrb[34].mxu1  ;;  %v4528_v17 = vadd.f32 %v4527_v13, %v4526_v11  ;;  %v4529_v18 = vpop.f32.mrb[34].mxu0 }
 0x13c   : > { %v4618_v19 = vpop.f32.mrb[35].mxu1  ;;  %v4530_v22 = vpop.f32.mrb[35].mxu0 }
 0x13d   : > { %v5680_v24 = vadd.f32 %v4616_v15, %v1139_v49  ;;  %v4619_v25 = vadd.f32 %v4618_v19, %v4617_v16  ;;  %v4531_v29 = vadd.f32 %v4530_v22, %v4529_v18  ;;  %v1166_v18 = vadd.f32 %v4525_v4, %v5649_v56 }
 0x13e   : > { %v1171_v61 = vadd.f32 %v4528_v17, %v5649_v56 }
 0x13f   : > { %v5682_v23 = vadd.f32 %v4619_v25, %v1142_v54 }
 0x141   : > { %v4620_v32 = vpop.f32.mrb[36].mxu1  ;;  %v4532_v33 = vpop.f32.mrb[36].mxu0 }
 0x142   : > { %v4621_v35 = vpop.f32.mrb[37].mxu1  ;;  %v4533_v37 = vpop.f32.mrb[37].mxu0 }
 0x143   : > { %v4622_v28 = vadd.f32 %v4621_v35, %v4620_v32  ;;  %v4623_v38 = vpop.f32.mrb[38].mxu1  ;;  %v4534_v39 = vadd.f32 %v4533_v37, %v4532_v33  ;;  %v4535_v43 = vpop.f32.mrb[38].mxu0 }
 0x144   : > { %v4624_v44 = vpop.f32.mrb[39].mxu1  ;;  %v4536_v45 = vpop.f32.mrb[39].mxu0 }
 0x145   : > { %v5686_v48 = vadd.f32 %v4622_v28, %v1147_v1  ;;  %v4625_v36 = vadd.f32 %v4624_v44, %v4623_v38  ;;  %v5688_v52 = vadd.f32 %v4536_v45, %v4535_v43  ;;  %v1174_v45 = vadd.f32 %v4531_v29, %v5649_v56  ;;  %v5077_v29 = vld [vmem:[%s6653_s5] ss:$28 sps:$4 sm:$0xff]  }
 0x147   : > { %v5690_v55 = vadd.f32 %v4625_v36, %v1150_v7 }
 0x149   : > { %v4626_v57 = vpop.f32.mrb[40].mxu1  ;;  %v4538_v58 = vpop.f32.mrb[40].mxu0 }
 0x14a   : > { %v4627_v41 = vpop.f32.mrb[41].mxu1  ;;  %v4539_v59 = vpop.f32.mrb[41].mxu0 }
 0x14b   : > { %v4628_v60 = vadd.f32 %v4627_v41, %v4626_v57  ;;  %v4629_v62 = vpop.f32.mrb[42].mxu1  ;;  %v5694_v63 = vadd.f32 %v4539_v59, %v4538_v58  ;;  %v4541_v0 = vpop.f32.mrb[42].mxu0 }
 0x14c   : > { %v4630_v3 = vpop.f32.mrb[43].mxu1  ;;  %v4542_v49 = vpop.f32.mrb[43].mxu0 }
 0x14d   : > { %v5696_v9 = vadd.f32 %v4628_v60, %v1155_v20  ;;  %v4631_v11 = vadd.f32 %v4630_v3, %v4629_v62  ;;  %v5698_v12 = vadd.f32 %v4542_v49, %v4541_v0  ;;  %v5079_v49 = vld [vmem:[%s6653_s5 + $0x4] ss:$28 sps:$4 sm:$0xff]  }
 0x14e   : > { %2433 = vmatprep.subr.bf16.mxu0 %v5079_v49 }
 0x14f   : > { %v5700_v13 = vadd.f32 %v4631_v11, %v1158_v30  ;;  %v5082_v11 = vld [vmem:[%s6653_s5 + $0x3c] ss:$28 sps:$4 sm:$0xff]   ;;  %2434 = vmatpush1.bf16.msra.mxu0 %v5077_v29 }
 0x150   : > { %2435 = vmatprep.subr.bf16.mxu0 %v5082_v11 }
 0x151   : > { %v4632_v54 = vpop.f32.mrb[44].mxu1  ;;  %v4544_v15 = vpop.f32.mrb[44].mxu0 }
 0x152   : > { %v4633_v16 = vpop.f32.mrb[45].mxu1  ;;  %v4545_v50 = vpop.f32.mrb[45].mxu0 }
 0x153   : > { %v4634_v19 = vadd.f32 %v4633_v16, %v4632_v54  ;;  %v4635_v22 = vpop.f32.mrb[46].mxu1  ;;  %v5704_v25 = vadd.f32 %v4545_v50, %v4544_v15  ;;  %v4547_v1 = vpop.f32.mrb[46].mxu0  ;;  %v5080_v16 = vld [vmem:[%s6653_s5 + $0x38] ss:$28 sps:$4 sm:$0xff]   ;;  %v1182_v50 = vadd.f32 %v5688_v52, %v5649_v56  ;;  %v5100_v52 = vld [vmem:[%s6653_s5 + $0xc] ss:$28 sps:$4 sm:$0xff]  }
 0x154   : > { %v4636_v32 = vpop.f32.mrb[47].mxu1  ;;  %v4548_v33 = vpop.f32.mrb[47].mxu0  ;;  %2436 = vmatpush1.bf16.msra.mxu0 %v5080_v16  ;;  %2626 = vmatprep.subr.bf16.mxu1 %v5100_v52 }
 0x155   : > { %v5706_v35 = vadd.f32 %v4634_v19, %v1163_v42  ;;  %v4637_v37 = vadd.f32 %v4636_v32, %v4635_v22  ;;  %v5708_v7 = vadd.f32 %v4548_v33, %v4547_v1 }
 0x157   : > { %v5710_v28 = vadd.f32 %v4637_v37, %v1166_v18 }
 0x159   : > { %v4638_v38 = vpop.f32.mrb[48].mxu1  ;;  %v4702_v43 = vpop.f32.mrb[48].mxu0 }
 0x15a   : > { %v4639_v44 = vpop.f32.mrb[49].mxu1  ;;  %v4703_v4 = vpop.f32.mrb[49].mxu0 }
 0x15b   : > { %v4640_v36 = vadd.f32 %v4639_v44, %v4638_v38  ;;  %v4704_v20 = vadd.f32 %v4703_v4, %v4702_v43  ;;  %v4641_v57 = vpop.f32.mrb[50].mxu1  ;;  %v4705_v58 = vpop.f32.mrb[50].mxu0  ;;  %v5083_v44 = vld [vmem:[%s6653_s5 + $0x70] ss:$28 sps:$4 sm:$0xff]  }
 0x15c   : > { %v4642_v41 = vpop.f32.mrb[51].mxu1  ;;  %v4706_v59 = vpop.f32.mrb[51].mxu0 }
 0x15d   : > { %v5714_v30 = vadd.f32 %v4640_v36, %v1171_v61  ;;  %v4643_v60 = vadd.f32 %v4642_v41, %v4641_v57  ;;  %v4707_v62 = vadd.f32 %v4706_v59, %v4705_v58  ;;  %v5717_v0 = vadd.f32 %v4704_v20, %v5653_v5  ;;  %v5086_v59 = vld [vmem:[%s6653_s5 + $0xa8] ss:$28 sps:$4 sm:$0xff]  }
 0x15e   : > { %v1179_v5 = vadd.f32 %v4534_v39, %v5649_v56  ;;  %v5085_v39 = vld [vmem:[%s6653_s5 + $0x74] ss:$28 sps:$4 sm:$0xff]   ;;  %v1187_v36 = vadd.f32 %v5694_v63, %v5649_v56  ;;  %v5091_v63 = vld [vmem:[%s6653_s5 + $0xe4] ss:$28 sps:$4 sm:$0xff]  }
 0x15f   : > { %v5719_v17 = vadd.f32 %v4643_v60, %v1174_v45  ;;  %v5722_v3 = vadd.f32 %v4707_v62, %v5658_v10  ;;  %2437 = vmatprep.subr.bf16.mxu0 %v5085_v39 }
 0x160   : > { %2438 = vmatpush1.bf16.msra.mxu0 %v5083_v44 }
 0x161   : > { %v4644_v42 = vpop.f32.mrb[52].mxu1  ;;  %v4708_v54 = vpop.f32.mrb[52].mxu0 }
 0x162   : > { %v4645_v15 = vpop.f32.mrb[53].mxu1  ;;  %v4709_v10 = vpop.f32.mrb[53].mxu0 }
 0x163   : > { %v4646_v18 = vadd.f32 %v4645_v15, %v4644_v42  ;;  %v4710_v19 = vadd.f32 %v4709_v10, %v4708_v54  ;;  %v4647_v22 = vpop.f32.mrb[54].mxu1  ;;  %v4711_v1 = vpop.f32.mrb[54].mxu0 }
 0x164   : > { %v4648_v32 = vpop.f32.mrb[55].mxu1  ;;  %v4712_v33 = vpop.f32.mrb[55].mxu0 }
 0x165   : > { %v5742_v37 = vadd.f32 %v4646_v18, %v1179_v5  ;;  %v4649_v61 = vadd.f32 %v4648_v32, %v4647_v22  ;;  %v4713_v38 = vadd.f32 %v4712_v33, %v4711_v1  ;;  %v5745_v43 = vadd.f32 %v4710_v19, %v5662_v26  ;;  %v5088_v26 = vld [vmem:[%s6653_s5 + $0xac] ss:$28 sps:$4 sm:$0xff]   ;;  %v5094_v18 = vld [vmem:[%s6653_s5 + $0x11c] ss:$28 sps:$4 sm:$0xff]  }
 0x166   : > { %2439 = vmatprep.subr.bf16.mxu0 %v5088_v26  ;;  %v1195_v19 = vadd.f32 %v5704_v25, %v5649_v56  ;;  %v5092_v32 = vld [vmem:[%s6653_s5 + $0x118] ss:$28 sps:$4 sm:$0xff]  }
 0x167   : > { %v5753_v4 = vadd.f32 %v4649_v61, %v1182_v50  ;;  %v5756_v45 = vadd.f32 %v4713_v38, %v5664_v31  ;;  %v1190_v31 = vadd.f32 %v5698_v12, %v5649_v56  ;;  %2440 = vmatpush1.bf16.msra.mxu0 %v5086_v59  ;;  %v5089_v12 = vld [vmem:[%s6653_s5 + $0xe0] ss:$28 sps:$4 sm:$0xff]   ;;  %v5097_v25 = vld [vmem:[%s6653_s5 + $0x154] ss:$28 sps:$4 sm:$0xff]  }
 0x168   : > { %2441 = vmatprep.subr.bf16.mxu0 %v5091_v63  ;;  %v1203_v63 = vadd.f32 %v5617_v8, %v5649_v56 }
 0x169   : > { %v4650_v20 = vpop.f32.mrb[56].mxu1  ;;  %v4714_v57 = vpop.f32.mrb[56].mxu0 }
 0x16a   : > { %v4651_v58 = vpop.f32.mrb[57].mxu1  ;;  %v4715_v41 = vpop.f32.mrb[57].mxu0 }
 0x16b   : > { %v4652_v60 = vadd.f32 %v4651_v58, %v4650_v20  ;;  %v4716_v62 = vadd.f32 %v4715_v41, %v4714_v57  ;;  %v4653_v29 = vpop.f32.mrb[58].mxu1  ;;  %v4717_v49 = vpop.f32.mrb[58].mxu0  ;;  %2442 = vmatpush1.bf16.msra.mxu0 %v5089_v12 }
 0x16c   : > { %v4654_v11 = vpop.f32.mrb[59].mxu1  ;;  %v4718_v5 = vpop.f32.mrb[59].mxu0  ;;  %2443 = vmatprep.subr.bf16.mxu0 %v5094_v18 }
 0x16d   : > { %v5771_v42 = vadd.f32 %v4652_v60, %v1187_v36  ;;  %v4655_v54 = vadd.f32 %v4654_v11, %v4653_v29  ;;  %v4719_v15 = vadd.f32 %v4718_v5, %v4717_v49  ;;  %v5774_v10 = vadd.f32 %v4716_v62, %v5668_v46  ;;  %v5110_v49 = vld [vmem:[%s6653_s5 + $0x188] ss:$28 sps:$4 sm:$0xff]  }
 0x16f   : > { %v5779_v16 = vadd.f32 %v4655_v54, %v1190_v31  ;;  %v5782_v50 = vadd.f32 %v4719_v15, %v5670_v51  ;;  %v1198_v51 = vadd.f32 %v5708_v7, %v5649_v56  ;;  %2444 = vmatpush1.bf16.msra.mxu0 %v5092_v32  ;;  %v5095_v7 = vld [vmem:[%s6653_s5 + $0x150] ss:$28 sps:$4 sm:$0xff]   ;;  %v1206_v15 = vadd.f32 %v5619_v14, %v5649_v56 }
 0x170   : > { %2445 = vmatprep.subr.bf16.mxu0 %v5097_v25  ;;  %v5112_v31 = vld [vmem:[%s6653_s5 + $0x18c] ss:$28 sps:$4 sm:$0xff]   ;;  %v1211_v14 = vadd.f32 %v5625_v21, %v5649_v56 }
 0x171   : > { %v4656_v46 = vpop.f32.mrb[60].mxu1  ;;  %v4720_v22 = vpop.f32.mrb[60].mxu0 }
 0x172   : > { %v4657_v1 = vpop.f32.mrb[61].mxu1  ;;  %v4721_v39 = vpop.f32.mrb[61].mxu0 }
 0x173   : > { %v4658_v33 = vadd.f32 %v4657_v1, %v4656_v46  ;;  %v4722_v61 = vadd.f32 %v4721_v39, %v4720_v22  ;;  %v4659_v38 = vpop.f32.mrb[62].mxu1  ;;  %v4723_v52 = vpop.f32.mrb[62].mxu0  ;;  %2446 = vmatpush1.bf16.msra.mxu0 %v5095_v7 }
 0x174   : > { %v4660_v44 = vpop.f32.mrb[63].mxu1  ;;  %v4724_v26 = vpop.f32.mrb[63].mxu0  ;;  %2447 = vmatprep.subr.bf16.mxu0 %v5112_v31 }
 0x175   : > { %v5797_v36 = vadd.f32 %v4658_v33, %v1195_v19  ;;  %v4661_v20 = vadd.f32 %v4660_v44, %v4659_v38  ;;  %v4725_v57 = vadd.f32 %v4724_v26, %v4723_v52  ;;  %v5800_v58 = vadd.f32 %v4722_v61, %v5674_v2 }
 0x177   : > { %v5805_v41 = vadd.f32 %v4661_v20, %v1198_v51  ;;  %v5808_v59 = vadd.f32 %v4725_v57, %v5676_v6  ;;  %2448 = vmatpush1.bf16.msra.mxu0 %v5110_v49 }
 0x179   : > { %v4662_v60 = vpop.f32.mrb[64].mxu1  ;;  %v4726_v62 = vpop.f32.mrb[64].mxu0 }
 0x17a   : > { %v4663_v29 = vpop.f32.mrb[65].mxu1  ;;  %v4727_v2 = vpop.f32.mrb[65].mxu0 }
 0x17b   : > { %v4664_v11 = vadd.f32 %v4663_v29, %v4662_v60  ;;  %v4728_v6 = vadd.f32 %v4727_v2, %v4726_v62  ;;  %v4665_v5 = vpop.f32.mrb[66].mxu1  ;;  %v4729_v54 = vpop.f32.mrb[66].mxu0 }
 0x17c   : > { %v4666_v12 = vpop.f32.mrb[67].mxu1  ;;  %v4730_v18 = vpop.f32.mrb[67].mxu0 }
 0x17d   : > { %v5820_v19 = vadd.f32 %v4664_v11, %v1203_v63  ;;  %v4667_v46 = vadd.f32 %v4666_v12, %v4665_v5  ;;  %v4731_v22 = vadd.f32 %v4730_v18, %v4729_v54  ;;  %v5823_v1 = vadd.f32 %v4728_v6, %v5680_v24 }
 0x17e   : > { %v1214_v24 = vadd.f32 %v5627_v27, %v5649_v56  ;;  %v1219_v27 = vadd.f32 %v5632_v34, %v5649_v56 }
 0x17f   : > { %v5825_v39 = vadd.f32 %v4667_v46, %v1206_v15  ;;  %v5828_v8 = vadd.f32 %v4731_v22, %v5682_v23 }
 0x181   : > { %v4668_v32 = vpop.f32.mrb[68].mxu1  ;;  %v4732_v51 = vpop.f32.mrb[68].mxu0 }
 0x182   : > { %v4669_v33 = vpop.f32.mrb[69].mxu1  ;;  %v4733_v61 = vpop.f32.mrb[69].mxu0 }
 0x183   : > { %v4670_v38 = vadd.f32 %v4669_v33, %v4668_v32  ;;  %v4734_v52 = vadd.f32 %v4733_v61, %v4732_v51  ;;  %v4671_v25 = vpop.f32.mrb[70].mxu1  ;;  %v4735_v44 = vpop.f32.mrb[70].mxu0 }
 0x184   : > { %v4672_v26 = vpop.f32.mrb[71].mxu1  ;;  %v4736_v20 = vpop.f32.mrb[71].mxu0 }
 0x185   : > { %v5834_v57 = vadd.f32 %v4670_v38, %v1211_v14  ;;  %v4673_v23 = vadd.f32 %v4672_v26, %v4671_v25  ;;  %v4737_v7 = vadd.f32 %v4736_v20, %v4735_v44  ;;  %v5837_v31 = vadd.f32 %v4734_v52, %v5686_v48 }
 0x186   : > { %v1222_v48 = vadd.f32 %v5634_v40, %v5649_v56  ;;  %v1227_v40 = vadd.f32 %v5639_v47, %v5649_v56 }
 0x187   : > { %v5839_v60 = vadd.f32 %v4673_v23, %v1214_v24  ;;  %v5842_v21 = vadd.f32 %v4737_v7, %v5690_v55 }
 0x189   : > { %v4674_v62 = vpop.f32.mrb[72].mxu1  ;;  %v4738_v29 = vpop.f32.mrb[72].mxu0 }
 0x18a   : > { %v4675_v2 = vpop.f32.mrb[73].mxu1  ;;  %v4739_v49 = vpop.f32.mrb[73].mxu0 }
 0x18b   : > { %v4676_v63 = vadd.f32 %v4675_v2, %v4674_v62  ;;  %v4740_v11 = vadd.f32 %v4739_v49, %v4738_v29  ;;  %v4677_v6 = vpop.f32.mrb[74].mxu1  ;;  %v4741_v5 = vpop.f32.mrb[74].mxu0 }
 0x18c   : > { %v4678_v54 = vpop.f32.mrb[75].mxu1  ;;  %v4742_v15 = vpop.f32.mrb[75].mxu0 }
 0x18d   : > { %v5848_v12 = vadd.f32 %v4676_v63, %v1219_v27  ;;  %v4679_v55 = vadd.f32 %v4678_v54, %v4677_v6  ;;  %v4743_v18 = vadd.f32 %v4742_v15, %v4741_v5  ;;  %v5851_v46 = vadd.f32 %v4740_v11, %v5696_v9 }
 0x18e   : > { %v1230_v9 = vadd.f32 %v5641_v53, %v5649_v56 }
 0x18f   : > { %v5853_v22 = vadd.f32 %v4679_v55, %v1222_v48  ;;  %v5856_v34 = vadd.f32 %v4743_v18, %v5700_v13 }
 0x191   : > { %v4680_v32 = vpop.f32.mrb[76].mxu1  ;;  %v4744_v51 = vpop.f32.mrb[76].mxu0 }
 0x192   : > { %v4681_v33 = vpop.f32.mrb[77].mxu1  ;;  %v4745_v61 = vpop.f32.mrb[77].mxu0 }
 0x193   : > { %v4682_v14 = vadd.f32 %v4681_v33, %v4680_v32  ;;  %v4746_v38 = vadd.f32 %v4745_v61, %v4744_v51  ;;  %v4683_v52 = vpop.f32.mrb[78].mxu1  ;;  %v4747_v25 = vpop.f32.mrb[78].mxu0 }
 0x194   : > { %v4684_v44 = vpop.f32.mrb[79].mxu1  ;;  %v4748_v24 = vpop.f32.mrb[79].mxu0 }
 0x195   : > { %v5862_v26 = vadd.f32 %v4682_v14, %v1227_v40  ;;  %v4685_v13 = vadd.f32 %v4684_v44, %v4683_v52  ;;  %v4749_v20 = vadd.f32 %v4748_v24, %v4747_v25  ;;  %v5865_v23 = vadd.f32 %v4746_v38, %v5706_v35  ;;  %v5103_v14 = vld [vmem:[%s6653_s5 + $0x44] ss:$28 sps:$4 sm:$0xff]  }
 0x197   : > { %v5867_v7 = vadd.f32 %v4685_v13, %v1230_v9  ;;  %v5870_v47 = vadd.f32 %v4749_v20, %v5710_v28 }
 0x199   : > { %v4750_v62 = vpop.f32.mrb[80].mxu0  ;;  %v4867_v29 = vpop.f32.mrb[80].mxu1 }
 0x19a   : > { %v1598_v2 = vadd.f32 %v4867_v29, %v5745_v43  ;;  %v4751_v49 = vpop.f32.mrb[81].mxu0  ;;  %v1589_v53 = vpop.f32.mrb[81].mxu1 }
 0x19b   : > { %v4752_v56 = vadd.f32 %v4751_v49, %v4750_v62  ;;  %v1590_v27 = vadd.f32 %v1589_v53, %v5717_v0  ;;  %v4753_v63 = vpop.f32.mrb[82].mxu0  ;;  %v4868_v11 = vpop.f32.mrb[82].mxu1  ;;  %v5101_v62 = vld [vmem:[%s6653_s5 + $0x40] ss:$28 sps:$4 sm:$0xff]  }
 0x19c   : > { %v1601_v6 = vadd.f32 %v4868_v11, %v5756_v45  ;;  %v4754_v35 = vpop.f32.mrb[83].mxu0  ;;  %v1592_v5 = vpop.f32.mrb[83].mxu1  ;;  %v1718_v15 = vmax.f32 %v1598_v2, 0.0  ;;  %v5098_v45 = vld [vmem:[%s6653_s5 + $0x8] ss:$28 sps:$4 sm:$0xff]  }
 0x19d   : > { %v4755_v48 = vadd.f32 %v4754_v35, %v4753_v63  ;;  %v1593_v54 = vadd.f32 %v1592_v5, %v5722_v3  ;;  %v5877_v28 = vadd.f32 %v4752_v56, %v5714_v30  ;;  %v1716_v43 = vmax.f32 %v1590_v27, 0.0  ;;  %v5104_v63 = vld [vmem:[%s6653_s5 + $0x78] ss:$28 sps:$4 sm:$0xff]  }
 0x19e   : > { %v1719_v55 = vmax.f32 %v1601_v6, 0.0  ;;  %v5109_v5 = vld [vmem:[%s6653_s5 + $0xb4] ss:$28 sps:$4 sm:$0xff]  }
 0x19f   : > { %v1717_v18 = vmax.f32 %v1593_v54, 0.0  ;;  %v5880_v32 = vadd.f32 %v4755_v48, %v5719_v17 }
 0x1a0   : > { %v1749_v0 = vpack.c.bf16 %v1719_v55, %v1718_v15 }
 0x1a1   : > { %v1748_v51 = vpack.c.bf16 %v1717_v18, %v1716_v43  ;;  %v4756_v33 = vpop.f32.mrb[84].mxu0  ;;  %v4871_v61 = vpop.f32.mrb[84].mxu1 }
 0x1a2   : > { %v1614_v3 = vadd.f32 %v4871_v61, %v5800_v58  ;;  %v4757_v40 = vpop.f32.mrb[85].mxu0  ;;  %v1605_v30 = vpop.f32.mrb[85].mxu1 }
 0x1a3   : > { %v4758_v38 = vadd.f32 %v4757_v40, %v4756_v33  ;;  %v1606_v17 = vadd.f32 %v1605_v30, %v5774_v10  ;;  %v4759_v52 = vpop.f32.mrb[86].mxu0  ;;  %v4872_v25 = vpop.f32.mrb[86].mxu1  ;;  %4913 = vmatprep.mubr.bf16.mxu1 %v1748_v51  ;;  %v5107_v33 = vld [vmem:[%s6653_s5 + $0xb0] ss:$28 sps:$4 sm:$0xff]  }
 0x1a4   : > { %v1617_v9 = vadd.f32 %v4872_v25, %v5808_v59  ;;  %v4760_v44 = vpop.f32.mrb[87].mxu0  ;;  %v1608_v24 = vpop.f32.mrb[87].mxu1  ;;  %4914 = vmatmul.mubr.bf16.vlgmr.msra.gmra.mrb[112].mxu1 %v1749_v0  ;;  %v1722_v10 = vmax.f32 %v1614_v3, 0.0  ;;  %v5106_v59 = vld [vmem:[%s6653_s5 + $0x7c] ss:$28 sps:$4 sm:$0xff]  }
 0x1a5   : > { %v4761_v13 = vadd.f32 %v4760_v44, %v4759_v52  ;;  %v1609_v58 = vadd.f32 %v1608_v24, %v5782_v50  ;;  %v5893_v20 = vadd.f32 %v4758_v38, %v5742_v37  ;;  %2627 = vmatpush1.bf16.msra.mxu1 %v5098_v45  ;;  %v1720_v2 = vmax.f32 %v1606_v17, 0.0  ;;  %v5113_v38 = vld [vmem:[%s6653_s5 + $0xe8] ss:$28 sps:$4 sm:$0xff]  }
 0x1a6   : > { %v1723_v29 = vmax.f32 %v1617_v9, 0.0  ;;  %2628 = vmatprep.subr.bf16.mxu1 %v5103_v14  ;;  %v5118_v9 = vld [vmem:[%s6653_s5 + $0x124] ss:$28 sps:$4 sm:$0xff]  }
 0x1a7   : > { %v1721_v49 = vmax.f32 %v1609_v58, 0.0  ;;  %v5902_v53 = vadd.f32 %v4761_v13, %v5753_v4 }
 0x1a8   : > { %v1751_v50 = vpack.c.bf16 %v1723_v29, %v1722_v10 }
 0x1a9   : > { %v1750_v37 = vpack.c.bf16 %v1721_v49, %v1720_v2  ;;  %v4762_v56 = vpop.f32.mrb[88].mxu0  ;;  %v4875_v27 = vpop.f32.mrb[88].mxu1  ;;  %2629 = vmatpush1.bf16.msra.mxu1 %v5101_v62  ;;  %v5116_v2 = vld [vmem:[%s6653_s5 + $0x120] ss:$28 sps:$4 sm:$0xff]  }
 0x1aa   : > { %v1630_v11 = vadd.f32 %v4875_v27, %v5837_v31  ;;  %v4763_v6 = vpop.f32.mrb[89].mxu0  ;;  %v1621_v35 = vpop.f32.mrb[89].mxu1  ;;  %2630 = vmatprep.subr.bf16.mxu1 %v5106_v59 }
 0x1ab   : > { %v4764_v4 = vadd.f32 %v4763_v6, %v4762_v56  ;;  %v1622_v48 = vadd.f32 %v1621_v35, %v5823_v1  ;;  %v4765_v54 = vpop.f32.mrb[90].mxu0  ;;  %v4876_v15 = vpop.f32.mrb[90].mxu1  ;;  %4917 = vmatprep.mubr.bf16.mxu1 %v1750_v37 }
 0x1ac   : > { %v1633_v55 = vadd.f32 %v4876_v15, %v5842_v21  ;;  %v4766_v43 = vpop.f32.mrb[91].mxu0  ;;  %v1624_v18 = vpop.f32.mrb[91].mxu1  ;;  %4918 = vmatmul.mubr.bf16.gmra.mrb[116].mxu1 %v1751_v50  ;;  %v1726_v1 = vmax.f32 %v1630_v11, 0.0  ;;  %v5115_v21 = vld [vmem:[%s6653_s5 + $0xec] ss:$28 sps:$4 sm:$0xff]  }
 0x1ad   : > { %v4767_v0 = vadd.f32 %v4766_v43, %v4765_v54  ;;  %v1625_v31 = vadd.f32 %v1624_v18, %v5828_v8  ;;  %v5915_v51 = vadd.f32 %v4764_v4, %v5771_v42  ;;  %2631 = vmatpush1.bf16.msra.mxu1 %v5104_v63  ;;  %v1724_v45 = vmax.f32 %v1622_v48, 0.0 }
 0x1ae   : > { %v1727_v61 = vmax.f32 %v1633_v55, 0.0  ;;  %2632 = vmatprep.subr.bf16.mxu1 %v5109_v5 }
 0x1af   : > { %v1725_v3 = vmax.f32 %v1625_v31, 0.0  ;;  %v5924_v40 = vadd.f32 %v4767_v0, %v5779_v16 }
 0x1b0   : > { %v1753_v8 = vpack.c.bf16 %v1727_v61, %v1726_v1 }
 0x1b1   : > { %v1752_v42 = vpack.c.bf16 %v1725_v3, %v1724_v45  ;;  %v4768_v30 = vpop.f32.mrb[92].mxu0  ;;  %v4879_v14 = vpop.f32.mrb[92].mxu1  ;;  %2633 = vmatpush1.bf16.msra.mxu1 %v5107_v33 }
 0x1b2   : > { %v1646_v17 = vadd.f32 %v4879_v14, %v5865_v23  ;;  %v4769_v52 = vpop.f32.mrb[93].mxu0  ;;  %v1637_v25 = vpop.f32.mrb[93].mxu1  ;;  %2634 = vmatprep.subr.bf16.mxu1 %v5115_v21 }
 0x1b3   : > { %v4770_v16 = vadd.f32 %v4769_v52, %v4768_v30  ;;  %v1638_v44 = vadd.f32 %v1637_v25, %v5851_v46  ;;  %v4771_v24 = vpop.f32.mrb[94].mxu0  ;;  %v4880_v13 = vpop.f32.mrb[94].mxu1  ;;  %4921 = vmatprep.mubr.bf16.mxu1 %v1752_v42 }
 0x1b4   : > { %v1649_v58 = vadd.f32 %v4880_v13, %v5870_v47  ;;  %v4772_v62 = vpop.f32.mrb[95].mxu0  ;;  %v1640_v10 = vpop.f32.mrb[95].mxu1  ;;  %4922 = vmatmul.mubr.bf16.gmra.mrb[120].mxu1 %v1753_v8  ;;  %v1730_v49 = vmax.f32 %v1646_v17, 0.0 }
 0x1b5   : > { %v4773_v29 = vadd.f32 %v4772_v62, %v4771_v24  ;;  %v1641_v23 = vadd.f32 %v1640_v10, %v5856_v34  ;;  %v1517_v59 = vadd.f32 %v4770_v16, %v5797_v36  ;;  %2635 = vmatpush1.bf16.msra.mxu1 %v5113_v38  ;;  %v1728_v50 = vmax.f32 %v1638_v44, 0.0 }
 0x1b6   : > { %v1731_v46 = vmax.f32 %v1649_v58, 0.0  ;;  %2636 = vmatprep.subr.bf16.mxu1 %v5118_v9 }
 0x1b7   : > { %v1729_v37 = vmax.f32 %v1641_v23, 0.0  ;;  %v1520_v47 = vadd.f32 %v4773_v29, %v5805_v41 }
 0x1b8   : > { %v1755_v56 = vpack.c.bf16 %v1731_v46, %v1730_v49 }
 0x1b9   : > { %v1754_v27 = vpack.c.bf16 %v1729_v37, %v1728_v50  ;;  %v4774_v63 = vpop.f32.mrb[96].mxu0  ;;  %v4883_v11 = vpop.f32.mrb[96].mxu1  ;;  %2637 = vmatpush1.bf16.msra.mxu1 %v5116_v2 }
 0x1ba   : > { %v1662_v34 = vadd.f32 %v4883_v11, %v5893_v20  ;;  %v4775_v36 = vpop.f32.mrb[97].mxu0  ;;  %v1653_v6 = vpop.f32.mrb[97].mxu1 }
 0x1bb   : > { %v4776_v35 = vadd.f32 %v4775_v36, %v4774_v63  ;;  %v1654_v5 = vadd.f32 %v1653_v6, %v5877_v28  ;;  %v4777_v4 = vpop.f32.mrb[98].mxu0  ;;  %v4884_v48 = vpop.f32.mrb[98].mxu1  ;;  %4925 = vmatprep.mubr.bf16.mxu1 %v1754_v27 }
 0x1bc   : > { %v1665_v54 = vadd.f32 %v4884_v48, %v5902_v53  ;;  %v4778_v15 = vpop.f32.mrb[99].mxu0  ;;  %v1656_v55 = vpop.f32.mrb[99].mxu1  ;;  %4926 = vmatmul.mubr.bf16.gmra.mrb[124].mxu1 %v1755_v56  ;;  %v1734_v0 = vmax.f32 %v1662_v34, 0.0 }
 0x1bd   : > { %v4779_v41 = vadd.f32 %v4778_v15, %v4777_v4  ;;  %v1657_v43 = vadd.f32 %v1656_v55, %v5880_v32  ;;  %v1525_v18 = vadd.f32 %v4776_v35, %v5820_v19  ;;  %v1732_v31 = vmax.f32 %v1654_v5, 0.0 }
 0x1be   : > { %v1735_v20 = vmax.f32 %v1665_v54, 0.0 }
 0x1bf   : > { %v1733_v33 = vmax.f32 %v1657_v43, 0.0  ;;  %v1528_v1 = vadd.f32 %v4779_v41, %v5825_v39 }
 0x1c0   : > { %v1757_v28 = vpack.c.bf16 %v1735_v20, %v1734_v0 }
 0x1c1   : > { %v1756_v61 = vpack.c.bf16 %v1733_v33, %v1732_v31  ;;  %v4780_v21 = vpop.f32.mrb[100].mxu0  ;;  %v4887_v45 = vpop.f32.mrb[100].mxu1 }
 0x1c2   : > { %v1678_v3 = vadd.f32 %v4887_v45, %v1517_v59  ;;  %v4781_v53 = vpop.f32.mrb[101].mxu0  ;;  %v1669_v8 = vpop.f32.mrb[101].mxu1 }
 0x1c3   : > { %v4782_v42 = vadd.f32 %v4781_v53, %v4780_v21  ;;  %v1670_v30 = vadd.f32 %v1669_v8, %v5915_v51  ;;  %v4783_v14 = vpop.f32.mrb[102].mxu0  ;;  %v4888_v32 = vpop.f32.mrb[102].mxu1  ;;  %4929 = vmatprep.mubr.bf16.mxu1 %v1756_v61  ;;  %v5121_v8 = vld [vmem:[%s6653_s5 + $0x15c] ss:$28 sps:$4 sm:$0xff]  }
 0x1c4   : > { %v1681_v19 = vadd.f32 %v4888_v32, %v1520_v47  ;;  %v4784_v38 = vpop.f32.mrb[103].mxu0  ;;  %v1672_v17 = vpop.f32.mrb[103].mxu1  ;;  %4930 = vmatmul.mubr.bf16.gmra.mrb[128].mxu1 %v1757_v28  ;;  %v1738_v9 = vmax.f32 %v1678_v3, 0.0  ;;  %2638 = vmatprep.subr.bf16.mxu1 %v5121_v8  ;;  %v5140_v32 = vld [vmem:[%s6653_s5 + $0x18] ss:$28 sps:$4 sm:$0xff]  }
 0x1c5   : > { %v4785_v52 = vadd.f32 %v4784_v38, %v4783_v14  ;;  %v1673_v39 = vadd.f32 %v1672_v17, %v5924_v40  ;;  %v1533_v25 = vadd.f32 %v4782_v42, %v5834_v57  ;;  %v1736_v44 = vmax.f32 %v1670_v30, 0.0  ;;  %v5122_v42 = vld [vmem:[%s6653_s5 + $0x190] ss:$28 sps:$4 sm:$0xff]  }
 0x1c6   : > { %v1739_v16 = vmax.f32 %v1681_v19, 0.0  ;;  %v5165_v30 = vmov 0   ;;  %v5127_v14 = vld [vmem:[%s6653_s5 + $0x14] ss:$28 sps:$4 sm:$0xff]   ;;  %v5978_v19 = vld [vmem:[%s6652_s4] ss:$0 sm:$0xff] }
 0x1c7   : > { %v1737_v24 = vmax.f32 %v1673_v39, 0.0  ;;  %v1536_v13 = vadd.f32 %v4785_v52, %v5839_v60  ;;  %2465 = vmatprep.mubr.bf16.mxu0 %v5165_v30  ;;  %2819 = vmatprep.subr.bf16.mxu0 %v5127_v14 }
 0x1c8   : > { %v1759_v58 = vpack.c.bf16 %v1739_v16, %v1738_v9 }
 0x1c9   : > { %v1758_v51 = vpack.c.bf16 %v1737_v24, %v1736_v44  ;;  %v4786_v62 = vpop.f32.mrb[104].mxu0  ;;  %v4891_v10 = vpop.f32.mrb[104].mxu1 }
 0x1ca   : > { %v1694_v29 = vadd.f32 %v4891_v10, %v1533_v25  ;;  %v4787_v23 = vpop.f32.mrb[105].mxu0  ;;  %v1685_v59 = vpop.f32.mrb[105].mxu1  ;;  %v5125_v10 = vld [vmem:[%s6653_s5 + $0x10] ss:$28 sps:$4 sm:$0xff]  }
 0x1cb   : > { %v4788_v2 = vadd.f32 %v4787_v23, %v4786_v62  ;;  %v1686_v49 = vadd.f32 %v1685_v59, %v1525_v18  ;;  %v4789_v46 = vpop.f32.mrb[106].mxu0  ;;  %v4892_v50 = vpop.f32.mrb[106].mxu1  ;;  %4933 = vmatprep.mubr.bf16.mxu1 %v1758_v51  ;;  %v5130_v59 = vld [vmem:[%s6653_s5 + $0x4c] ss:$28 sps:$4 sm:$0xff]  }
 0x1cc   : > { %v1697_v40 = vadd.f32 %v4892_v50, %v1536_v13  ;;  %v4790_v57 = vpop.f32.mrb[107].mxu0  ;;  %v1688_v37 = vpop.f32.mrb[107].mxu1  ;;  %4934 = vmatmul.mubr.bf16.gmra.mrb[132].mxu1 %v1759_v58  ;;  %v1742_v27 = vmax.f32 %v1694_v29, 0.0 }
 0x1cd   : > { %v4791_v47 = vadd.f32 %v4790_v57, %v4789_v46  ;;  %v1689_v56 = vadd.f32 %v1688_v37, %v1528_v1  ;;  %v1541_v60 = vadd.f32 %v4788_v2, %v5848_v12  ;;  %v1740_v11 = vmax.f32 %v1686_v49, 0.0 }
 0x1ce   : > { %v1743_v63 = vmax.f32 %v1697_v40, 0.0  ;;  %v5144_v40 = vld [vmem:[%s6653_s5 + $0x50] ss:$28 sps:$4 sm:$0xff]  }
 0x1cf   : > { %v1741_v34 = vmax.f32 %v1689_v56, 0.0  ;;  %v1544_v36 = vadd.f32 %v4791_v47, %v5853_v22  ;;  %v5128_v47 = vld [vmem:[%s6653_s5 + $0x48] ss:$28 sps:$4 sm:$0xff]  }
 0x1d0   : > { %v1761_v6 = vpack.c.bf16 %v1743_v63, %v1742_v27 }
 0x1d1   : > { %v1760_v35 = vpack.c.bf16 %v1741_v34, %v1740_v11  ;;  %v4792_v5 = vpop.f32.mrb[108].mxu0  ;;  %v4895_v4 = vpop.f32.mrb[108].mxu1 }
 0x1d2   : > { %v4793_v48 = vpop.f32.mrb[109].mxu0  ;;  %v1701_v54 = vpop.f32.mrb[109].mxu1 }
 0x1d3   : > { %v4794_v15 = vadd.f32 %v4793_v48, %v4792_v5  ;;  %v1702_v55 = vadd.f32 %v1701_v54, %v1541_v60  ;;  %v4795_v41 = vpop.f32.mrb[110].mxu0  ;;  %v4896_v43 = vpop.f32.mrb[110].mxu1  ;;  %4937 = vmatprep.mubr.bf16.mxu1 %v1760_v35  ;;  %v5133_v60 = vld [vmem:[%s6653_s5 + $0x84] ss:$28 sps:$4 sm:$0xff]  }
 0x1d4   : > { %v4796_v18 = vpop.f32.mrb[111].mxu0  ;;  %v1704_v0 = vpop.f32.mrb[111].mxu1  ;;  %4938 = vmatmul.mubr.bf16.gmra.mrb[136].mxu1 %v1761_v6  ;;  %v5131_v5 = vld [vmem:[%s6653_s5 + $0x80] ss:$28 sps:$4 sm:$0xff]  }
 0x1d5   : > { %v1549_v12 = vadd.f32 %v4794_v15, %v5862_v26  ;;  %v4797_v20 = vadd.f32 %v4796_v18, %v4795_v41  ;;  %v1705_v31 = vadd.f32 %v1704_v0, %v1544_v36  ;;  %v1744_v22 = vmax.f32 %v1702_v55, 0.0  ;;  %v5119_v26 = vld [vmem:[%s6653_s5 + $0x158] ss:$28 sps:$4 sm:$0xff]  }
 0x1d6   : > { %2639 = vmatpush1.bf16.msra.mxu1 %v5119_v26  ;;  %v5136_v15 = vld [vmem:[%s6653_s5 + $0xbc] ss:$28 sps:$4 sm:$0xff]  }
 0x1d7   : > { %v1710_v33 = vadd.f32 %v4895_v4, %v1549_v12  ;;  %v1552_v1 = vadd.f32 %v4797_v20, %v5867_v7  ;;  %v1745_v28 = vmax.f32 %v1705_v31, 0.0  ;;  %v5124_v7 = vld [vmem:[%s6653_s5 + $0x194] ss:$28 sps:$4 sm:$0xff]   ;;  %v5148_v4 = vld [vmem:[%s6653_s5 + $0x88] ss:$28 sps:$4 sm:$0xff]  }
 0x1d8   : > { %2640 = vmatprep.subr.bf16.mxu1 %v5124_v7  ;;  %v5134_v20 = vld [vmem:[%s6653_s5 + $0xb8] ss:$28 sps:$4 sm:$0xff]   ;;  %v5143_v7 = vld [vmem:[%s6653_s5 + $0x12c] ss:$28 sps:$4 sm:$0xff]  }
 0x1d9   : > { %v1713_v61 = vadd.f32 %v4896_v43, %v1552_v1  ;;  %v1762_v21 = vpack.c.bf16 %v1745_v28, %v1744_v22  ;;  %v1746_v45 = vmax.f32 %v1710_v33, 0.0  ;;  %v5149_v43 = vld [vmem:[%s6653_s5 + $0xc0] ss:$28 sps:$4 sm:$0xff]   ;;  %v5139_v22 = vld [vmem:[%s6653_s5 + $0xf4] ss:$28 sps:$4 sm:$0xff]  }
 0x1da   : > { %2641 = vmatpush1.bf16.msra.mxu1 %v5122_v42 }
 0x1db   : > { %v1747_v3 = vmax.f32 %v1713_v61, 0.0  ;;  %4941 = vmatprep.mubr.bf16.mxu1 %v1762_v21  ;;  %4945 = vmatprep.subr.bf16.mxu1 %v5140_v32 }
 0x1dd   : > { %v1763_v53 = vpack.c.bf16 %v1747_v3, %v1746_v45  ;;  %v5137_v3 = vld [vmem:[%s6653_s5 + $0xf0] ss:$28 sps:$4 sm:$0xff]  }
 0x1df   : > { %4942 = vmatmul.mubr.bf16.gmra.mrb[140].mxu1 %v1763_v53  ;;  %v5153_v53 = vld [vmem:[%s6653_s5 + $0xf8] ss:$28 sps:$4 sm:$0xff]  }
 0x1e0   : > { %2658 = vmatprep.mubr.bf16.mxu1 %v5165_v30 }
 0x277   : > { %v4915_v38 = vpop.f32.mrb[112].mxu1 }
 0x278   : > { %v1878_v17 = vadd.f32 %v4915_v38, %v5978_v19  ;;  %v1869_v52 = vpop.f32.mrb[113].mxu1 }
 0x279   : > { %v1870_v39 = vadd.f32 %v5978_v19, %v1869_v52  ;;  %v4916_v25 = vpop.f32.mrb[114].mxu1 }
 0x27a   : > { %v1881_v9 = vadd.f32 %v4916_v25, %v5978_v19  ;;  %v1872_v16 = vpop.f32.mrb[115].mxu1  ;;  %v1998_v24 = vmax.f32 %v1878_v17, 0.0 }
 0x27b   : > { %v1873_v44 = vadd.f32 %v5978_v19, %v1872_v16  ;;  %v1996_v58 = vmax.f32 %v1870_v39, 0.0  ;;  %v5141_v39 = vld [vmem:[%s6653_s5 + $0x128] ss:$28 sps:$4 sm:$0xff]  }
 0x27c   : > { %v1999_v13 = vmax.f32 %v1881_v9, 0.0  ;;  %v5147_v16 = vld [vmem:[%s6653_s5 + $0x164] ss:$28 sps:$4 sm:$0xff]  }
 0x27d   : > { %v1997_v51 = vmax.f32 %v1873_v44, 0.0 }
 0x27e   : > { %v5984_v62 = vpack.c.bf16 %v1999_v13, %v1998_v24 }
 0x27f   : > { %v5989_v29 = vpack.c.bf16 %v1997_v51, %v1996_v58  ;;  %v4919_v23 = vpop.f32.mrb[116].mxu1 }
 0x280   : > { %v1894_v2 = vadd.f32 %v4919_v23, %v5978_v19  ;;  %v1885_v49 = vpop.f32.mrb[117].mxu1  ;;  %v5155_v23 = vld [vmem:[%s6653_s5 + $0x168] ss:$28 sps:$4 sm:$0xff]  }
 0x281   : > { %v1886_v46 = vadd.f32 %v5978_v19, %v1885_v49  ;;  %v4920_v50 = vpop.f32.mrb[118].mxu1  ;;  %2466 = vmatmul.mubr.bf16.vlgmr.msra.gmra.mrb[112].mxu0 %v5989_v29  ;;  %2659 = vmatmul.mubr.bf16.vlgmr.msra.gmra.mrb[144].mxu1 %v5989_v29  ;;  %v5152_v49 = vld [vmem:[%s6653_s5 + $0x19c] ss:$28 sps:$4 sm:$0xff]  }
 0x282   : > { %v1897_v57 = vadd.f32 %v4920_v50, %v5978_v19  ;;  %v1888_v37 = vpop.f32.mrb[119].mxu1  ;;  %2820 = vmatpush1.bf16.msra.mxu0 %v5125_v10  ;;  %2475 = vmatprep.mubr.bf16.mxu0 %v5165_v30  ;;  %v2002_v27 = vmax.f32 %v1894_v2, 0.0  ;;  %v5145_v10 = vld [vmem:[%s6653_s5 + $0x160] ss:$28 sps:$4 sm:$0xff]  }
 0x283   : > { %v1889_v56 = vadd.f32 %v5978_v19, %v1888_v37  ;;  %2668 = vmatprep.mubr.bf16.mxu1 %v5165_v30  ;;  %2821 = vmatprep.subr.bf16.mxu0 %v5130_v59  ;;  %v2000_v11 = vmax.f32 %v1886_v46, 0.0 }
 0x284   : > { %v2003_v63 = vmax.f32 %v1897_v57, 0.0  ;;  %4946 = vmatpush3.bf16.msra.mxu1 %v5140_v32  ;;  %v5154_v32 = vld [vmem:[%s6653_s5 + $0x130] ss:$28 sps:$4 sm:$0xff]  }
 0x285   : > { %v2001_v34 = vmax.f32 %v1889_v56, 0.0  ;;  %4947 = vmatprep.subr.bf16.mxu1 %v5144_v40  ;;  %v5150_v56 = vld [vmem:[%s6653_s5 + $0x198] ss:$28 sps:$4 sm:$0xff]  }
 0x286   : > { %v6011_v36 = vpack.c.bf16 %v2003_v63, %v2002_v27  ;;  %2822 = vmatpush1.bf16.msra.mxu0 %v5128_v47 }
 0x287   : > { %v6013_v6 = vpack.c.bf16 %v2001_v34, %v2000_v11  ;;  %v4923_v35 = vpop.f32.mrb[120].mxu1  ;;  %2823 = vmatprep.subr.bf16.mxu0 %v5133_v60 }
 0x288   : > { %v1910_v48 = vadd.f32 %v4923_v35, %v5978_v19  ;;  %v1901_v54 = vpop.f32.mrb[121].mxu1  ;;  %4948 = vmatpush3.bf16.msra.mxu1 %v5144_v40  ;;  %v5156_v40 = vld [vmem:[%s6653_s5 + $0x1a0] ss:$28 sps:$4 sm:$0xff]  }
 0x289   : > { %v1902_v55 = vadd.f32 %v5978_v19, %v1901_v54  ;;  %v4924_v41 = vpop.f32.mrb[122].mxu1  ;;  %2476 = vmatmul.mubr.bf16.gmra.mrb[116].mxu0 %v5984_v62  ;;  %2669 = vmatmul.mubr.bf16.gmra.mrb[148].mxu1 %v5984_v62 }
 0x28a   : > { %v1913_v18 = vadd.f32 %v4924_v41, %v5978_v19  ;;  %v1904_v0 = vpop.f32.mrb[123].mxu1  ;;  %2485 = vmatprep.mubr.bf16.mxu0 %v5165_v30  ;;  %2678 = vmatprep.mubr.bf16.mxu1 %v5165_v30  ;;  %v2006_v31 = vmax.f32 %v1910_v48, 0.0 }
 0x28b   : > { %v1905_v12 = vadd.f32 %v5978_v19, %v1904_v0  ;;  %2824 = vmatpush1.bf16.msra.mxu0 %v5131_v5  ;;  %4949 = vmatprep.subr.bf16.mxu1 %v5148_v4  ;;  %v2004_v1 = vmax.f32 %v1902_v55, 0.0 }
 0x28c   : > { %v2007_v33 = vmax.f32 %v1913_v18, 0.0  ;;  %2825 = vmatprep.subr.bf16.mxu0 %v5136_v15  ;;  %4950 = vmatpush3.bf16.msra.mxu1 %v5148_v4 }
 0x28d   : > { %v2005_v28 = vmax.f32 %v1905_v12, 0.0  ;;  %4951 = vmatprep.subr.bf16.mxu1 %v5149_v43 }
 0x28e   : > { %v6041_v61 = vpack.c.bf16 %v2007_v33, %v2006_v31 }
 0x28f   : > { %v6043_v21 = vpack.c.bf16 %v2005_v28, %v2004_v1  ;;  %v4927_v45 = vpop.f32.mrb[124].mxu1  ;;  %2826 = vmatpush1.bf16.msra.mxu0 %v5134_v20 }
 0x290   : > { %v1926_v8 = vadd.f32 %v4927_v45, %v5978_v19  ;;  %v1917_v26 = vpop.f32.mrb[125].mxu1  ;;  %2827 = vmatprep.subr.bf16.mxu0 %v5139_v22  ;;  %4952 = vmatpush3.bf16.msra.mxu1 %v5149_v43 }
 0x291   : > { %v1918_v42 = vadd.f32 %v5978_v19, %v1917_v26  ;;  %v4928_v14 = vpop.f32.mrb[126].mxu1  ;;  %2486 = vmatmul.mubr.bf16.gmra.mrb[120].mxu0 %v6013_v6  ;;  %2679 = vmatmul.mubr.bf16.gmra.mrb[152].mxu1 %v6013_v6 }
 0x292   : > { %v1929_v38 = vadd.f32 %v4928_v14, %v5978_v19  ;;  %v1920_v17 = vpop.f32.mrb[127].mxu1  ;;  %2495 = vmatprep.mubr.bf16.mxu0 %v5165_v30  ;;  %2688 = vmatprep.mubr.bf16.mxu1 %v5165_v30  ;;  %v2010_v25 = vmax.f32 %v1926_v8, 0.0 }
 0x293   : > { %v1921_v52 = vadd.f32 %v5978_v19, %v1920_v17  ;;  %2828 = vmatpush1.bf16.msra.mxu0 %v5137_v3  ;;  %4953 = vmatprep.subr.bf16.mxu1 %v5153_v53  ;;  %v2008_v44 = vmax.f32 %v1918_v42, 0.0 }
 0x294   : > { %v2011_v9 = vmax.f32 %v1929_v38, 0.0  ;;  %2829 = vmatprep.subr.bf16.mxu0 %v5143_v7  ;;  %4954 = vmatpush3.bf16.msra.mxu1 %v5153_v53 }
 0x295   : > { %v2009_v24 = vmax.f32 %v1921_v52, 0.0  ;;  %4955 = vmatprep.subr.bf16.mxu1 %v5154_v32 }
 0x296   : > { %v6071_v13 = vpack.c.bf16 %v2011_v9, %v2010_v25 }
 0x297   : > { %v6073_v58 = vpack.c.bf16 %v2009_v24, %v2008_v44  ;;  %v4931_v51 = vpop.f32.mrb[128].mxu1  ;;  %2830 = vmatpush1.bf16.msra.mxu0 %v5141_v39 }
 0x298   : > { %v1942_v59 = vadd.f32 %v4931_v51, %v5978_v19  ;;  %v1933_v2 = vpop.f32.mrb[129].mxu1  ;;  %2831 = vmatprep.subr.bf16.mxu0 %v5147_v16  ;;  %4956 = vmatpush3.bf16.msra.mxu1 %v5154_v32 }
 0x299   : > { %v1934_v46 = vadd.f32 %v5978_v19, %v1933_v2  ;;  %v4932_v50 = vpop.f32.mrb[130].mxu1  ;;  %2496 = vmatmul.mubr.bf16.gmra.mrb[124].mxu0 %v6011_v36  ;;  %2689 = vmatmul.mubr.bf16.gmra.mrb[156].mxu1 %v6011_v36 }
 0x29a   : > { %v1945_v57 = vadd.f32 %v4932_v50, %v5978_v19  ;;  %v1936_v37 = vpop.f32.mrb[131].mxu1  ;;  %2505 = vmatprep.mubr.bf16.mxu0 %v5165_v30  ;;  %2698 = vmatprep.mubr.bf16.mxu1 %v5165_v30  ;;  %v2014_v60 = vmax.f32 %v1942_v59, 0.0 }
 0x29b   : > { %v1937_v47 = vadd.f32 %v5978_v19, %v1936_v37  ;;  %2832 = vmatpush1.bf16.msra.mxu0 %v5145_v10  ;;  %4957 = vmatprep.subr.bf16.mxu1 %v5155_v23  ;;  %v2012_v63 = vmax.f32 %v1934_v46, 0.0 }
 0x29c   : > { %v2015_v27 = vmax.f32 %v1945_v57, 0.0  ;;  %2833 = vmatprep.subr.bf16.mxu0 %v5152_v49  ;;  %4958 = vmatpush3.bf16.msra.mxu1 %v5155_v23 }
 0x29d   : > { %v2013_v11 = vmax.f32 %v1937_v47, 0.0  ;;  %4959 = vmatprep.subr.bf16.mxu1 %v5156_v40 }
 0x29e   : > { %v6098_v34 = vpack.c.bf16 %v2015_v27, %v2014_v60 }
 0x29f   : > { %v6100_v35 = vpack.c.bf16 %v2013_v11, %v2012_v63  ;;  %v4935_v5 = vpop.f32.mrb[132].mxu1  ;;  %2834 = vmatpush1.bf16.msra.mxu0 %v5150_v56 }
 0x2a0   : > { %v1958_v4 = vadd.f32 %v4935_v5, %v5978_v19  ;;  %v1949_v48 = vpop.f32.mrb[133].mxu1  ;;  %4960 = vmatpush3.bf16.msra.mxu1 %v5156_v40 }
 0x2a1   : > { %v1950_v54 = vadd.f32 %v5978_v19, %v1949_v48  ;;  %v4936_v15 = vpop.f32.mrb[134].mxu1  ;;  %2506 = vmatmul.mubr.bf16.gmra.mrb[128].mxu0 %v6043_v21  ;;  %2699 = vmatmul.mubr.bf16.gmra.mrb[160].mxu1 %v6043_v21 }
 0x2a2   : > { %v1961_v55 = vadd.f32 %v4936_v15, %v5978_v19  ;;  %v1952_v41 = vpop.f32.mrb[135].mxu1  ;;  %2515 = vmatprep.mubr.bf16.mxu0 %v5165_v30  ;;  %2708 = vmatprep.mubr.bf16.mxu1 %v5165_v30  ;;  %v2018_v18 = vmax.f32 %v1958_v4, 0.0 }
 0x2a3   : > { %v1953_v43 = vadd.f32 %v5978_v19, %v1952_v41  ;;  %v2016_v12 = vmax.f32 %v1950_v54, 0.0 }
 0x2a4   : > { %v2019_v0 = vmax.f32 %v1961_v55, 0.0 }
 0x2a5   : > { %v2017_v20 = vmax.f32 %v1953_v43, 0.0 }
 0x2a6   : > { %v6110_v31 = vpack.c.bf16 %v2019_v0, %v2018_v18 }
 0x2a7   : > { %v6112_v33 = vpack.c.bf16 %v2017_v20, %v2016_v12  ;;  %v4939_v22 = vpop.f32.mrb[136].mxu1 }
 0x2a8   : > { %v1974_v1 = vadd.f32 %v4939_v22, %v5978_v19  ;;  %v1965_v28 = vpop.f32.mrb[137].mxu1 }
 0x2a9   : > { %v1966_v45 = vadd.f32 %v5978_v19, %v1965_v28  ;;  %v4940_v3 = vpop.f32.mrb[138].mxu1  ;;  %2516 = vmatmul.mubr.bf16.gmra.mrb[132].mxu0 %v6041_v61  ;;  %2709 = vmatmul.mubr.bf16.gmra.mrb[164].mxu1 %v6041_v61 }
 0x2aa   : > { %v1977_v53 = vadd.f32 %v4940_v3, %v5978_v19  ;;  %v1968_v8 = vpop.f32.mrb[139].mxu1  ;;  %2525 = vmatprep.mubr.bf16.mxu0 %v5165_v30  ;;  %2718 = vmatprep.mubr.bf16.mxu1 %v5165_v30  ;;  %v2022_v7 = vmax.f32 %v1974_v1, 0.0 }
 0x2ab   : > { %v1969_v26 = vadd.f32 %v5978_v19, %v1968_v8  ;;  %v2020_v14 = vmax.f32 %v1966_v45, 0.0 }
 0x2ac   : > { %v2023_v42 = vmax.f32 %v1977_v53, 0.0 }
 0x2ad   : > { %v2021_v32 = vmax.f32 %v1969_v26, 0.0 }
 0x2ae   : > { %v6122_v38 = vpack.c.bf16 %v2023_v42, %v2022_v7 }
 0x2af   : > { %v6124_v17 = vpack.c.bf16 %v2021_v32, %v2020_v14 }
 0x2b1   : > { %2526 = vmatmul.mubr.bf16.gmra.mrb[136].mxu0 %v6073_v58  ;;  %2719 = vmatmul.mubr.bf16.gmra.mrb[168].mxu1 %v6073_v58 }
 0x2b2   : > { %v4943_v52 = vpop.f32.mrb[140].mxu1  ;;  %2535 = vmatprep.mubr.bf16.mxu0 %v5165_v30  ;;  %2728 = vmatprep.mubr.bf16.mxu1 %v5165_v30 }
 0x2b3   : > { %v1990_v39 = vadd.f32 %v4943_v52, %v5978_v19  ;;  %v1981_v25 = vpop.f32.mrb[141].mxu1 }
 0x2b4   : > { %v1982_v9 = vadd.f32 %v5978_v19, %v1981_v25  ;;  %v4944_v16 = vpop.f32.mrb[142].mxu1 }
 0x2b5   : > { %v1993_v44 = vadd.f32 %v4944_v16, %v5978_v19  ;;  %v1984_v24 = vpop.f32.mrb[143].mxu1  ;;  %v2026_v10 = vmax.f32 %v1990_v39, 0.0 }
 0x2b6   : > { %v1985_v51 = vadd.f32 %v5978_v19, %v1984_v24  ;;  %v2024_v59 = vmax.f32 %v1982_v9, 0.0  ;;  %v2110_v19 = vlaneseq }
 0x2b7   : > { %v2027_v23 = vmax.f32 %v1993_v44, 0.0 }
 0x2b8   : > { %v2025_v2 = vmax.f32 %v1985_v51, 0.0 }
 0x2b9   : > { %v6134_v49 = vpack.c.bf16 %v2027_v23, %v2026_v10  ;;  %2536 = vmatmul.mubr.bf16.gmra.mrb[140].mxu0 %v6071_v13  ;;  %2729 = vmatmul.mubr.bf16.gmra.mrb[172].mxu1 %v6071_v13 }
 0x2ba   : > { %v6138_v46 = vpack.c.bf16 %v2025_v2, %v2024_v59  ;;  %2545 = vmatprep.mubr.bf16.mxu0 %v5165_v30  ;;  %2738 = vmatprep.mubr.bf16.mxu1 %v5165_v30 }
 0x2c1   : > { %2546 = vmatmul.mubr.bf16.gmra.mrb[144].mxu0 %v6100_v35  ;;  %2739 = vmatmul.mubr.bf16.gmra.mrb[176].mxu1 %v6100_v35 }
 0x2c2   : > { %2555 = vmatprep.mubr.bf16.mxu0 %v5165_v30  ;;  %2748 = vmatprep.mubr.bf16.mxu1 %v5165_v30 }
 0x2c9   : > { %2556 = vmatmul.mubr.bf16.gmra.mrb[148].mxu0 %v6098_v34  ;;  %2749 = vmatmul.mubr.bf16.gmra.mrb[180].mxu1 %v6098_v34 }
 0x2ca   : > { %2565 = vmatprep.mubr.bf16.mxu0 %v5165_v30  ;;  %2758 = vmatprep.mubr.bf16.mxu1 %v5165_v30 }
 0x2d1   : > { %2566 = vmatmul.mubr.bf16.gmra.mrb[152].mxu0 %v6112_v33  ;;  %2759 = vmatmul.mubr.bf16.gmra.mrb[184].mxu1 %v6112_v33 }
 0x2d2   : > { %2575 = vmatprep.mubr.bf16.mxu0 %v5165_v30  ;;  %2768 = vmatprep.mubr.bf16.mxu1 %v5165_v30 }
 0x2d9   : > { %2576 = vmatmul.mubr.bf16.gmra.mrb[156].mxu0 %v6110_v31  ;;  %2769 = vmatmul.mubr.bf16.gmra.mrb[188].mxu1 %v6110_v31 }
 0x2da   : > { %2585 = vmatprep.mubr.bf16.mxu0 %v5165_v30  ;;  %2778 = vmatprep.mubr.bf16.mxu1 %v5165_v30 }
 0x2e1   : > { %2586 = vmatmul.mubr.bf16.gmra.mrb[160].mxu0 %v6124_v17  ;;  %2779 = vmatmul.mubr.bf16.gmra.mrb[192].mxu1 %v6124_v17 }
 0x2e2   : > { %2595 = vmatprep.mubr.bf16.mxu0 %v5165_v30  ;;  %2788 = vmatprep.mubr.bf16.mxu1 %v5165_v30 }
 0x2e9   : > { %2596 = vmatmul.mubr.bf16.gmra.mrb[164].mxu0 %v6122_v38  ;;  %2789 = vmatmul.mubr.bf16.gmra.mrb[196].mxu1 %v6122_v38 }
 0x2ea   : > { %2605 = vmatprep.mubr.bf16.mxu0 %v5165_v30  ;;  %2798 = vmatprep.mubr.bf16.mxu1 %v5165_v30 }
 0x2f1   : > { %2606 = vmatmul.mubr.bf16.gmra.mrb[168].mxu0 %v6138_v46  ;;  %2799 = vmatmul.mubr.bf16.gmra.mrb[200].mxu1 %v6138_v46 }
 0x2f2   : > { %2615 = vmatprep.mubr.bf16.mxu0 %v5165_v30  ;;  %2808 = vmatprep.mubr.bf16.mxu1 %v5165_v30 }
 0x2f9   : > { %2616 = vmatmul.mubr.bf16.gmra.mrb[172].mxu0 %v6134_v49  ;;  %2809 = vmatmul.mubr.bf16.gmra.mrb[204].mxu1 %v6134_v49 }
 0x2fa   : > { %4961 = vmatprep.mubr.bf16.mxu1 %v5989_v29  ;;  %2851 = vmatprep.mubr.bf16.mxu0 %v5165_v30 }
 0x301   : > { %2852 = vmatmul.mubr.bf16.vlgmr.msra.gmra.mrb[176].mxu0 %v5989_v29  ;;  %4962 = vmatmul.mubr.bf16.vlgmr.msra.gmra.mrb[208].mxu1 %v5984_v62 }
 0x302   : > { %4965 = vmatprep.mubr.bf16.mxu1 %v6013_v6  ;;  %2861 = vmatprep.mubr.bf16.mxu0 %v5165_v30 }
 0x309   : > { %2862 = vmatmul.mubr.bf16.gmra.mrb[180].mxu0 %v5984_v62  ;;  %4966 = vmatmul.mubr.bf16.gmra.mrb[212].mxu1 %v6011_v36  ;;  %v6208_v62 = vshrl.u32 %v2110_v19, 7 }
 0x30a   : > { %4969 = vmatprep.mubr.bf16.mxu1 %v6043_v21  ;;  %2871 = vmatprep.mubr.bf16.mxu0 %v5165_v30 }
 0x30b   : > { %v2112_v29 = vsub.s32 0, %v6208_v62 }
 0x311   : > { %2872 = vmatmul.mubr.bf16.gmra.mrb[184].mxu0 %v6013_v6  ;;  %4970 = vmatmul.mubr.bf16.gmra.mrb[216].mxu1 %v6041_v61  ;;  %v6216_v6 = vld [vmem:[%s6654_s6] sm:$0x7f] }
 0x312   : > { %4973 = vmatprep.mubr.bf16.mxu1 %v6073_v58  ;;  %2881 = vmatprep.mubr.bf16.mxu0 %v5165_v30 }
 0x319   : > { %2882 = vmatmul.mubr.bf16.gmra.mrb[188].mxu0 %v6011_v36  ;;  %4974 = vmatmul.mubr.bf16.gmra.mrb[220].mxu1 %v6071_v13  ;;  %v2120_v36 = vsub.s32 2, %v6208_v62 }
 0x31a   : > { %4977 = vmatprep.mubr.bf16.mxu1 %v6100_v35  ;;  %2891 = vmatprep.mubr.bf16.mxu0 %v5165_v30 }
 0x321   : > { %2892 = vmatmul.mubr.bf16.gmra.mrb[192].mxu0 %v6043_v21  ;;  %4978 = vmatmul.mubr.bf16.gmra.mrb[224].mxu1 %v6098_v34  ;;  %v2124_v21 = vsub.s32 3, %v6208_v62 }
 0x322   : > { %4981 = vmatprep.mubr.bf16.mxu1 %v6112_v33  ;;  %2901 = vmatprep.mubr.bf16.mxu0 %v5165_v30 }
 0x323   : > { %v6231_v40 = vrot.slane %v6216_v6, %v2124_v21 }
 0x329   : > { %2902 = vmatmul.mubr.bf16.gmra.mrb[196].mxu0 %v6041_v61  ;;  %4982 = vmatmul.mubr.bf16.gmra.mrb[228].mxu1 %v6110_v31  ;;  %v2116_v61 = vsub.s32 1, %v6208_v62 }
 0x32a   : > { %4985 = vmatprep.mubr.bf16.mxu1 %v6124_v17  ;;  %2911 = vmatprep.mubr.bf16.mxu0 %v5165_v30 }
 0x32b   : > { %v6228_v50 = vrot.slane %v6216_v6, %v2116_v61 }
 0x331   : > { %2912 = vmatmul.mubr.bf16.gmra.mrb[200].mxu0 %v6073_v58  ;;  %4986 = vmatmul.mubr.bf16.gmra.mrb[232].mxu1 %v6122_v38  ;;  %v6225_v58 = vrot.slane %v6216_v6, %v2120_v36 }
 0x332   : > { %4989 = vmatprep.mubr.bf16.mxu1 %v6138_v46  ;;  %2921 = vmatprep.mubr.bf16.mxu0 %v5165_v30 }
 0x339   : > { %2922 = vmatmul.mubr.bf16.gmra.mrb[204].mxu0 %v6071_v13  ;;  %4990 = vmatmul.mubr.bf16.gmra.mrb[236].mxu1 %v6134_v49  ;;  %v6222_v13 = vrot.slane %v6216_v6, %v2112_v29 }
 0x33a   : > { %2931 = vmatprep.mubr.bf16.mxu0 %v5165_v30 }
 0x341   : > { %2932 = vmatmul.mubr.bf16.gmra.mrb[208].mxu0 %v6100_v35 }
 0x342   : > { %2941 = vmatprep.mubr.bf16.mxu0 %v5165_v30 }
 0x349   : > { %2942 = vmatmul.mubr.bf16.gmra.mrb[212].mxu0 %v6098_v34 }
 0x34a   : > { %2951 = vmatprep.mubr.bf16.mxu0 %v5165_v30 }
 0x351   : > { %2952 = vmatmul.mubr.bf16.gmra.mrb[216].mxu0 %v6112_v33 }
 0x352   : > { %2961 = vmatprep.mubr.bf16.mxu0 %v5165_v30 }
 0x354   : > { %v2467_v57 = vpop.f32.mrb[112].mxu0  ;;  %v2660_v37 = vpop.f32.mrb[144].mxu1 }
 0x355   : > { %v2468_v47 = vadd.f32 %v2467_v57, %v6222_v13  ;;  %v2661_v56 = vadd.f32 %v2660_v37, %v6225_v58  ;;  %v2469_v60 = vpop.f32.mrb[113].mxu0  ;;  %v2662_v27 = vpop.f32.mrb[145].mxu1 }
 0x356   : > { %v2470_v63 = vadd.f32 %v2469_v60, %v6228_v50  ;;  %v2663_v11 = vadd.f32 %v2662_v27, %v6231_v40  ;;  %v2471_v34 = vpop.f32.mrb[114].mxu0  ;;  %v2664_v35 = vpop.f32.mrb[146].mxu1 }
 0x357   : > { %v2472_v5 = vadd.f32 %v2471_v34, %v6222_v13  ;;  %v2665_v4 = vadd.f32 %v2664_v35, %v6225_v58  ;;  %v2473_v48 = vpop.f32.mrb[115].mxu0  ;;  %v2666_v54 = vpop.f32.mrb[147].mxu1 }
 0x358   : > { %v4334_v15 = vpack.c.bf16 %v2470_v63, %v2468_v47  ;;  %v4335_v55 = vpack.c.bf16 %v2663_v11, %v2661_v56  ;;  %v2474_v41 = vadd.f32 %v2473_v48, %v6228_v50  ;;  %v2667_v43 = vadd.f32 %v2666_v54, %v6231_v40 }
 0x359   : > { %2962 = vmatmul.mubr.bf16.gmra.mrb[220].mxu0 %v6110_v31 }
 0x35a   : > { %3877 = vst [vmem:[%s6242_s15] sm:$0xff] %v4334_v15  ;;  %3878 = vst [vmem:[%s6242_s15 + $0x8] sm:$0xff] %v4335_v55  ;;  %v4338_v18 = vpack.c.bf16 %v2474_v41, %v2472_v5  ;;  %v4339_v0 = vpack.c.bf16 %v2667_v43, %v2665_v4  ;;  %2971 = vmatprep.mubr.bf16.mxu0 %v5165_v30 }
 0x35c   : > { %3882 = vst [vmem:[%s6242_s15 + $0x1c] sm:$0xff] %v4338_v18  ;;  %3883 = vst [vmem:[%s6242_s15 + $0x24] sm:$0xff] %v4339_v0  ;;  %v2477_v12 = vpop.f32.mrb[116].mxu0  ;;  %v2670_v20 = vpop.f32.mrb[148].mxu1 }
 0x35d   : > { %v2478_v33 = vadd.f32 %v2477_v12, %v6222_v13  ;;  %v2671_v22 = vadd.f32 %v2670_v20, %v6225_v58  ;;  %v2479_v1 = vpop.f32.mrb[117].mxu0  ;;  %v2672_v28 = vpop.f32.mrb[149].mxu1 }
 0x35e   : > { %v2480_v31 = vadd.f32 %v2479_v1, %v6228_v50  ;;  %v2673_v45 = vadd.f32 %v2672_v28, %v6231_v40  ;;  %v2481_v3 = vpop.f32.mrb[118].mxu0  ;;  %v2674_v53 = vpop.f32.mrb[150].mxu1 }
 0x35f   : > { %v2482_v8 = vadd.f32 %v2481_v3, %v6222_v13  ;;  %v2675_v26 = vadd.f32 %v2674_v53, %v6225_v58  ;;  %v2483_v7 = vpop.f32.mrb[119].mxu0  ;;  %v2676_v42 = vpop.f32.mrb[151].mxu1 }
 0x360   : > { %v4342_v14 = vpack.c.bf16 %v2480_v31, %v2478_v33  ;;  %v4343_v32 = vpack.c.bf16 %v2673_v45, %v2671_v22  ;;  %v2484_v52 = vadd.f32 %v2483_v7, %v6228_v50  ;;  %v2677_v39 = vadd.f32 %v2676_v42, %v6231_v40 }
 0x361   : > { %2972 = vmatmul.mubr.bf16.gmra.mrb[224].mxu0 %v6124_v17 }
 0x362   : > { %3886 = vst [vmem:[%s6242_s15 + $0x38] sm:$0xff] %v4342_v14  ;;  %3887 = vst [vmem:[%s6242_s15 + $0x40] sm:$0xff] %v4343_v32  ;;  %v4346_v25 = vpack.c.bf16 %v2484_v52, %v2482_v8  ;;  %v4347_v9 = vpack.c.bf16 %v2677_v39, %v2675_v26  ;;  %2981 = vmatprep.mubr.bf16.mxu0 %v5165_v30 }
 0x364   : > { %3890 = vst [vmem:[%s6242_s15 + $0x54] sm:$0xff] %v4346_v25  ;;  %3891 = vst [vmem:[%s6242_s15 + $0x5c] sm:$0xff] %v4347_v9  ;;  %v2487_v16 = vpop.f32.mrb[120].mxu0  ;;  %v2680_v44 = vpop.f32.mrb[152].mxu1 }
 0x365   : > { %v2488_v24 = vadd.f32 %v2487_v16, %v6222_v13  ;;  %v2681_v51 = vadd.f32 %v2680_v44, %v6225_v58  ;;  %v2489_v10 = vpop.f32.mrb[121].mxu0  ;;  %v2682_v23 = vpop.f32.mrb[153].mxu1 }
 0x366   : > { %v2490_v17 = vadd.f32 %v2489_v10, %v6228_v50  ;;  %v2683_v59 = vadd.f32 %v2682_v23, %v6231_v40  ;;  %v2491_v2 = vpop.f32.mrb[122].mxu0  ;;  %v2684_v19 = vpop.f32.mrb[154].mxu1 }
 0x367   : > { %v2492_v29 = vadd.f32 %v2491_v2, %v6222_v13  ;;  %v2685_v36 = vadd.f32 %v2684_v19, %v6225_v58  ;;  %v2493_v61 = vpop.f32.mrb[123].mxu0  ;;  %v2686_v21 = vpop.f32.mrb[155].mxu1 }
 0x368   : > { %v4350_v57 = vpack.c.bf16 %v2490_v17, %v2488_v24  ;;  %v4351_v37 = vpack.c.bf16 %v2683_v59, %v2681_v51  ;;  %v2494_v47 = vadd.f32 %v2493_v61, %v6228_v50  ;;  %v2687_v56 = vadd.f32 %v2686_v21, %v6231_v40 }
 0x369   : > { %2982 = vmatmul.mubr.bf16.gmra.mrb[228].mxu0 %v6122_v38 }
 0x36a   : > { %3894 = vst [vmem:[%s6242_s15 + $0x70] sm:$0xff] %v4350_v57  ;;  %3895 = vst [vmem:[%s6242_s15 + $0x78] sm:$0xff] %v4351_v37  ;;  %v4354_v60 = vpack.c.bf16 %v2494_v47, %v2492_v29  ;;  %v4355_v27 = vpack.c.bf16 %v2687_v56, %v2685_v36  ;;  %2991 = vmatprep.mubr.bf16.mxu0 %v5165_v30 }
 0x36c   : > { %3898 = vst [vmem:[%s6242_s15 + $0x8c] sm:$0xff] %v4354_v60  ;;  %3899 = vst [vmem:[%s6242_s15 + $0x94] sm:$0xff] %v4355_v27  ;;  %v2497_v63 = vpop.f32.mrb[124].mxu0  ;;  %v2690_v11 = vpop.f32.mrb[156].mxu1 }
 0x36d   : > { %v2498_v34 = vadd.f32 %v2497_v63, %v6222_v13  ;;  %v2691_v35 = vadd.f32 %v2690_v11, %v6225_v58  ;;  %v2499_v5 = vpop.f32.mrb[125].mxu0  ;;  %v2692_v4 = vpop.f32.mrb[157].mxu1 }
 0x36e   : > { %v2500_v38 = vadd.f32 %v2499_v5, %v6228_v50  ;;  %v2693_v48 = vadd.f32 %v2692_v4, %v6231_v40  ;;  %v2501_v54 = vpop.f32.mrb[126].mxu0  ;;  %v2694_v15 = vpop.f32.mrb[158].mxu1 }
 0x36f   : > { %v2502_v55 = vadd.f32 %v2501_v54, %v6222_v13  ;;  %v2695_v41 = vadd.f32 %v2694_v15, %v6225_v58  ;;  %v2503_v43 = vpop.f32.mrb[127].mxu0  ;;  %v2696_v18 = vpop.f32.mrb[159].mxu1 }
 0x370   : > { %v4358_v0 = vpack.c.bf16 %v2500_v38, %v2498_v34  ;;  %v4359_v12 = vpack.c.bf16 %v2693_v48, %v2691_v35  ;;  %v2504_v20 = vadd.f32 %v2503_v43, %v6228_v50  ;;  %v2697_v33 = vadd.f32 %v2696_v18, %v6231_v40 }
 0x371   : > { %2992 = vmatmul.mubr.bf16.gmra.mrb[232].mxu0 %v6138_v46 }
 0x372   : > { %3902 = vst [vmem:[%s6242_s15 + $0xa8] sm:$0xff] %v4358_v0  ;;  %3903 = vst [vmem:[%s6242_s15 + $0xb0] sm:$0xff] %v4359_v12  ;;  %v4362_v22 = vpack.c.bf16 %v2504_v20, %v2502_v55  ;;  %v4363_v1 = vpack.c.bf16 %v2697_v33, %v2695_v41  ;;  %3001 = vmatprep.mubr.bf16.mxu0 %v5165_v30 }
 0x374   : > { %3906 = vst [vmem:[%s6242_s15 + $0xc4] sm:$0xff] %v4362_v22  ;;  %3907 = vst [vmem:[%s6242_s15 + $0xcc] sm:$0xff] %v4363_v1  ;;  %v2507_v28 = vpop.f32.mrb[128].mxu0  ;;  %v2700_v31 = vpop.f32.mrb[160].mxu1 }
 0x375   : > { %v2508_v45 = vadd.f32 %v2507_v28, %v6222_v13  ;;  %v2701_v3 = vadd.f32 %v2700_v31, %v6225_v58  ;;  %v2509_v53 = vpop.f32.mrb[129].mxu0  ;;  %v2702_v8 = vpop.f32.mrb[161].mxu1 }
 0x376   : > { %v2510_v46 = vadd.f32 %v2509_v53, %v6228_v50  ;;  %v2703_v26 = vadd.f32 %v2702_v8, %v6231_v40  ;;  %v2511_v7 = vpop.f32.mrb[130].mxu0  ;;  %v2704_v30 = vpop.f32.mrb[162].mxu1 }
 0x377   : > { %v2512_v42 = vadd.f32 %v2511_v7, %v6222_v13  ;;  %v2705_v14 = vadd.f32 %v2704_v30, %v6225_v58  ;;  %v2513_v32 = vpop.f32.mrb[131].mxu0  ;;  %v2706_v52 = vpop.f32.mrb[163].mxu1 }
 0x378   : > { %v4366_v39 = vpack.c.bf16 %v2510_v46, %v2508_v45  ;;  %v4367_v25 = vpack.c.bf16 %v2703_v26, %v2701_v3  ;;  %v2514_v9 = vadd.f32 %v2513_v32, %v6228_v50  ;;  %v2707_v16 = vadd.f32 %v2706_v52, %v6231_v40 }
 0x379   : > { %3002 = vmatmul.mubr.bf16.gmra.mrb[236].mxu0 %v6134_v49 }
 0x37a   : > { %3910 = vst [vmem:[%s6242_s15 + $0xe0] sm:$0xff] %v4366_v39  ;;  %3911 = vst [vmem:[%s6242_s15 + $0xe8] sm:$0xff] %v4367_v25  ;;  %v4370_v44 = vpack.c.bf16 %v2514_v9, %v2512_v42  ;;  %v4371_v24 = vpack.c.bf16 %v2707_v16, %v2705_v14 }
 0x37c   : > { %3914 = vst [vmem:[%s6242_s15 + $0xfc] sm:$0xff] %v4370_v44  ;;  %3915 = vst [vmem:[%s6242_s15 + $0x104] sm:$0xff] %v4371_v24  ;;  %v2517_v51 = vpop.f32.mrb[132].mxu0  ;;  %v2710_v10 = vpop.f32.mrb[164].mxu1 }
 0x37d   : > { %v2518_v23 = vadd.f32 %v2517_v51, %v6222_v13  ;;  %v2711_v17 = vadd.f32 %v2710_v10, %v6225_v58  ;;  %v2519_v59 = vpop.f32.mrb[133].mxu0  ;;  %v2712_v2 = vpop.f32.mrb[165].mxu1 }
 0x37e   : > { %v2520_v19 = vadd.f32 %v2519_v59, %v6228_v50  ;;  %v2713_v49 = vadd.f32 %v2712_v2, %v6231_v40  ;;  %v2521_v29 = vpop.f32.mrb[134].mxu0  ;;  %v2714_v36 = vpop.f32.mrb[166].mxu1 }
 0x37f   : > { %v2522_v61 = vadd.f32 %v2521_v29, %v6222_v13  ;;  %v2715_v21 = vadd.f32 %v2714_v36, %v6225_v58  ;;  %v2523_v57 = vpop.f32.mrb[135].mxu0  ;;  %v2716_v37 = vpop.f32.mrb[167].mxu1 }
 0x380   : > { %v4374_v47 = vpack.c.bf16 %v2520_v19, %v2518_v23  ;;  %v4375_v56 = vpack.c.bf16 %v2713_v49, %v2711_v17  ;;  %v2524_v60 = vadd.f32 %v2523_v57, %v6228_v50  ;;  %v2717_v27 = vadd.f32 %v2716_v37, %v6231_v40 }
 0x382   : > { %3918 = vst [vmem:[%s6242_s15 + $0x118] sm:$0xff] %v4374_v47  ;;  %3919 = vst [vmem:[%s6242_s15 + $0x120] sm:$0xff] %v4375_v56  ;;  %v4378_v63 = vpack.c.bf16 %v2524_v60, %v2522_v61  ;;  %v4379_v11 = vpack.c.bf16 %v2717_v27, %v2715_v21 }
 0x384   : > { %3922 = vst [vmem:[%s6242_s15 + $0x134] sm:$0xff] %v4378_v63  ;;  %3923 = vst [vmem:[%s6242_s15 + $0x13c] sm:$0xff] %v4379_v11  ;;  %v2527_v34 = vpop.f32.mrb[136].mxu0  ;;  %v2720_v35 = vpop.f32.mrb[168].mxu1 }
 0x385   : > { %v2528_v5 = vadd.f32 %v2527_v34, %v6222_v13  ;;  %v2721_v4 = vadd.f32 %v2720_v35, %v6225_v58  ;;  %v2529_v38 = vpop.f32.mrb[137].mxu0  ;;  %v2722_v48 = vpop.f32.mrb[169].mxu1 }
 0x386   : > { %v2530_v54 = vadd.f32 %v2529_v38, %v6228_v50  ;;  %v2723_v15 = vadd.f32 %v2722_v48, %v6231_v40  ;;  %v2531_v55 = vpop.f32.mrb[138].mxu0  ;;  %v2724_v41 = vpop.f32.mrb[170].mxu1 }
 0x387   : > { %v2532_v43 = vadd.f32 %v2531_v55, %v6222_v13  ;;  %v2725_v18 = vadd.f32 %v2724_v41, %v6225_v58  ;;  %v2533_v0 = vpop.f32.mrb[139].mxu0  ;;  %v2726_v12 = vpop.f32.mrb[171].mxu1 }
 0x388   : > { %v4382_v20 = vpack.c.bf16 %v2530_v54, %v2528_v5  ;;  %v4383_v33 = vpack.c.bf16 %v2723_v15, %v2721_v4  ;;  %v2534_v22 = vadd.f32 %v2533_v0, %v6228_v50  ;;  %v2727_v1 = vadd.f32 %v2726_v12, %v6231_v40 }
 0x38a   : > { %3926 = vst [vmem:[%s6242_s15 + $0x150] sm:$0xff] %v4382_v20  ;;  %3927 = vst [vmem:[%s6242_s15 + $0x158] sm:$0xff] %v4383_v33  ;;  %v4386_v28 = vpack.c.bf16 %v2534_v22, %v2532_v43  ;;  %v4387_v31 = vpack.c.bf16 %v2727_v1, %v2725_v18 }
 0x38c   : > { %3930 = vst [vmem:[%s6242_s15 + $0x16c] sm:$0xff] %v4386_v28  ;;  %3931 = vst [vmem:[%s6242_s15 + $0x174] sm:$0xff] %v4387_v31  ;;  %v2537_v45 = vpop.f32.mrb[140].mxu0  ;;  %v2730_v3 = vpop.f32.mrb[172].mxu1 }
 0x38d   : > { %v2538_v53 = vadd.f32 %v2537_v45, %v6222_v13  ;;  %v2731_v8 = vadd.f32 %v2730_v3, %v6225_v58  ;;  %v2539_v46 = vpop.f32.mrb[141].mxu0  ;;  %v2732_v26 = vpop.f32.mrb[173].mxu1 }
 0x38e   : > { %v2540_v7 = vadd.f32 %v2539_v46, %v6228_v50  ;;  %v2733_v30 = vadd.f32 %v2732_v26, %v6231_v40  ;;  %v2541_v42 = vpop.f32.mrb[142].mxu0  ;;  %v2734_v14 = vpop.f32.mrb[174].mxu1 }
 0x38f   : > { %v2542_v32 = vadd.f32 %v2541_v42, %v6222_v13  ;;  %v2735_v52 = vadd.f32 %v2734_v14, %v6225_v58  ;;  %v2543_v39 = vpop.f32.mrb[143].mxu0  ;;  %v2736_v25 = vpop.f32.mrb[175].mxu1 }
 0x390   : > { %v4390_v9 = vpack.c.bf16 %v2540_v7, %v2538_v53  ;;  %v4391_v16 = vpack.c.bf16 %v2733_v30, %v2731_v8  ;;  %v2544_v44 = vadd.f32 %v2543_v39, %v6228_v50  ;;  %v2737_v24 = vadd.f32 %v2736_v25, %v6231_v40 }
 0x392   : > { %3934 = vst [vmem:[%s6242_s15 + $0x188] sm:$0xff] %v4390_v9  ;;  %3935 = vst [vmem:[%s6242_s15 + $0x190] sm:$0xff] %v4391_v16  ;;  %v4394_v51 = vpack.c.bf16 %v2544_v44, %v2542_v32  ;;  %v4395_v10 = vpack.c.bf16 %v2737_v24, %v2735_v52 }
 0x394   : > { %3938 = vst [vmem:[%s6242_s15 + $0x1a4] sm:$0xff] %v4394_v51  ;;  %3939 = vst [vmem:[%s6242_s15 + $0x1ac] sm:$0xff] %v4395_v10  ;;  %v2547_v23 = vpop.f32.mrb[144].mxu0  ;;  %v2740_v17 = vpop.f32.mrb[176].mxu1 }
 0x395   : > { %v2548_v59 = vadd.f32 %v2547_v23, %v6222_v13  ;;  %v2741_v2 = vadd.f32 %v2740_v17, %v6225_v58  ;;  %v2549_v19 = vpop.f32.mrb[145].mxu0  ;;  %v2742_v49 = vpop.f32.mrb[177].mxu1 }
 0x396   : > { %v2550_v29 = vadd.f32 %v2549_v19, %v6228_v50  ;;  %v2743_v36 = vadd.f32 %v2742_v49, %v6231_v40  ;;  %v2551_v61 = vpop.f32.mrb[146].mxu0  ;;  %v2744_v21 = vpop.f32.mrb[178].mxu1 }
 0x397   : > { %v2552_v57 = vadd.f32 %v2551_v61, %v6222_v13  ;;  %v2745_v37 = vadd.f32 %v2744_v21, %v6225_v58  ;;  %v2553_v47 = vpop.f32.mrb[147].mxu0  ;;  %v2746_v56 = vpop.f32.mrb[179].mxu1 }
 0x398   : > { %v4398_v60 = vpack.c.bf16 %v2550_v29, %v2548_v59  ;;  %v4399_v27 = vpack.c.bf16 %v2743_v36, %v2741_v2  ;;  %v2554_v63 = vadd.f32 %v2553_v47, %v6228_v50  ;;  %v2747_v11 = vadd.f32 %v2746_v56, %v6231_v40 }
 0x39a   : > { %3942 = vst [vmem:[%s6242_s15 + $0x1c0] sm:$0xff] %v4398_v60  ;;  %3943 = vst [vmem:[%s6242_s15 + $0x1c8] sm:$0xff] %v4399_v27  ;;  %v4402_v34 = vpack.c.bf16 %v2554_v63, %v2552_v57  ;;  %v4403_v35 = vpack.c.bf16 %v2747_v11, %v2745_v37 }
 0x39c   : > { %3946 = vst [vmem:[%s6242_s15 + $0x1dc] sm:$0xff] %v4402_v34  ;;  %3947 = vst [vmem:[%s6242_s15 + $0x1e4] sm:$0xff] %v4403_v35  ;;  %v2557_v5 = vpop.f32.mrb[148].mxu0  ;;  %v2750_v4 = vpop.f32.mrb[180].mxu1 }
 0x39d   : > { %v2558_v38 = vadd.f32 %v2557_v5, %v6222_v13  ;;  %v2751_v48 = vadd.f32 %v2750_v4, %v6225_v58  ;;  %v2559_v54 = vpop.f32.mrb[149].mxu0  ;;  %v2752_v15 = vpop.f32.mrb[181].mxu1 }
 0x39e   : > { %v2560_v55 = vadd.f32 %v2559_v54, %v6228_v50  ;;  %v2753_v41 = vadd.f32 %v2752_v15, %v6231_v40  ;;  %v2561_v43 = vpop.f32.mrb[150].mxu0  ;;  %v2754_v18 = vpop.f32.mrb[182].mxu1 }
 0x39f   : > { %v2562_v0 = vadd.f32 %v2561_v43, %v6222_v13  ;;  %v2755_v12 = vadd.f32 %v2754_v18, %v6225_v58  ;;  %v2563_v20 = vpop.f32.mrb[151].mxu0  ;;  %v2756_v33 = vpop.f32.mrb[183].mxu1 }
 0x3a0   : > { %v4406_v22 = vpack.c.bf16 %v2560_v55, %v2558_v38  ;;  %v4407_v1 = vpack.c.bf16 %v2753_v41, %v2751_v48  ;;  %v2564_v28 = vadd.f32 %v2563_v20, %v6228_v50  ;;  %v2757_v31 = vadd.f32 %v2756_v33, %v6231_v40 }
 0x3a2   : > { %3950 = vst [vmem:[%s6242_s15 + $0x1f8] sm:$0xff] %v4406_v22  ;;  %3951 = vst [vmem:[%s6242_s15 + $0x200] sm:$0xff] %v4407_v1  ;;  %v4410_v45 = vpack.c.bf16 %v2564_v28, %v2562_v0  ;;  %v4411_v3 = vpack.c.bf16 %v2757_v31, %v2755_v12 }
 0x3a4   : > { %3954 = vst [vmem:[%s6242_s15 + $0x214] sm:$0xff] %v4410_v45  ;;  %3955 = vst [vmem:[%s6242_s15 + $0x21c] sm:$0xff] %v4411_v3  ;;  %v2567_v53 = vpop.f32.mrb[152].mxu0  ;;  %v2760_v8 = vpop.f32.mrb[184].mxu1 }
 0x3a5   : > { %v2568_v46 = vadd.f32 %v2567_v53, %v6222_v13  ;;  %v2761_v26 = vadd.f32 %v2760_v8, %v6225_v58  ;;  %v2569_v7 = vpop.f32.mrb[153].mxu0  ;;  %v2762_v30 = vpop.f32.mrb[185].mxu1 }
 0x3a6   : > { %v2570_v42 = vadd.f32 %v2569_v7, %v6228_v50  ;;  %v2763_v14 = vadd.f32 %v2762_v30, %v6231_v40  ;;  %v2571_v32 = vpop.f32.mrb[154].mxu0  ;;  %v2764_v52 = vpop.f32.mrb[186].mxu1 }
 0x3a7   : > { %v2572_v39 = vadd.f32 %v2571_v32, %v6222_v13  ;;  %v2765_v25 = vadd.f32 %v2764_v52, %v6225_v58  ;;  %v2573_v9 = vpop.f32.mrb[155].mxu0  ;;  %v2766_v16 = vpop.f32.mrb[187].mxu1 }
 0x3a8   : > { %v4414_v44 = vpack.c.bf16 %v2570_v42, %v2568_v46  ;;  %v4415_v24 = vpack.c.bf16 %v2763_v14, %v2761_v26  ;;  %v2574_v51 = vadd.f32 %v2573_v9, %v6228_v50  ;;  %v2767_v10 = vadd.f32 %v2766_v16, %v6231_v40 }
 0x3aa   : > { %3958 = vst [vmem:[%s6242_s15 + $0x230] sm:$0xff] %v4414_v44  ;;  %3959 = vst [vmem:[%s6242_s15 + $0x238] sm:$0xff] %v4415_v24  ;;  %v4418_v23 = vpack.c.bf16 %v2574_v51, %v2572_v39  ;;  %v4419_v17 = vpack.c.bf16 %v2767_v10, %v2765_v25 }
 0x3ac   : > { %3962 = vst [vmem:[%s6242_s15 + $0x24c] sm:$0xff] %v4418_v23  ;;  %3963 = vst [vmem:[%s6242_s15 + $0x254] sm:$0xff] %v4419_v17  ;;  %v2577_v59 = vpop.f32.mrb[156].mxu0  ;;  %v2770_v2 = vpop.f32.mrb[188].mxu1 }
 0x3ad   : > { %v2578_v19 = vadd.f32 %v2577_v59, %v6222_v13  ;;  %v2771_v49 = vadd.f32 %v2770_v2, %v6225_v58  ;;  %v2579_v29 = vpop.f32.mrb[157].mxu0  ;;  %v2772_v36 = vpop.f32.mrb[189].mxu1 }
 0x3ae   : > { %v2580_v61 = vadd.f32 %v2579_v29, %v6228_v50  ;;  %v2773_v21 = vadd.f32 %v2772_v36, %v6231_v40  ;;  %v2581_v57 = vpop.f32.mrb[158].mxu0  ;;  %v2774_v37 = vpop.f32.mrb[190].mxu1 }
 0x3af   : > { %v2582_v47 = vadd.f32 %v2581_v57, %v6222_v13  ;;  %v2775_v56 = vadd.f32 %v2774_v37, %v6225_v58  ;;  %v2583_v60 = vpop.f32.mrb[159].mxu0  ;;  %v2776_v27 = vpop.f32.mrb[191].mxu1 }
 0x3b0   : > { %v4422_v63 = vpack.c.bf16 %v2580_v61, %v2578_v19  ;;  %v4423_v11 = vpack.c.bf16 %v2773_v21, %v2771_v49  ;;  %v2584_v34 = vadd.f32 %v2583_v60, %v6228_v50  ;;  %v2777_v35 = vadd.f32 %v2776_v27, %v6231_v40 }
 0x3b2   : > { %3966 = vst [vmem:[%s6242_s15 + $0x268] sm:$0xff] %v4422_v63  ;;  %3967 = vst [vmem:[%s6242_s15 + $0x270] sm:$0xff] %v4423_v11  ;;  %v4426_v5 = vpack.c.bf16 %v2584_v34, %v2582_v47  ;;  %v4427_v4 = vpack.c.bf16 %v2777_v35, %v2775_v56 }
 0x3b4   : > { %3970 = vst [vmem:[%s6242_s15 + $0x284] sm:$0xff] %v4426_v5  ;;  %3971 = vst [vmem:[%s6242_s15 + $0x28c] sm:$0xff] %v4427_v4  ;;  %v2587_v38 = vpop.f32.mrb[160].mxu0  ;;  %v2780_v48 = vpop.f32.mrb[192].mxu1 }
 0x3b5   : > { %v2588_v54 = vadd.f32 %v2587_v38, %v6222_v13  ;;  %v2781_v15 = vadd.f32 %v2780_v48, %v6225_v58  ;;  %v2589_v55 = vpop.f32.mrb[161].mxu0  ;;  %v2782_v41 = vpop.f32.mrb[193].mxu1 }
 0x3b6   : > { %v2590_v43 = vadd.f32 %v2589_v55, %v6228_v50  ;;  %v2783_v18 = vadd.f32 %v2782_v41, %v6231_v40  ;;  %v2591_v0 = vpop.f32.mrb[162].mxu0  ;;  %v2784_v12 = vpop.f32.mrb[194].mxu1 }
 0x3b7   : > { %v2592_v20 = vadd.f32 %v2591_v0, %v6222_v13  ;;  %v2785_v33 = vadd.f32 %v2784_v12, %v6225_v58  ;;  %v2593_v22 = vpop.f32.mrb[163].mxu0  ;;  %v2786_v1 = vpop.f32.mrb[195].mxu1  ;;  %v2128_v0 = vsub.s32 4, %v6208_v62  ;;  %v2136_v12 = vsub.s32 6, %v6208_v62 }
 0x3b8   : > { %v4430_v28 = vpack.c.bf16 %v2590_v43, %v2588_v54  ;;  %v4431_v31 = vpack.c.bf16 %v2783_v18, %v2781_v15  ;;  %v2594_v45 = vadd.f32 %v2593_v22, %v6228_v50  ;;  %v2787_v3 = vadd.f32 %v2786_v1, %v6231_v40 }
 0x3ba   : > { %3974 = vst [vmem:[%s6242_s15 + $0x2a0] sm:$0xff] %v4430_v28  ;;  %3975 = vst [vmem:[%s6242_s15 + $0x2a8] sm:$0xff] %v4431_v31  ;;  %v4434_v53 = vpack.c.bf16 %v2594_v45, %v2592_v20  ;;  %v4435_v8 = vpack.c.bf16 %v2787_v3, %v2785_v33  ;;  %v2132_v28 = vsub.s32 5, %v6208_v62 }
 0x3bc   : > { %3978 = vst [vmem:[%s6242_s15 + $0x2bc] sm:$0xff] %v4434_v53  ;;  %3979 = vst [vmem:[%s6242_s15 + $0x2c4] sm:$0xff] %v4435_v8  ;;  %v2597_v46 = vpop.f32.mrb[164].mxu0  ;;  %v2790_v26 = vpop.f32.mrb[196].mxu1 }
 0x3bd   : > { %v2598_v7 = vadd.f32 %v2597_v46, %v6222_v13  ;;  %v2791_v30 = vadd.f32 %v2790_v26, %v6225_v58  ;;  %v2599_v42 = vpop.f32.mrb[165].mxu0  ;;  %v2792_v14 = vpop.f32.mrb[197].mxu1 }
 0x3be   : > { %v2600_v32 = vadd.f32 %v2599_v42, %v6228_v50  ;;  %v2793_v52 = vadd.f32 %v2792_v14, %v6231_v40  ;;  %v2601_v39 = vpop.f32.mrb[166].mxu0  ;;  %v2794_v25 = vpop.f32.mrb[198].mxu1  ;;  %v6444_v42 = vrot.slane %v6216_v6, %v2136_v12 }
 0x3bf   : > { %v2602_v9 = vadd.f32 %v2601_v39, %v6222_v13  ;;  %v2795_v16 = vadd.f32 %v2794_v25, %v6225_v58  ;;  %v2603_v44 = vpop.f32.mrb[167].mxu0  ;;  %v2796_v24 = vpop.f32.mrb[199].mxu1 }
 0x3c0   : > { %v4438_v51 = vpack.c.bf16 %v2600_v32, %v2598_v7  ;;  %v4439_v10 = vpack.c.bf16 %v2793_v52, %v2791_v30  ;;  %v2604_v23 = vadd.f32 %v2603_v44, %v6228_v50  ;;  %v2797_v17 = vadd.f32 %v2796_v24, %v6231_v40 }
 0x3c1   : > { %v6441_v30 = vrot.slane %v6216_v6, %v2128_v0 }
 0x3c2   : > { %3982 = vst [vmem:[%s6242_s15 + $0x2d8] sm:$0xff] %v4438_v51  ;;  %3983 = vst [vmem:[%s6242_s15 + $0x2e0] sm:$0xff] %v4439_v10  ;;  %v4442_v59 = vpack.c.bf16 %v2604_v23, %v2602_v9  ;;  %v4443_v2 = vpack.c.bf16 %v2797_v17, %v2795_v16 }
 0x3c4   : > { %3986 = vst [vmem:[%s6242_s15 + $0x2f4] sm:$0xff] %v4442_v59  ;;  %3987 = vst [vmem:[%s6242_s15 + $0x2fc] sm:$0xff] %v4443_v2  ;;  %v2607_v19 = vpop.f32.mrb[168].mxu0  ;;  %v2800_v49 = vpop.f32.mrb[200].mxu1 }
 0x3c5   : > { %v2608_v29 = vadd.f32 %v2607_v19, %v6222_v13  ;;  %v2801_v36 = vadd.f32 %v2800_v49, %v6225_v58  ;;  %v2609_v61 = vpop.f32.mrb[169].mxu0  ;;  %v2802_v21 = vpop.f32.mrb[201].mxu1 }
 0x3c6   : > { %v2610_v57 = vadd.f32 %v2609_v61, %v6228_v50  ;;  %v2803_v37 = vadd.f32 %v2802_v21, %v6231_v40  ;;  %v2611_v47 = vpop.f32.mrb[170].mxu0  ;;  %v2804_v56 = vpop.f32.mrb[202].mxu1 }
 0x3c7   : > { %v2612_v60 = vadd.f32 %v2611_v47, %v6222_v13  ;;  %v2805_v27 = vadd.f32 %v2804_v56, %v6225_v58  ;;  %v2613_v63 = vpop.f32.mrb[171].mxu0  ;;  %v2806_v11 = vpop.f32.mrb[203].mxu1 }
 0x3c8   : > { %v4446_v34 = vpack.c.bf16 %v2610_v57, %v2608_v29  ;;  %v4447_v35 = vpack.c.bf16 %v2803_v37, %v2801_v36  ;;  %v2614_v5 = vadd.f32 %v2613_v63, %v6228_v50  ;;  %v2807_v4 = vadd.f32 %v2806_v11, %v6231_v40 }
 0x3ca   : > { %3990 = vst [vmem:[%s6242_s15 + $0x310] sm:$0xff] %v4446_v34  ;;  %3991 = vst [vmem:[%s6242_s15 + $0x318] sm:$0xff] %v4447_v35  ;;  %v4450_v38 = vpack.c.bf16 %v2614_v5, %v2612_v60  ;;  %v4451_v48 = vpack.c.bf16 %v2807_v4, %v2805_v27 }
 0x3cc   : > { %3994 = vst [vmem:[%s6242_s15 + $0x32c] sm:$0xff] %v4450_v38  ;;  %3995 = vst [vmem:[%s6242_s15 + $0x334] sm:$0xff] %v4451_v48  ;;  %v2617_v54 = vpop.f32.mrb[172].mxu0  ;;  %v2810_v15 = vpop.f32.mrb[204].mxu1 }
 0x3cd   : > { %v2618_v55 = vadd.f32 %v2617_v54, %v6222_v13  ;;  %v2811_v41 = vadd.f32 %v2810_v15, %v6225_v58  ;;  %v2619_v43 = vpop.f32.mrb[173].mxu0  ;;  %v2812_v18 = vpop.f32.mrb[205].mxu1 }
 0x3ce   : > { %v2620_v20 = vadd.f32 %v2619_v43, %v6228_v50  ;;  %v2813_v33 = vadd.f32 %v2812_v18, %v6231_v40  ;;  %v2621_v22 = vpop.f32.mrb[174].mxu0  ;;  %v2814_v1 = vpop.f32.mrb[206].mxu1 }
 0x3cf   : > { %v2622_v31 = vadd.f32 %v2621_v22, %v6222_v13  ;;  %v2815_v45 = vadd.f32 %v2814_v1, %v6225_v58  ;;  %v2623_v3 = vpop.f32.mrb[175].mxu0  ;;  %v2816_v53 = vpop.f32.mrb[207].mxu1  ;;  %v6449_v58 = vrot.slane %v6216_v6, %v2132_v28 }
 0x3d0   : > { %v4454_v8 = vpack.c.bf16 %v2620_v20, %v2618_v55  ;;  %v4455_v46 = vpack.c.bf16 %v2813_v33, %v2811_v41  ;;  %v2624_v26 = vadd.f32 %v2623_v3, %v6228_v50  ;;  %v2817_v7 = vadd.f32 %v2816_v53, %v6231_v40 }
 0x3d2   : > { %3998 = vst [vmem:[%s6242_s15 + $0x348] sm:$0xff] %v4454_v8  ;;  %3999 = vst [vmem:[%s6242_s15 + $0x350] sm:$0xff] %v4455_v46  ;;  %v4458_v62 = vpack.c.bf16 %v2624_v26, %v2622_v31  ;;  %v4459_v13 = vpack.c.bf16 %v2817_v7, %v2815_v45 }
 0x3d4   : > { %4002 = vst [vmem:[%s6242_s15 + $0x364] sm:$0xff] %v4458_v62  ;;  %4003 = vst [vmem:[%s6242_s15 + $0x36c] sm:$0xff] %v4459_v13  ;;  %v2853_v14 = vpop.f32.mrb[176].mxu0  ;;  %v4963_v32 = vpop.f32.mrb[208].mxu1 }
 0x3d5   : > { %v2854_v50 = vadd.f32 %v2853_v14, %v6441_v30  ;;  %v3055_v40 = vadd.f32 %v4963_v32, %v6444_v42  ;;  %v2855_v52 = vpop.f32.mrb[177].mxu0  ;;  %v3046_v39 = vpop.f32.mrb[209].mxu1 }
 0x3d6   : > { %v2856_v25 = vadd.f32 %v2855_v52, %v6449_v58  ;;  %v3047_v9 = vadd.f32 %v3046_v39, %v6444_v42  ;;  %v2857_v6 = vpop.f32.mrb[178].mxu0  ;;  %v4964_v16 = vpop.f32.mrb[210].mxu1 }
 0x3d7   : > { %v4345_v44 = vpack.c.bf16 %v3055_v40, %v3055_v40  ;;  %v2858_v24 = vadd.f32 %v2857_v6, %v6441_v30  ;;  %v3058_v51 = vadd.f32 %v4964_v16, %v6444_v42  ;;  %v2859_v10 = vpop.f32.mrb[179].mxu0  ;;  %v3049_v23 = vpop.f32.mrb[211].mxu1 }
 0x3d8   : > { %v4336_v17 = vpack.c.bf16 %v2856_v25, %v2854_v50  ;;  %v4337_v59 = vpack.c.bf16 %v3047_v9, %v3047_v9  ;;  %v2860_v2 = vadd.f32 %v2859_v10, %v6449_v58  ;;  %v3050_v19 = vadd.f32 %v3049_v23, %v6444_v42 }
 0x3d9   : > { %3889 = vst.msk [vmem:[%s6242_s15 + $0x50] sm:$0xf] %vm3880_vm1, %v4345_v44  ;;  %v4349_v49 = vpack.c.bf16 %v3058_v51, %v3058_v51 }
 0x3da   : > { %3879 = vst [vmem:[%s6242_s15 + $0x10] sm:$0xff] %v4336_v17  ;;  %3881 = vst.msk [vmem:[%s6242_s15 + $0x18] sm:$0xf] %vm3880_vm1, %v4337_v59  ;;  %v4340_v29 = vpack.c.bf16 %v2860_v2, %v2858_v24  ;;  %v4341_v36 = vpack.c.bf16 %v3050_v19, %v3050_v19 }
 0x3db   : > { %3893 = vst.msk [vmem:[%s6242_s15 + $0x6c] sm:$0xf] %vm3880_vm1, %v4349_v49 }
 0x3dc   : > { %3884 = vst [vmem:[%s6242_s15 + $0x2c] sm:$0xff] %v4340_v29  ;;  %3885 = vst.msk [vmem:[%s6242_s15 + $0x34] sm:$0xf] %vm3880_vm1, %v4341_v36  ;;  %v2863_v61 = vpop.f32.mrb[180].mxu0  ;;  %v4967_v21 = vpop.f32.mrb[212].mxu1 }
 0x3dd   : > { %v2864_v57 = vadd.f32 %v2863_v61, %v6441_v30  ;;  %v3071_v37 = vadd.f32 %v4967_v21, %v6444_v42  ;;  %v2865_v47 = vpop.f32.mrb[181].mxu0  ;;  %v3062_v56 = vpop.f32.mrb[213].mxu1 }
 0x3de   : > { %v2866_v60 = vadd.f32 %v2865_v47, %v6449_v58  ;;  %v3063_v27 = vadd.f32 %v3062_v56, %v6444_v42  ;;  %v2867_v63 = vpop.f32.mrb[182].mxu0  ;;  %v4968_v11 = vpop.f32.mrb[214].mxu1 }
 0x3df   : > { %v4361_v34 = vpack.c.bf16 %v3071_v37, %v3071_v37  ;;  %v2868_v35 = vadd.f32 %v2867_v63, %v6441_v30  ;;  %v3074_v5 = vadd.f32 %v4968_v11, %v6444_v42  ;;  %v2869_v4 = vpop.f32.mrb[183].mxu0  ;;  %v3065_v38 = vpop.f32.mrb[215].mxu1 }
 0x3e0   : > { %v4344_v48 = vpack.c.bf16 %v2866_v60, %v2864_v57  ;;  %v4353_v54 = vpack.c.bf16 %v3063_v27, %v3063_v27  ;;  %v2870_v15 = vadd.f32 %v2869_v4, %v6449_v58  ;;  %v3066_v55 = vadd.f32 %v3065_v38, %v6444_v42 }
 0x3e1   : > { %3905 = vst.msk [vmem:[%s6242_s15 + $0xc0] sm:$0xf] %vm3880_vm1, %v4361_v34  ;;  %v4365_v41 = vpack.c.bf16 %v3074_v5, %v3074_v5 }
 0x3e2   : > { %3888 = vst [vmem:[%s6242_s15 + $0x48] sm:$0xff] %v4344_v48  ;;  %3897 = vst.msk [vmem:[%s6242_s15 + $0x88] sm:$0xf] %vm3880_vm1, %v4353_v54  ;;  %v4348_v43 = vpack.c.bf16 %v2870_v15, %v2868_v35  ;;  %v4357_v18 = vpack.c.bf16 %v3066_v55, %v3066_v55 }
 0x3e3   : > { %3909 = vst.msk [vmem:[%s6242_s15 + $0xdc] sm:$0xf] %vm3880_vm1, %v4365_v41 }
 0x3e4   : > { %3892 = vst [vmem:[%s6242_s15 + $0x64] sm:$0xff] %v4348_v43  ;;  %3901 = vst.msk [vmem:[%s6242_s15 + $0xa4] sm:$0xf] %vm3880_vm1, %v4357_v18  ;;  %v2873_v0 = vpop.f32.mrb[184].mxu0  ;;  %v4971_v12 = vpop.f32.mrb[216].mxu1 }
 0x3e5   : > { %v2874_v20 = vadd.f32 %v2873_v0, %v6441_v30  ;;  %v3087_v33 = vadd.f32 %v4971_v12, %v6444_v42  ;;  %v2875_v22 = vpop.f32.mrb[185].mxu0  ;;  %v3078_v1 = vpop.f32.mrb[217].mxu1 }
 0x3e6   : > { %v2876_v28 = vadd.f32 %v2875_v22, %v6449_v58  ;;  %v3079_v31 = vadd.f32 %v3078_v1, %v6444_v42  ;;  %v2877_v45 = vpop.f32.mrb[186].mxu0  ;;  %v4972_v3 = vpop.f32.mrb[218].mxu1 }
 0x3e7   : > { %v4377_v53 = vpack.c.bf16 %v3087_v33, %v3087_v33  ;;  %v2878_v8 = vadd.f32 %v2877_v45, %v6441_v30  ;;  %v3090_v46 = vadd.f32 %v4972_v3, %v6444_v42  ;;  %v2879_v26 = vpop.f32.mrb[187].mxu0  ;;  %v3081_v7 = vpop.f32.mrb[219].mxu1 }
 0x3e8   : > { %v4352_v62 = vpack.c.bf16 %v2876_v28, %v2874_v20  ;;  %v4369_v13 = vpack.c.bf16 %v3079_v31, %v3079_v31  ;;  %v2880_v14 = vadd.f32 %v2879_v26, %v6449_v58  ;;  %v3082_v32 = vadd.f32 %v3081_v7, %v6444_v42 }
 0x3e9   : > { %3921 = vst.msk [vmem:[%s6242_s15 + $0x130] sm:$0xf] %vm3880_vm1, %v4377_v53  ;;  %v4381_v50 = vpack.c.bf16 %v3090_v46, %v3090_v46 }
 0x3ea   : > { %3896 = vst [vmem:[%s6242_s15 + $0x80] sm:$0xff] %v4352_v62  ;;  %3913 = vst.msk [vmem:[%s6242_s15 + $0xf8] sm:$0xf] %vm3880_vm1, %v4369_v13  ;;  %v4356_v40 = vpack.c.bf16 %v2880_v14, %v2878_v8  ;;  %v4373_v52 = vpack.c.bf16 %v3082_v32, %v3082_v32 }
 0x3eb   : > { %3925 = vst.msk [vmem:[%s6242_s15 + $0x14c] sm:$0xf] %vm3880_vm1, %v4381_v50 }
 0x3ec   : > { %3900 = vst [vmem:[%s6242_s15 + $0x9c] sm:$0xff] %v4356_v40  ;;  %3917 = vst.msk [vmem:[%s6242_s15 + $0x114] sm:$0xf] %vm3880_vm1, %v4373_v52  ;;  %v2883_v39 = vpop.f32.mrb[188].mxu0  ;;  %v4975_v25 = vpop.f32.mrb[220].mxu1 }
 0x3ed   : > { %v2884_v9 = vadd.f32 %v2883_v39, %v6441_v30  ;;  %v3103_v6 = vadd.f32 %v4975_v25, %v6444_v42  ;;  %v2885_v16 = vpop.f32.mrb[189].mxu0  ;;  %v3094_v44 = vpop.f32.mrb[221].mxu1 }
 0x3ee   : > { %v2886_v24 = vadd.f32 %v2885_v16, %v6449_v58  ;;  %v3095_v51 = vadd.f32 %v3094_v44, %v6444_v42  ;;  %v2887_v10 = vpop.f32.mrb[190].mxu0  ;;  %v4976_v23 = vpop.f32.mrb[222].mxu1 }
 0x3ef   : > { %v4393_v17 = vpack.c.bf16 %v3103_v6, %v3103_v6  ;;  %v2888_v59 = vadd.f32 %v2887_v10, %v6441_v30  ;;  %v3106_v2 = vadd.f32 %v4976_v23, %v6444_v42  ;;  %v2889_v19 = vpop.f32.mrb[191].mxu0  ;;  %v3097_v49 = vpop.f32.mrb[223].mxu1 }
 0x3f0   : > { %v4360_v29 = vpack.c.bf16 %v2886_v24, %v2884_v9  ;;  %v4385_v36 = vpack.c.bf16 %v3095_v51, %v3095_v51  ;;  %v2890_v61 = vadd.f32 %v2889_v19, %v6449_v58  ;;  %v3098_v21 = vadd.f32 %v3097_v49, %v6444_v42 }
 0x3f1   : > { %3937 = vst.msk [vmem:[%s6242_s15 + $0x1a0] sm:$0xf] %vm3880_vm1, %v4393_v17  ;;  %v4397_v57 = vpack.c.bf16 %v3106_v2, %v3106_v2 }
 0x3f2   : > { %3904 = vst [vmem:[%s6242_s15 + $0xb8] sm:$0xff] %v4360_v29  ;;  %3929 = vst.msk [vmem:[%s6242_s15 + $0x168] sm:$0xf] %vm3880_vm1, %v4385_v36  ;;  %v4364_v37 = vpack.c.bf16 %v2890_v61, %v2888_v59  ;;  %v4389_v47 = vpack.c.bf16 %v3098_v21, %v3098_v21 }
 0x3f3   : > { %3941 = vst.msk [vmem:[%s6242_s15 + $0x1bc] sm:$0xf] %vm3880_vm1, %v4397_v57 }
 0x3f4   : > { %3908 = vst [vmem:[%s6242_s15 + $0xd4] sm:$0xff] %v4364_v37  ;;  %3933 = vst.msk [vmem:[%s6242_s15 + $0x184] sm:$0xf] %vm3880_vm1, %v4389_v47  ;;  %v2893_v56 = vpop.f32.mrb[192].mxu0  ;;  %v4979_v60 = vpop.f32.mrb[224].mxu1 }
 0x3f5   : > { %v2894_v27 = vadd.f32 %v2893_v56, %v6441_v30  ;;  %v3119_v63 = vadd.f32 %v4979_v60, %v6444_v42  ;;  %v2895_v11 = vpop.f32.mrb[193].mxu0  ;;  %v3110_v34 = vpop.f32.mrb[225].mxu1 }
 0x3f6   : > { %v2896_v35 = vadd.f32 %v2895_v11, %v6449_v58  ;;  %v3111_v5 = vadd.f32 %v3110_v34, %v6444_v42  ;;  %v2897_v4 = vpop.f32.mrb[194].mxu0  ;;  %v4980_v38 = vpop.f32.mrb[226].mxu1 }
 0x3f7   : > { %v4409_v48 = vpack.c.bf16 %v3119_v63, %v3119_v63  ;;  %v2898_v54 = vadd.f32 %v2897_v4, %v6441_v30  ;;  %v3122_v15 = vadd.f32 %v4980_v38, %v6444_v42  ;;  %v2899_v55 = vpop.f32.mrb[195].mxu0  ;;  %v3113_v41 = vpop.f32.mrb[227].mxu1 }
 0x3f8   : > { %v4368_v43 = vpack.c.bf16 %v2896_v35, %v2894_v27  ;;  %v4401_v18 = vpack.c.bf16 %v3111_v5, %v3111_v5  ;;  %v2900_v0 = vadd.f32 %v2899_v55, %v6449_v58  ;;  %v3114_v12 = vadd.f32 %v3113_v41, %v6444_v42 }
 0x3f9   : > { %3953 = vst.msk [vmem:[%s6242_s15 + $0x210] sm:$0xf] %vm3880_vm1, %v4409_v48  ;;  %v4413_v20 = vpack.c.bf16 %v3122_v15, %v3122_v15 }
 0x3fa   : > { %3912 = vst [vmem:[%s6242_s15 + $0xf0] sm:$0xff] %v4368_v43  ;;  %3945 = vst.msk [vmem:[%s6242_s15 + $0x1d8] sm:$0xf] %vm3880_vm1, %v4401_v18  ;;  %v4372_v33 = vpack.c.bf16 %v2900_v0, %v2898_v54  ;;  %v4405_v22 = vpack.c.bf16 %v3114_v12, %v3114_v12 }
 0x3fb   : > { %3957 = vst.msk [vmem:[%s6242_s15 + $0x22c] sm:$0xf] %vm3880_vm1, %v4413_v20 }
 0x3fc   : > { %3916 = vst [vmem:[%s6242_s15 + $0x10c] sm:$0xff] %v4372_v33  ;;  %3949 = vst.msk [vmem:[%s6242_s15 + $0x1f4] sm:$0xf] %vm3880_vm1, %v4405_v22  ;;  %v2903_v1 = vpop.f32.mrb[196].mxu0  ;;  %v4983_v28 = vpop.f32.mrb[228].mxu1 }
 0x3fd   : > { %v2904_v31 = vadd.f32 %v2903_v1, %v6441_v30  ;;  %v3135_v45 = vadd.f32 %v4983_v28, %v6444_v42  ;;  %v2905_v3 = vpop.f32.mrb[197].mxu0  ;;  %v3126_v53 = vpop.f32.mrb[229].mxu1 }
 0x3fe   : > { %v2906_v8 = vadd.f32 %v2905_v3, %v6449_v58  ;;  %v3127_v46 = vadd.f32 %v3126_v53, %v6444_v42  ;;  %v2907_v26 = vpop.f32.mrb[198].mxu0  ;;  %v4984_v7 = vpop.f32.mrb[230].mxu1 }
 0x3ff   : > { %v4425_v62 = vpack.c.bf16 %v3135_v45, %v3135_v45  ;;  %v2908_v13 = vadd.f32 %v2907_v26, %v6441_v30  ;;  %v3138_v14 = vadd.f32 %v4984_v7, %v6444_v42  ;;  %v2909_v32 = vpop.f32.mrb[199].mxu0  ;;  %v3129_v50 = vpop.f32.mrb[231].mxu1 }
 0x400   : > { %v4376_v40 = vpack.c.bf16 %v2906_v8, %v2904_v31  ;;  %v4417_v52 = vpack.c.bf16 %v3127_v46, %v3127_v46  ;;  %v2910_v39 = vadd.f32 %v2909_v32, %v6449_v58  ;;  %v3130_v25 = vadd.f32 %v3129_v50, %v6444_v42 }
 0x401   : > { %3969 = vst.msk [vmem:[%s6242_s15 + $0x280] sm:$0xf] %vm3880_vm1, %v4425_v62  ;;  %v4429_v9 = vpack.c.bf16 %v3138_v14, %v3138_v14 }
 0x402   : > { %3920 = vst [vmem:[%s6242_s15 + $0x128] sm:$0xff] %v4376_v40  ;;  %3961 = vst.msk [vmem:[%s6242_s15 + $0x248] sm:$0xf] %vm3880_vm1, %v4417_v52  ;;  %v4380_v6 = vpack.c.bf16 %v2910_v39, %v2908_v13  ;;  %v4421_v16 = vpack.c.bf16 %v3130_v25, %v3130_v25 }
 0x403   : > { %3973 = vst.msk [vmem:[%s6242_s15 + $0x29c] sm:$0xf] %vm3880_vm1, %v4429_v9 }
 0x404   : > { %3924 = vst [vmem:[%s6242_s15 + $0x144] sm:$0xff] %v4380_v6  ;;  %3965 = vst.msk [vmem:[%s6242_s15 + $0x264] sm:$0xf] %vm3880_vm1, %v4421_v16  ;;  %v2913_v44 = vpop.f32.mrb[200].mxu0  ;;  %v4987_v24 = vpop.f32.mrb[232].mxu1 }
 0x405   : > { %v2914_v51 = vadd.f32 %v2913_v44, %v6441_v30  ;;  %v3151_v10 = vadd.f32 %v4987_v24, %v6444_v42  ;;  %v2915_v23 = vpop.f32.mrb[201].mxu0  ;;  %v3142_v17 = vpop.f32.mrb[233].mxu1 }
 0x406   : > { %v2916_v59 = vadd.f32 %v2915_v23, %v6449_v58  ;;  %v3143_v2 = vadd.f32 %v3142_v17, %v6444_v42  ;;  %v2917_v19 = vpop.f32.mrb[202].mxu0  ;;  %v4988_v49 = vpop.f32.mrb[234].mxu1 }
 0x407   : > { %v4441_v29 = vpack.c.bf16 %v3151_v10, %v3151_v10  ;;  %v2918_v36 = vadd.f32 %v2917_v19, %v6441_v30  ;;  %v3154_v61 = vadd.f32 %v4988_v49, %v6444_v42  ;;  %v2919_v21 = vpop.f32.mrb[203].mxu0  ;;  %v3145_v57 = vpop.f32.mrb[235].mxu1 }
 0x408   : > { %v4384_v37 = vpack.c.bf16 %v2916_v59, %v2914_v51  ;;  %v4433_v47 = vpack.c.bf16 %v3143_v2, %v3143_v2  ;;  %v2920_v56 = vadd.f32 %v2919_v21, %v6449_v58  ;;  %v3146_v60 = vadd.f32 %v3145_v57, %v6444_v42 }
 0x409   : > { %3985 = vst.msk [vmem:[%s6242_s15 + $0x2f0] sm:$0xf] %vm3880_vm1, %v4441_v29  ;;  %v4445_v27 = vpack.c.bf16 %v3154_v61, %v3154_v61 }
 0x40a   : > { %3928 = vst [vmem:[%s6242_s15 + $0x160] sm:$0xff] %v4384_v37  ;;  %3977 = vst.msk [vmem:[%s6242_s15 + $0x2b8] sm:$0xf] %vm3880_vm1, %v4433_v47  ;;  %v4388_v63 = vpack.c.bf16 %v2920_v56, %v2918_v36  ;;  %v4437_v11 = vpack.c.bf16 %v3146_v60, %v3146_v60 }
 0x40b   : > { %3989 = vst.msk [vmem:[%s6242_s15 + $0x30c] sm:$0xf] %vm3880_vm1, %v4445_v27 }
 0x40c   : > { %3932 = vst [vmem:[%s6242_s15 + $0x17c] sm:$0xff] %v4388_v63  ;;  %3981 = vst.msk [vmem:[%s6242_s15 + $0x2d4] sm:$0xf] %vm3880_vm1, %v4437_v11  ;;  %v2923_v34 = vpop.f32.mrb[204].mxu0  ;;  %v4991_v35 = vpop.f32.mrb[236].mxu1 }
 0x40d   : > { %v2924_v5 = vadd.f32 %v2923_v34, %v6441_v30  ;;  %v3167_v4 = vadd.f32 %v4991_v35, %v6444_v42  ;;  %v2925_v38 = vpop.f32.mrb[205].mxu0  ;;  %v3158_v48 = vpop.f32.mrb[237].mxu1 }
 0x40e   : > { %v2926_v54 = vadd.f32 %v2925_v38, %v6449_v58  ;;  %v3159_v15 = vadd.f32 %v3158_v48, %v6444_v42  ;;  %v2927_v55 = vpop.f32.mrb[206].mxu0  ;;  %v4992_v41 = vpop.f32.mrb[238].mxu1 }
 0x40f   : > { %v4457_v43 = vpack.c.bf16 %v3167_v4, %v3167_v4  ;;  %v2928_v18 = vadd.f32 %v2927_v55, %v6441_v30  ;;  %v3170_v0 = vadd.f32 %v4992_v41, %v6444_v42  ;;  %v2929_v12 = vpop.f32.mrb[207].mxu0  ;;  %v3161_v20 = vpop.f32.mrb[239].mxu1 }
 0x410   : > { %v4392_v33 = vpack.c.bf16 %v2926_v54, %v2924_v5  ;;  %v4449_v22 = vpack.c.bf16 %v3159_v15, %v3159_v15  ;;  %v2930_v1 = vadd.f32 %v2929_v12, %v6449_v58  ;;  %v3162_v28 = vadd.f32 %v3161_v20, %v6444_v42 }
 0x411   : > { %4001 = vst.msk [vmem:[%s6242_s15 + $0x360] sm:$0xf] %vm3880_vm1, %v4457_v43  ;;  %v4461_v31 = vpack.c.bf16 %v3170_v0, %v3170_v0 }
 0x412   : > { %3936 = vst [vmem:[%s6242_s15 + $0x198] sm:$0xff] %v4392_v33  ;;  %3993 = vst.msk [vmem:[%s6242_s15 + $0x328] sm:$0xf] %vm3880_vm1, %v4449_v22  ;;  %v4396_v45 = vpack.c.bf16 %v2930_v1, %v2928_v18  ;;  %v4453_v3 = vpack.c.bf16 %v3162_v28, %v3162_v28 }
 0x413   : > { %4005 = vst.msk [vmem:[%s6242_s15 + $0x37c] sm:$0xf] %vm3880_vm1, %v4461_v31 }
 0x414   : > { %3940 = vst [vmem:[%s6242_s15 + $0x1b4] sm:$0xff] %v4396_v45  ;;  %3997 = vst.msk [vmem:[%s6242_s15 + $0x344] sm:$0xf] %vm3880_vm1, %v4453_v3  ;;  %v2933_v53 = vpop.f32.mrb[208].mxu0 }
 0x415   : > { %v2934_v8 = vadd.f32 %v2933_v53, %v6441_v30  ;;  %v2935_v46 = vpop.f32.mrb[209].mxu0 }
 0x416   : > { %v2936_v42 = vadd.f32 %v2935_v46, %v6449_v58  ;;  %v2937_v26 = vpop.f32.mrb[210].mxu0 }
 0x417   : > { %v2938_v7 = vadd.f32 %v2937_v26, %v6441_v30  ;;  %v2939_v62 = vpop.f32.mrb[211].mxu0 }
 0x418   : > { %v4400_v13 = vpack.c.bf16 %v2936_v42, %v2934_v8  ;;  %v2940_v14 = vadd.f32 %v2939_v62, %v6449_v58 }
 0x41a   : > { %3944 = vst [vmem:[%s6242_s15 + $0x1d0] sm:$0xff] %v4400_v13  ;;  %v4404_v32 = vpack.c.bf16 %v2940_v14, %v2938_v7 }
 0x41c   : > { %3948 = vst [vmem:[%s6242_s15 + $0x1ec] sm:$0xff] %v4404_v32  ;;  %v2943_v50 = vpop.f32.mrb[212].mxu0 }
 0x41d   : > { %v2944_v40 = vadd.f32 %v2943_v50, %v6441_v30  ;;  %v2945_v52 = vpop.f32.mrb[213].mxu0 }
 0x41e   : > { %v2946_v39 = vadd.f32 %v2945_v52, %v6449_v58  ;;  %v2947_v25 = vpop.f32.mrb[214].mxu0 }
 0x41f   : > { %v2948_v9 = vadd.f32 %v2947_v25, %v6441_v30  ;;  %v2949_v6 = vpop.f32.mrb[215].mxu0 }
 0x420   : > { %v4408_v16 = vpack.c.bf16 %v2946_v39, %v2944_v40  ;;  %v2950_v44 = vadd.f32 %v2949_v6, %v6449_v58 }
 0x422   : > { %3952 = vst [vmem:[%s6242_s15 + $0x208] sm:$0xff] %v4408_v16  ;;  %v4412_v24 = vpack.c.bf16 %v2950_v44, %v2948_v9 }
 0x424   : > { %3956 = vst [vmem:[%s6242_s15 + $0x224] sm:$0xff] %v4412_v24  ;;  %v2953_v51 = vpop.f32.mrb[216].mxu0 }
 0x425   : > { %v2954_v10 = vadd.f32 %v2953_v51, %v6441_v30  ;;  %v2955_v23 = vpop.f32.mrb[217].mxu0 }
 0x426   : > { %v2956_v17 = vadd.f32 %v2955_v23, %v6449_v58  ;;  %v2957_v59 = vpop.f32.mrb[218].mxu0 }
 0x427   : > { %v2958_v2 = vadd.f32 %v2957_v59, %v6441_v30  ;;  %v2959_v19 = vpop.f32.mrb[219].mxu0 }
 0x428   : > { %v4416_v49 = vpack.c.bf16 %v2956_v17, %v2954_v10  ;;  %v2960_v29 = vadd.f32 %v2959_v19, %v6449_v58 }
 0x42a   : > { %3960 = vst [vmem:[%s6242_s15 + $0x240] sm:$0xff] %v4416_v49  ;;  %v4420_v36 = vpack.c.bf16 %v2960_v29, %v2958_v2 }
 0x42c   : > { %3964 = vst [vmem:[%s6242_s15 + $0x25c] sm:$0xff] %v4420_v36  ;;  %v2963_v61 = vpop.f32.mrb[220].mxu0 }
 0x42d   : > { %v2964_v21 = vadd.f32 %v2963_v61, %v6441_v30  ;;  %v2965_v57 = vpop.f32.mrb[221].mxu0 }
 0x42e   : > { %v2966_v37 = vadd.f32 %v2965_v57, %v6449_v58  ;;  %v2967_v47 = vpop.f32.mrb[222].mxu0 }
 0x42f   : > { %v2968_v56 = vadd.f32 %v2967_v47, %v6441_v30  ;;  %v2969_v60 = vpop.f32.mrb[223].mxu0 }
 0x430   : > { %v4424_v27 = vpack.c.bf16 %v2966_v37, %v2964_v21  ;;  %v2970_v63 = vadd.f32 %v2969_v60, %v6449_v58 }
 0x432   : > { %3968 = vst [vmem:[%s6242_s15 + $0x278] sm:$0xff] %v4424_v27  ;;  %v4428_v11 = vpack.c.bf16 %v2970_v63, %v2968_v56 }
 0x434   : > { %3972 = vst [vmem:[%s6242_s15 + $0x294] sm:$0xff] %v4428_v11  ;;  %v2973_v34 = vpop.f32.mrb[224].mxu0 }
 0x435   : > { %v2974_v35 = vadd.f32 %v2973_v34, %v6441_v30  ;;  %v2975_v5 = vpop.f32.mrb[225].mxu0 }
 0x436   : > { %v2976_v4 = vadd.f32 %v2975_v5, %v6449_v58  ;;  %v2977_v38 = vpop.f32.mrb[226].mxu0 }
 0x437   : > { %v2978_v48 = vadd.f32 %v2977_v38, %v6441_v30  ;;  %v2979_v54 = vpop.f32.mrb[227].mxu0 }
 0x438   : > { %v4432_v15 = vpack.c.bf16 %v2976_v4, %v2974_v35  ;;  %v2980_v55 = vadd.f32 %v2979_v54, %v6449_v58 }
 0x43a   : > { %3976 = vst [vmem:[%s6242_s15 + $0x2b0] sm:$0xff] %v4432_v15  ;;  %v4436_v41 = vpack.c.bf16 %v2980_v55, %v2978_v48 }
 0x43c   : > { %3980 = vst [vmem:[%s6242_s15 + $0x2cc] sm:$0xff] %v4436_v41  ;;  %v2983_v43 = vpop.f32.mrb[228].mxu0 }
 0x43d   : > { %v2984_v18 = vadd.f32 %v2983_v43, %v6441_v30  ;;  %v2985_v0 = vpop.f32.mrb[229].mxu0 }
 0x43e   : > { %v2986_v12 = vadd.f32 %v2985_v0, %v6449_v58  ;;  %v2987_v20 = vpop.f32.mrb[230].mxu0 }
 0x43f   : > { %v2988_v33 = vadd.f32 %v2987_v20, %v6441_v30  ;;  %v2989_v22 = vpop.f32.mrb[231].mxu0 }
 0x440   : > { %v4440_v1 = vpack.c.bf16 %v2986_v12, %v2984_v18  ;;  %v2990_v28 = vadd.f32 %v2989_v22, %v6449_v58 }
 0x442   : > { %3984 = vst [vmem:[%s6242_s15 + $0x2e8] sm:$0xff] %v4440_v1  ;;  %v4444_v31 = vpack.c.bf16 %v2990_v28, %v2988_v33 }
 0x444   : > { %3988 = vst [vmem:[%s6242_s15 + $0x304] sm:$0xff] %v4444_v31  ;;  %v2993_v45 = vpop.f32.mrb[232].mxu0 }
 0x445   : > { %v2994_v3 = vadd.f32 %v2993_v45, %v6441_v30  ;;  %v2995_v53 = vpop.f32.mrb[233].mxu0 }
 0x446   : > { %v2996_v8 = vadd.f32 %v2995_v53, %v6449_v58  ;;  %v2997_v46 = vpop.f32.mrb[234].mxu0 }
 0x447   : > { %v2998_v42 = vadd.f32 %v2997_v46, %v6441_v30  ;;  %v2999_v26 = vpop.f32.mrb[235].mxu0 }
 0x448   : > { %v4448_v7 = vpack.c.bf16 %v2996_v8, %v2994_v3  ;;  %v3000_v62 = vadd.f32 %v2999_v26, %v6449_v58 }
 0x44a   : > { %3992 = vst [vmem:[%s6242_s15 + $0x320] sm:$0xff] %v4448_v7  ;;  %v4452_v13 = vpack.c.bf16 %v3000_v62, %v2998_v42 }
 0x44c   : > { %3996 = vst [vmem:[%s6242_s15 + $0x33c] sm:$0xff] %v4452_v13  ;;  %v3003_v14 = vpop.f32.mrb[236].mxu0 }
 0x44d   : > { %v3004_v32 = vadd.f32 %v3003_v14, %v6441_v30  ;;  %v3005_v50 = vpop.f32.mrb[237].mxu0 }
 0x44e   : > { %v3006_v40 = vadd.f32 %v3005_v50, %v6449_v58  ;;  %v3007_v52 = vpop.f32.mrb[238].mxu0 }
 0x44f   : > { %v3008_v39 = vadd.f32 %v3007_v52, %v6441_v30  ;;  %v3009_v25 = vpop.f32.mrb[239].mxu0 }
 0x450   : > { %v4456_v9 = vpack.c.bf16 %v3006_v40, %v3004_v32  ;;  %v3010_v6 = vadd.f32 %v3009_v25, %v6449_v58 }
 0x452   : > { %4000 = vst [vmem:[%s6242_s15 + $0x358] sm:$0xff] %v4456_v9  ;;  %v4460_v16 = vpack.c.bf16 %v3010_v6, %v3008_v39 }
 0x454   : > { %4004 = vst [vmem:[%s6242_s15 + $0x374] sm:$0xff] %v4460_v16 }
 0x455 PF: > { %s17_s24 = sadd.s32 1, %s5163_s24  }
 0x456   : > { %p14_p4 = scmp.ge.s32.totalorder %s17_s24, 4  }
 0x458   :  { %16 = sbr.rel (!%p14_p4) target bundleno = 1 (0x1), region = 78 }

</bundles_post_ra>
